<compile_context>
chip_gen: v5e
topology: v5e:2x2
jax: 0.10.0
libtpu: 0.0.40
codegen_flags: <defaults>
</compile_context>

<pallas_src>
import functools

import jax
import jax.numpy as jnp
from jax import lax
from jax.experimental import pallas as pl
from jax.experimental.pallas import tpu as pltpu

EPS = 1e-5
LANE = 128


def _round_up(x, m):
    return (x + m - 1) // m * m


def _inverted_residual_kernel(x_ref, w1_ref, b1_ref, wdw_ref, bdw_ref,
                              w2_ref, b2_ref, o_ref, *, stride, use_res):
    # x_ref : (NB, H, W, Cp)     w1: (Cp, hidp)      b1: (1, hidp)
    # wdw   : (9, hidp)  3x3 depthwise taps (ky*3+kx)  bdw: (1, hidp)
    # w2    : (hidp, Coutp)      b2: (1, Coutp)
    # o_ref : (NB, Hout, Wout, Coutp)
    NB, H, W, Cp = x_ref.shape
    hidp = w1_ref.shape[1]
    Coutp = w2_ref.shape[1]
    Hout, Wout = o_ref.shape[1], o_ref.shape[2]

    x = x_ref[...]                                         # (NB,H,W,Cp) f32

    # ---- 1x1 expand conv (+ folded BN) + ReLU6: bf16 MXU, f32 accumulate --
    t = jnp.dot(x.reshape(NB * H * W, Cp).astype(jnp.bfloat16),
                w1_ref[...].astype(jnp.bfloat16),
                preferred_element_type=jnp.float32)
    t = jnp.clip(t + b1_ref[...], 0.0, 6.0).reshape(NB, H, W, hidp)

    # ---- 3x3 depthwise conv (padding=1) + folded BN + ReLU6, in f32 -------
    # dx (W) shifts: build the two shifted copies once (W is the sublane
    # axis), then everything else is pure VPU multiply-add.
    zcol = jnp.zeros((NB, H, 1, hidp), jnp.float32)
    t_m1 = jnp.concatenate([zcol, t[:, :, :W - 1, :]], axis=2)  # t[.., j-1, :]
    t_p1 = jnp.concatenate([t[:, :, 1:, :], zcol], axis=2)      # t[.., j+1, :]

    wd = wdw_ref[...]                                      # (9, hidp)

    def kx_row(ky):  # weighted sum over the three kx taps of kernel row ky
        return (t_m1 * wd[3 * ky + 0:3 * ky + 1, :]
                + t * wd[3 * ky + 1:3 * ky + 2, :]
                + t_p1 * wd[3 * ky + 2:3 * ky + 3, :])

    row_top, row_mid, row_bot = kx_row(0), kx_row(1), kx_row(2)

    # dy (H) shifts: H is a leading dim -> slices/concats need no sublane
    # relayout.
    zrow = jnp.zeros((NB, 1, W, hidp), jnp.float32)
    acc = row_mid
    acc = acc + jnp.concatenate([zrow, row_top[:, :H - 1]], axis=1)
    acc = acc + jnp.concatenate([row_bot[:, 1:], zrow], axis=1)
    acc = jnp.clip(acc + bdw_ref[...], 0.0, 6.0)           # (NB,H,W,hidp)

    # stride>1: dense depthwise above, decimate once (cheaper than nine
    # strided slices).  Not exercised by the stride=1 test below.
    if stride != 1:
        acc = lax.slice(acc, (0, 0, 0, 0),
                        (NB, (Hout - 1) * stride + 1,
                         (Wout - 1) * stride + 1, hidp),
                        (1, stride, stride, 1))

    # ---- 1x1 project conv (+ folded BN): bf16 MXU, f32 accumulate ---------
    y = jnp.dot(acc.reshape(NB * Hout * Wout, hidp).astype(jnp.bfloat16),
                w2_ref[...].astype(jnp.bfloat16),
                preferred_element_type=jnp.float32)
    y = (y + b2_ref[...]).reshape(NB, Hout, Wout, Coutp)

    if use_res:
        y = y + x                                          # residual in f32

    o_ref[...] = y.astype(o_ref.dtype)                     # lane-dense store


def _pick_batch_block(n, h, w, cp, hidp, coutp, budget_bytes=48 * 1024 * 1024):
    """Largest divisor of n whose per-step VMEM footprint fits the budget."""
    per_img = 4 * h * w * (2 * cp + 12 * hidp + 2 * coutp)  # generous estimate
    nb = max(1, min(n, budget_bytes // max(per_img, 1)))
    while n % nb:
        nb -= 1
    return nb


def inverted_residual_pallas(x_nchw, folded_params, stride, oup):
    w1, b1, wd, bd, w2, b2 = folded_params
    N, Cin, H, W = x_nchw.shape
    Cp, hidp = w1.shape
    Coutp = w2.shape[1]
    use_res = (stride == 1) and (Cin == oup)
    Hout = (H - 1) // stride + 1
    Wout = (W - 1) // stride + 1

    # NCHW -> NHWC, channels zero-padded to the 128-lane boundary.
    x = jnp.transpose(x_nchw, (0, 2, 3, 1)).astype(jnp.float32)
    if Cp != Cin:
        x = jnp.pad(x, ((0, 0), (0, 0), (0, 0), (0, Cp - Cin)))

    NB = _pick_batch_block(N, H, W, Cp, hidp, Coutp)
    grid = (N // NB,)

    # Explicit VMEM budget: double-buffered I/O blocks + f32 intermediates +
    # weights, with headroom; capped at 64 MiB to stay v7x-safe.
    blk_bytes = (4 * NB * H * W * (2 * Cp + 12 * hidp)
                 + 4 * NB * Hout * Wout * 2 * Coutp)
    w_bytes = 4 * (w1.size + b1.size + wd.size + bd.size + w2.size + b2.size)
    vmem_limit = int(min(64 * 1024 * 1024,
                         max(32 * 1024 * 1024, 2 * (blk_bytes + w_bytes))))

    kernel = functools.partial(_inverted_residual_kernel,
                               stride=stride, use_res=use_res)
    out = pl.pallas_call(
        kernel,
        out_shape=jax.ShapeDtypeStruct((N, Hout, Wout, Coutp), jnp.float32),
        grid_spec=pltpu.PrefetchScalarGridSpec(
            num_scalar_prefetch=0,
            grid=grid,
            in_specs=[
                pl.BlockSpec((NB, H, W, Cp), lambda n: (n, 0, 0, 0)),
                pl.BlockSpec(w1.shape, lambda n: (0, 0)),
                pl.BlockSpec(b1.shape, lambda n: (0, 0)),
                pl.BlockSpec(wd.shape, lambda n: (0, 0)),
                pl.BlockSpec(bd.shape, lambda n: (0, 0)),
                pl.BlockSpec(w2.shape, lambda n: (0, 0)),
                pl.BlockSpec(b2.shape, lambda n: (0, 0)),
            ],
            out_specs=pl.BlockSpec((NB, Hout, Wout, Coutp),
                                   lambda n: (n, 0, 0, 0)),
        ),
        compiler_params=pltpu.CompilerParams(
            dimension_semantics=("parallel",),
            vmem_limit_bytes=vmem_limit),
    )(x, w1, b1, wd, bd, w2, b2)

    # Slice off channel padding; back to NCHW only for the PyTorch interface.
    out = out[..., :oup]
    return jnp.transpose(out, (0, 3, 1, 2))


def make_params(key, inp, oup, expand_ratio):
    """Deterministic conv weights (PyTorch OIHW layout) + BN params."""
    hid = inp * expand_ratio
    ks = jax.random.split(key, 6)
    conv_w1 = 0.1 * jax.random.normal(ks[0], (hid, inp, 1, 1), jnp.float32)
    conv_wd = 0.1 * jax.random.normal(ks[1], (hid, 1, 3, 3), jnp.float32)
    conv_w2 = 0.1 * jax.random.normal(ks[2], (oup, hid, 1, 1), jnp.float32)

    def bn_params(k, c):
        k1, k2, k3, k4 = jax.random.split(k, 4)
        gamma = 1.0 + 0.05 * jax.random.normal(k1, (c,), jnp.float32)
        beta = 0.05 * jax.random.normal(k2, (c,), jnp.float32)
        mean = 0.05 * jax.random.normal(k3, (c,), jnp.float32)
        var = 1.0 + 0.1 * jnp.abs(jax.random.normal(k4, (c,), jnp.float32))
        return gamma, beta, mean, var

    bn1 = bn_params(ks[3], hid)
    bn2 = bn_params(ks[4], hid)
    bn3 = bn_params(ks[5], oup)
    return conv_w1, bn1, conv_wd, bn2, conv_w2, bn3


def fold_params(conv_w1, bn1, conv_wd, bn2, conv_w2, bn3):
    """Fold eval-mode BN into the convs and zero-pad all channel dims to the
    128-lane boundary (padded hidden channels stay exactly 0 through ReLU6
    and the depthwise conv; padded output channels are 0 and sliced off)."""
    g1, be1, m1, v1 = bn1
    g2, be2, m2, v2 = bn2
    g3, be3, m3, v3 = bn3
    hid, cin = conv_w1.shape[0], conv_w1.shape[1]
    cout = conv_w2.shape[0]
    cp = _round_up(cin, LANE)
    hidp = _round_up(hid, LANE)
    coutp = _round_up(cout, LANE)

    s1 = g1 / jnp.sqrt(v1 + EPS)
    w1 = conv_w1[:, :, 0, 0].T * s1[None, :]                 # (cin, hid)
    b1 = (be1 - m1 * s1)[None, :]                            # (1, hid)

    s2 = g2 / jnp.sqrt(v2 + EPS)
    wd = jnp.transpose(conv_wd[:, 0, :, :], (1, 2, 0)) * s2[None, None, :]
    wd = wd.reshape(9, hid)                                  # (9, hid)
    bd = (be2 - m2 * s2)[None, :]                            # (1, hid)

    s3 = g3 / jnp.sqrt(v3 + EPS)
    w2 = conv_w2[:, :, 0, 0].T * s3[None, :]                 # (hid, cout)
    b2 = (be3 - m3 * s3)[None, :]                            # (1, cout)

    w1 = jnp.pad(w1, ((0, cp - cin), (0, hidp - hid)))
    b1 = jnp.pad(b1, ((0, 0), (0, hidp - hid)))
    wd = jnp.pad(wd, ((0, 0), (0, hidp - hid)))
    bd = jnp.pad(bd, ((0, 0), (0, hidp - hid)))
    w2 = jnp.pad(w2, ((0, hidp - hid), (0, coutp - cout)))
    b2 = jnp.pad(b2, ((0, 0), (0, coutp - cout)))
    return w1, b1, wd, bd, w2, b2


def ref_inverted_residual(x, conv_w1, bn1, conv_wd, bn2, conv_w2, bn3,
                          stride, use_res):
    """Pure-JAX NCHW reference mirroring the PyTorch module (eval mode)."""
    def bn(h, p):
        g, b, m, v = p
        s = (g / jnp.sqrt(v + EPS))[None, :, None, None]
        return (h - m[None, :, None, None]) * s + b[None, :, None, None]

    dn = ('NCHW', 'OIHW', 'NCHW')
    hid = conv_wd.shape[0]
    prec = lax.Precision.HIGHEST
    h = lax.conv_general_dilated(x, conv_w1, (1, 1), 'VALID',
                                 dimension_numbers=dn, precision=prec)
    h = jnp.clip(bn(h, bn1), 0.0, 6.0)
    h = lax.conv_general_dilated(h, conv_wd, (stride, stride),
                                 ((1, 1), (1, 1)), dimension_numbers=dn,
                                 feature_group_count=hid, precision=prec)
    h = jnp.clip(bn(h, bn2), 0.0, 6.0)
    h = lax.conv_general_dilated(h, conv_w2, (1, 1), 'VALID',
                                 dimension_numbers=dn, precision=prec)
    h = bn(h, bn3)
    return x + h if use_res else h


if __name__ == "__main__":
    # Small shapes consistent with the module: inp=oup=4, stride=1,
    # expand_ratio=6 -> hidden=24, residual connection active.
    inp, oup, stride, expand_ratio = 4, 4, 1, 6
    N, H, W = 2, 16, 16

    key = jax.random.PRNGKey(0)
    kx, kp = jax.random.split(key)
    x = jax.random.normal(kx, (N, inp, H, W), jnp.float32)

    conv_w1, bn1, conv_wd, bn2, conv_w2, bn3 = make_params(
        kp, inp, oup, expand_ratio)
    folded = fold_params(conv_w1, bn1, conv_wd, bn2, conv_w2, bn3)

    out = inverted_residual_pallas(x, folded, stride, oup)
    out = jax.block_until_ready(out)

    use_res = (stride == 1) and (inp == oup)
    ref = ref_inverted_residual(x, conv_w1, bn1, conv_wd, bn2, conv_w2, bn3,
                                stride, use_res)
    ref = jax.block_until_ready(ref)

    assert out.shape == ref.shape, (out.shape, ref.shape)
    err = float(jnp.max(jnp.abs(out - ref)))
    # Kernel matmuls use bf16 operands on the MXU with f32 accumulation
    # (single pass); the reference runs full-f32, hence a bf16-level tolerance.
    assert jnp.allclose(out, ref, atol=1e-2, rtol=1e-2), err
    print("KERNEL_OK")
</pallas_src>

<mosaic_0001>
module attributes {stable_mosaic.version = 11 : i64} {
  func.func @_inverted_residual_kernel(%arg0: i32, %arg1: memref<2x16x16x128xf32, #tpu.memory_space<vmem>>, %arg2: memref<128x128xf32, #tpu.memory_space<vmem>>, %arg3: memref<1x128xf32, #tpu.memory_space<vmem>>, %arg4: memref<9x128xf32, #tpu.memory_space<vmem>>, %arg5: memref<1x128xf32, #tpu.memory_space<vmem>>, %arg6: memref<128x128xf32, #tpu.memory_space<vmem>>, %arg7: memref<1x128xf32, #tpu.memory_space<vmem>>, %arg8: memref<2x16x16x128xf32, #tpu.memory_space<vmem>>) attributes {dimension_semantics = [#tpu.dimension_semantics<parallel>], iteration_bounds = array<i64: 1>, scalar_prefetch = 0 : i64, scratch_operands = 0 : i64, tpu.core_type = #tpu.core_type<tc>, window_params = [{transform_indices = @transform_0, window_bounds = array<i64: 2, 16, 16, 128>}, {pipeline_mode = #tpu.pipeline_mode<synchronous>, transform_indices = @transform_1, window_bounds = array<i64: 128, 128>}, {pipeline_mode = #tpu.pipeline_mode<synchronous>, transform_indices = @transform_2, window_bounds = array<i64: 1, 128>}, {pipeline_mode = #tpu.pipeline_mode<synchronous>, transform_indices = @transform_3, window_bounds = array<i64: 9, 128>}, {pipeline_mode = #tpu.pipeline_mode<synchronous>, transform_indices = @transform_4, window_bounds = array<i64: 1, 128>}, {pipeline_mode = #tpu.pipeline_mode<synchronous>, transform_indices = @transform_5, window_bounds = array<i64: 128, 128>}, {pipeline_mode = #tpu.pipeline_mode<synchronous>, transform_indices = @transform_6, window_bounds = array<i64: 1, 128>}, {transform_indices = @transform_7, window_bounds = array<i64: 2, 16, 16, 128>}]} {
    %c0 = arith.constant 0 : index
    %c0_0 = arith.constant 0 : index
    %c0_1 = arith.constant 0 : index
    %c0_2 = arith.constant 0 : index
    %0 = vector.load %arg1[%c0, %c0_0, %c0_1, %c0_2] : memref<2x16x16x128xf32, #tpu.memory_space<vmem>>, vector<2x16x16x128xf32>
    %1 = vector.shape_cast %0 : vector<2x16x16x128xf32> to vector<512x128xf32>
    %2 = arith.truncf %1 : vector<512x128xf32> to vector<512x128xbf16>
    %c0_3 = arith.constant 0 : index
    %c0_4 = arith.constant 0 : index
    %3 = vector.load %arg2[%c0_3, %c0_4] : memref<128x128xf32, #tpu.memory_space<vmem>>, vector<128x128xf32>
    %4 = arith.truncf %3 : vector<128x128xf32> to vector<128x128xbf16>
    %cst = arith.constant dense<0.000000e+00> : vector<512x128xf32>
    %5 = tpu.matmul %2, %4, %cst {dimension_numbers = #tpu.dot_dimension_numbers<[1], [0], [0], [1], [0, 0, 1, 1], [], []>} : vector<512x128xbf16>, vector<128x128xbf16>, vector<512x128xf32> -> vector<512x128xf32>
    %c0_5 = arith.constant 0 : index
    %c0_6 = arith.constant 0 : index
    %6 = vector.load %arg3[%c0_5, %c0_6] : memref<1x128xf32, #tpu.memory_space<vmem>>, vector<1x128xf32>
    %7 = vector.broadcast %6 : vector<1x128xf32> to vector<512x128xf32>
    %8 = arith.addf %5, %7 : vector<512x128xf32>
    %cst_7 = arith.constant 0.000000e+00 : f32
    %cst_8 = arith.constant 6.000000e+00 : f32
    %9 = vector.broadcast %cst_7 : f32 to vector<512x128xf32>
    %10 = arith.maximumf %9, %8 : vector<512x128xf32>
    %11 = vector.broadcast %cst_8 : f32 to vector<512x128xf32>
    %12 = arith.minimumf %11, %10 : vector<512x128xf32>
    %13 = vector.shape_cast %12 : vector<512x128xf32> to vector<2x16x16x128xf32>
    %cst_9 = arith.constant 0.000000e+00 : f32
    %14 = vector.broadcast %cst_9 : f32 to vector<2x16x1x128xf32>
    %15 = vector.extract_strided_slice %13 {offsets = [0, 0, 0, 0], sizes = [2, 16, 15, 128], strides = [1, 1, 1, 1]} : vector<2x16x16x128xf32> to vector<2x16x15x128xf32>
    %16 = tpu.concatenate %14, %15 in 2 : vector<2x16x1x128xf32>, vector<2x16x15x128xf32> -> vector<2x16x16x128xf32>
    %17 = vector.extract_strided_slice %13 {offsets = [0, 0, 1, 0], sizes = [2, 16, 15, 128], strides = [1, 1, 1, 1]} : vector<2x16x16x128xf32> to vector<2x16x15x128xf32>
    %18 = tpu.concatenate %17, %14 in 2 : vector<2x16x15x128xf32>, vector<2x16x1x128xf32> -> vector<2x16x16x128xf32>
    %c0_10 = arith.constant 0 : index
    %c0_11 = arith.constant 0 : index
    %19 = vector.load %arg4[%c0_10, %c0_11] : memref<9x128xf32, #tpu.memory_space<vmem>>, vector<9x128xf32>
    %20 = vector.extract_strided_slice %19 {offsets = [0, 0], sizes = [1, 128], strides = [1, 1]} : vector<9x128xf32> to vector<1x128xf32>
    %21 = vector.shape_cast %20 : vector<1x128xf32> to vector<1x1x1x128xf32>
    %22 = vector.broadcast %21 : vector<1x1x1x128xf32> to vector<2x16x16x128xf32>
    %23 = arith.mulf %16, %22 : vector<2x16x16x128xf32>
    %24 = vector.extract_strided_slice %19 {offsets = [1, 0], sizes = [1, 128], strides = [1, 1]} : vector<9x128xf32> to vector<1x128xf32>
    %25 = vector.shape_cast %24 : vector<1x128xf32> to vector<1x1x1x128xf32>
    %26 = vector.broadcast %25 : vector<1x1x1x128xf32> to vector<2x16x16x128xf32>
    %27 = arith.mulf %13, %26 : vector<2x16x16x128xf32>
    %28 = arith.addf %23, %27 : vector<2x16x16x128xf32>
    %29 = vector.extract_strided_slice %19 {offsets = [2, 0], sizes = [1, 128], strides = [1, 1]} : vector<9x128xf32> to vector<1x128xf32>
    %30 = vector.shape_cast %29 : vector<1x128xf32> to vector<1x1x1x128xf32>
    %31 = vector.broadcast %30 : vector<1x1x1x128xf32> to vector<2x16x16x128xf32>
    %32 = arith.mulf %18, %31 : vector<2x16x16x128xf32>
    %33 = arith.addf %28, %32 : vector<2x16x16x128xf32>
    %34 = vector.extract_strided_slice %19 {offsets = [3, 0], sizes = [1, 128], strides = [1, 1]} : vector<9x128xf32> to vector<1x128xf32>
    %35 = vector.shape_cast %34 : vector<1x128xf32> to vector<1x1x1x128xf32>
    %36 = vector.broadcast %35 : vector<1x1x1x128xf32> to vector<2x16x16x128xf32>
    %37 = arith.mulf %16, %36 : vector<2x16x16x128xf32>
    %38 = vector.extract_strided_slice %19 {offsets = [4, 0], sizes = [1, 128], strides = [1, 1]} : vector<9x128xf32> to vector<1x128xf32>
    %39 = vector.shape_cast %38 : vector<1x128xf32> to vector<1x1x1x128xf32>
    %40 = vector.broadcast %39 : vector<1x1x1x128xf32> to vector<2x16x16x128xf32>
    %41 = arith.mulf %13, %40 : vector<2x16x16x128xf32>
    %42 = arith.addf %37, %41 : vector<2x16x16x128xf32>
    %43 = vector.extract_strided_slice %19 {offsets = [5, 0], sizes = [1, 128], strides = [1, 1]} : vector<9x128xf32> to vector<1x128xf32>
    %44 = vector.shape_cast %43 : vector<1x128xf32> to vector<1x1x1x128xf32>
    %45 = vector.broadcast %44 : vector<1x1x1x128xf32> to vector<2x16x16x128xf32>
    %46 = arith.mulf %18, %45 : vector<2x16x16x128xf32>
    %47 = arith.addf %42, %46 : vector<2x16x16x128xf32>
    %48 = vector.extract_strided_slice %19 {offsets = [6, 0], sizes = [1, 128], strides = [1, 1]} : vector<9x128xf32> to vector<1x128xf32>
    %49 = vector.shape_cast %48 : vector<1x128xf32> to vector<1x1x1x128xf32>
    %50 = vector.broadcast %49 : vector<1x1x1x128xf32> to vector<2x16x16x128xf32>
    %51 = arith.mulf %16, %50 : vector<2x16x16x128xf32>
    %52 = vector.extract_strided_slice %19 {offsets = [7, 0], sizes = [1, 128], strides = [1, 1]} : vector<9x128xf32> to vector<1x128xf32>
    %53 = vector.shape_cast %52 : vector<1x128xf32> to vector<1x1x1x128xf32>
    %54 = vector.broadcast %53 : vector<1x1x1x128xf32> to vector<2x16x16x128xf32>
    %55 = arith.mulf %13, %54 : vector<2x16x16x128xf32>
    %56 = arith.addf %51, %55 : vector<2x16x16x128xf32>
    %57 = vector.extract_strided_slice %19 {offsets = [8, 0], sizes = [1, 128], strides = [1, 1]} : vector<9x128xf32> to vector<1x128xf32>
    %58 = vector.shape_cast %57 : vector<1x128xf32> to vector<1x1x1x128xf32>
    %59 = vector.broadcast %58 : vector<1x1x1x128xf32> to vector<2x16x16x128xf32>
    %60 = arith.mulf %18, %59 : vector<2x16x16x128xf32>
    %61 = arith.addf %56, %60 : vector<2x16x16x128xf32>
    %cst_12 = arith.constant 0.000000e+00 : f32
    %62 = vector.broadcast %cst_12 : f32 to vector<2x1x16x128xf32>
    %63 = vector.extract_strided_slice %33 {offsets = [0, 0, 0, 0], sizes = [2, 15, 16, 128], strides = [1, 1, 1, 1]} : vector<2x16x16x128xf32> to vector<2x15x16x128xf32>
    %64 = tpu.concatenate %62, %63 in 1 : vector<2x1x16x128xf32>, vector<2x15x16x128xf32> -> vector<2x16x16x128xf32>
    %65 = arith.addf %47, %64 : vector<2x16x16x128xf32>
    %66 = vector.extract_strided_slice %61 {offsets = [0, 1, 0, 0], sizes = [2, 15, 16, 128], strides = [1, 1, 1, 1]} : vector<2x16x16x128xf32> to vector<2x15x16x128xf32>
    %67 = tpu.concatenate %66, %62 in 1 : vector<2x15x16x128xf32>, vector<2x1x16x128xf32> -> vector<2x16x16x128xf32>
    %68 = arith.addf %65, %67 : vector<2x16x16x128xf32>
    %c0_13 = arith.constant 0 : index
    %c0_14 = arith.constant 0 : index
    %69 = vector.load %arg5[%c0_13, %c0_14] : memref<1x128xf32, #tpu.memory_space<vmem>>, vector<1x128xf32>
    %70 = vector.shape_cast %69 : vector<1x128xf32> to vector<1x1x1x128xf32>
    %71 = vector.broadcast %70 : vector<1x1x1x128xf32> to vector<2x16x16x128xf32>
    %72 = arith.addf %68, %71 : vector<2x16x16x128xf32>
    %cst_15 = arith.constant 0.000000e+00 : f32
    %cst_16 = arith.constant 6.000000e+00 : f32
    %73 = vector.broadcast %cst_15 : f32 to vector<2x16x16x128xf32>
    %74 = arith.maximumf %73, %72 : vector<2x16x16x128xf32>
    %75 = vector.broadcast %cst_16 : f32 to vector<2x16x16x128xf32>
    %76 = arith.minimumf %75, %74 : vector<2x16x16x128xf32>
    %77 = vector.shape_cast %76 : vector<2x16x16x128xf32> to vector<512x128xf32>
    %78 = arith.truncf %77 : vector<512x128xf32> to vector<512x128xbf16>
    %c0_17 = arith.constant 0 : index
    %c0_18 = arith.constant 0 : index
    %79 = vector.load %arg6[%c0_17, %c0_18] : memref<128x128xf32, #tpu.memory_space<vmem>>, vector<128x128xf32>
    %80 = arith.truncf %79 : vector<128x128xf32> to vector<128x128xbf16>
    %cst_19 = arith.constant dense<0.000000e+00> : vector<512x128xf32>
    %81 = tpu.matmul %78, %80, %cst_19 {dimension_numbers = #tpu.dot_dimension_numbers<[1], [0], [0], [1], [0, 0, 1, 1], [], []>} : vector<512x128xbf16>, vector<128x128xbf16>, vector<512x128xf32> -> vector<512x128xf32>
    %c0_20 = arith.constant 0 : index
    %c0_21 = arith.constant 0 : index
    %82 = vector.load %arg7[%c0_20, %c0_21] : memref<1x128xf32, #tpu.memory_space<vmem>>, vector<1x128xf32>
    %83 = vector.broadcast %82 : vector<1x128xf32> to vector<512x128xf32>
    %84 = arith.addf %81, %83 : vector<512x128xf32>
    %85 = vector.shape_cast %84 : vector<512x128xf32> to vector<2x16x16x128xf32>
    %86 = arith.addf %85, %0 : vector<2x16x16x128xf32>
    %c0_22 = arith.constant 0 : index
    %c0_23 = arith.constant 0 : index
    %c0_24 = arith.constant 0 : index
    %c0_25 = arith.constant 0 : index
    %87 = vector.load %arg8[%c0_22, %c0_23, %c0_24, %c0_25] : memref<2x16x16x128xf32, #tpu.memory_space<vmem>>, vector<2x16x16x128xf32>
    tpu.vector_store %arg8[%c0_22, %c0_23, %c0_24, %c0_25], %86 {strides = array<i32>} : memref<2x16x16x128xf32, #tpu.memory_space<vmem>>, vector<2x16x16x128xf32>,
    return
  }
  func.func @transform_0(%arg0: i32) -> (i32, i32, i32, i32) {
    %c0_i32 = arith.constant 0 : i32
    %c0_i32_0 = arith.constant 0 : i32
    %c0_i32_1 = arith.constant 0 : i32
    %c0_i32_2 = arith.constant 0 : i32
    return %arg0, %c0_i32, %c0_i32_0, %c0_i32_1 : i32, i32, i32, i32
  }
  func.func @transform_1(%arg0: i32) -> (i32, i32) {
    %c0_i32 = arith.constant 0 : i32
    %c0_i32_0 = arith.constant 0 : i32
    %c0_i32_1 = arith.constant 0 : i32
    return %c0_i32, %c0_i32_0 : i32, i32
  }
  func.func @transform_2(%arg0: i32) -> (i32, i32) {
    %c0_i32 = arith.constant 0 : i32
    %c0_i32_0 = arith.constant 0 : i32
    %c0_i32_1 = arith.constant 0 : i32
    return %c0_i32, %c0_i32_0 : i32, i32
  }
  func.func @transform_3(%arg0: i32) -> (i32, i32) {
    %c0_i32 = arith.constant 0 : i32
    %c0_i32_0 = arith.constant 0 : i32
    %c0_i32_1 = arith.constant 0 : i32
    return %c0_i32, %c0_i32_0 : i32, i32
  }
  func.func @transform_4(%arg0: i32) -> (i32, i32) {
    %c0_i32 = arith.constant 0 : i32
    %c0_i32_0 = arith.constant 0 : i32
    %c0_i32_1 = arith.constant 0 : i32
    return %c0_i32, %c0_i32_0 : i32, i32
  }
  func.func @transform_5(%arg0: i32) -> (i32, i32) {
    %c0_i32 = arith.constant 0 : i32
    %c0_i32_0 = arith.constant 0 : i32
    %c0_i32_1 = arith.constant 0 : i32
    return %c0_i32, %c0_i32_0 : i32, i32
  }
  func.func @transform_6(%arg0: i32) -> (i32, i32) {
    %c0_i32 = arith.constant 0 : i32
    %c0_i32_0 = arith.constant 0 : i32
    %c0_i32_1 = arith.constant 0 : i32
    return %c0_i32, %c0_i32_0 : i32, i32
  }
  func.func @transform_7(%arg0: i32) -> (i32, i32, i32, i32) {
    %c0_i32 = arith.constant 0 : i32
    %c0_i32_0 = arith.constant 0 : i32
    %c0_i32_1 = arith.constant 0 : i32
    %c0_i32_2 = arith.constant 0 : i32
    return %arg0, %c0_i32, %c0_i32_0, %c0_i32_1 : i32, i32, i32, i32
  }
}

</mosaic_0001>

<bundles_post_ra>
// kernel: tpu_custom_call.1
= control target key start
LH: loop header
LB: loop body
LE: loop exit
PB: predicated region body
PF: predicated region fallthrough
CT: control target
= control target key end

     0   :  { %12 = vsyncpa [#allocation3], 0  ;;  %s5625_s0 = inlined_call_operand.hbm [shape: f32[2,16,16,128], index: 0, kind: input, shape index: {}]   ;;  %s5626_s1 = inlined_call_operand.hbm [shape: f32[128,128], index: 1, kind: input, shape index: {}]   ;;  %s5627_s2 = inlined_call_operand.vmem [shape: f32[1,128], index: 2, kind: input, shape index: {}]   ;;  %s5628_s3 = inlined_call_operand.hbm [shape: f32[9,128], index: 3, kind: input, shape index: {}]   ;;  %s5629_s4 = inlined_call_operand.vmem [shape: f32[1,128], index: 4, kind: input, shape index: {}]   ;;  %s5630_s5 = inlined_call_operand.hbm [shape: f32[128,128], index: 5, kind: input, shape index: {}]   ;;  %s5631_s6 = inlined_call_operand.vmem [shape: f32[1,128], index: 6, kind: input, shape index: {}]   ;;  %s5632_s7 = inlined_call_operand.hbm [shape: f32[2,16,16,128], index: 7, kind: output, shape index: {}]  }
   0x1   :  { %13 = vsyncpa [#allocation6], 0 }
   0x2   :  { %14 = vsyncpa [#allocation9], 0 }
   0x3   :  { %15 = vsyncpa [#allocation4], 0  ;;  %s33_s26 = sshll.u32 %s5626_s1, 4  ;;  %s2824_s27 = smov [#allocation5]   ;;  %s34_s26 = int_to_ptr.hbm [resolvable:$true] %s33_s26 }
   0x4   :  { %s35_s28 = sshll.u32 %s2824_s27, 4  ;;  %s20_s8 = sshll.u32 %s5625_s0, 4  ;;  %s36_s28 = int_to_ptr.vmem [resolvable:$true] %s35_s28  ;;  %s21_s8 = int_to_ptr.hbm [resolvable:$true] %s20_s8 }
   0x5   :  { %s2825_s9 = smov 128   ;;  %s2826_s10 = smov 8  }
   0x6   :  { %41 = dma.hbm_to_vmem [thread:$0]  %s34_s26, 2048, %s36_s28, [#allocation6], %s2825_s9, %s2825_s9, %s2826_s10  }
   0x7   :  { %s2827_s11 = smov [#allocation2]   ;;  %s48_s1 = sshll.u32 %s5628_s3, 4  ;;  %s49_s1 = int_to_ptr.hbm [resolvable:$true] %s48_s1 }
   0x8   :  { %s22_s12 = sshll.u32 %s2827_s11, 4  ;;  %s63_s16 = sshll.u32 %s5630_s5, 4  ;;  %s23_s12 = int_to_ptr.vmem [resolvable:$true] %s22_s12  ;;  %s64_s16 = int_to_ptr.hbm [resolvable:$true] %s63_s16 }
   0x9   :  { %28 = dma.hbm_to_vmem [thread:$0]  %s21_s8, 8192, %s23_s12, [#allocation3], %s2825_s9, %s2825_s9, %s2826_s10  }
   0xa   :  { %s2828_s17 = smov [#allocation7]   ;;  %s2829_s19 = smov [#allocation8]  }
   0xb   :  { %s50_s18 = sshll.u32 %s2828_s17, 4  ;;  %s65_s3 = sshll.u32 %s2829_s19, 4  ;;  %s51_s18 = int_to_ptr.vmem [resolvable:$true] %s50_s18  ;;  %s66_s3 = int_to_ptr.vmem [resolvable:$true] %s65_s3 }
   0xc   :  { %56 = dma.hbm_to_vmem [thread:$0]  %s49_s1, 256, %s51_s18, [#allocation6], %s2825_s9, %s2825_s9, %s2826_s10  }
   0xd   :  { %71 = dma.hbm_to_vmem [thread:$0]  %s64_s16, 2048, %s66_s3, [#allocation9], %s2825_s9, %s2825_s9, %s2826_s10  }
   0xe   :  { %2816 = dma.done.wait [#allocation3], 8192  }
   0xf   :  { %2817 = vsyncadd [#allocation3], 4294959104 }
  0x10   :  { %2818 = dma.done.wait [#allocation6], 2304  }
  0x11   :  { %2819 = vsyncadd [#allocation6], 4294964992 }
  0x12   :  { %2820 = dma.done.wait [#allocation9], 2048  }
  0x13   :  { %2821 = vsyncadd [#allocation9], 4294965248  ;;  %v200_v0 = vld [vmem:[#allocation5 + $0x70] sm:$0xff]  ;;  %v201_v1 = vld [vmem:[#allocation5 + $0x78] sm:$0xff]  ;;  %vm575_vm0 = vcmask 1040384   ;;  %vm768_vm1 = vcmask 1046528  }
  0x14   :  { %v198_v2 = vld [vmem:[#allocation5 + $0x60] sm:$0xff]  ;;  %v209_v3 = vpack.c.bf16 %v201_v1, %v200_v0  ;;  %v199_v4 = vld [vmem:[#allocation5 + $0x68] sm:$0xff]  ;;  %v196_v6 = vld [vmem:[#allocation5 + $0x50] sm:$0xff]  ;;  %s2579_s19 = sshll.u32 %s5632_s7, 4  ;;  %s2580_s19 = int_to_ptr.hbm [resolvable:$true] %s2579_s19 }
  0x15   :  { %v208_v5 = vpack.c.bf16 %v199_v4, %v198_v2  ;;  %v197_v7 = vld [vmem:[#allocation5 + $0x58] sm:$0xff]  ;;  %v194_v9 = vld [vmem:[#allocation5 + $0x40] sm:$0xff]  ;;  %v195_v10 = vld [vmem:[#allocation5 + $0x48] sm:$0xff] }
  0x16   :  { %214 = vmatpush.bf16.msra.mxu0 %v209_v3  ;;  %2594 = vmatpush.bf16.msra.mxu2 %v209_v3  ;;  %v207_v8 = vpack.c.bf16 %v197_v7, %v196_v6  ;;  %v206_v11 = vpack.c.bf16 %v195_v10, %v194_v9  ;;  %v192_v12 = vld [vmem:[#allocation5 + $0x30] sm:$0xff]  ;;  %v193_v13 = vld [vmem:[#allocation5 + $0x38] sm:$0xff]  ;;  %v190_v15 = vld [vmem:[#allocation5 + $0x20] sm:$0xff] }
  0x17   :  { %v205_v14 = vpack.c.bf16 %v193_v13, %v192_v12  ;;  %v191_v16 = vld [vmem:[#allocation5 + $0x28] sm:$0xff]  ;;  %v188_v18 = vld [vmem:[#allocation5 + $0x10] sm:$0xff]  ;;  %v189_v19 = vld [vmem:[#allocation5 + $0x18] sm:$0xff] }
  0x18   :  { %v204_v17 = vpack.c.bf16 %v191_v16, %v190_v15  ;;  %v203_v20 = vpack.c.bf16 %v189_v19, %v188_v18  ;;  %v186_v21 = vld [vmem:[#allocation5] sm:$0xff]  ;;  %v187_v22 = vld [vmem:[#allocation5 + $0x8] sm:$0xff]  ;;  %v92_v30 = vld [vmem:[#allocation2 + $0x10] sm:$0xff] }
  0x19   :  { %v90_v23 = vld [vmem:[#allocation2] sm:$0xff]  ;;  %v202_v24 = vpack.c.bf16 %v187_v22, %v186_v21  ;;  %v91_v25 = vld [vmem:[#allocation2 + $0x8] sm:$0xff]  ;;  %v93_v31 = vld [vmem:[#allocation2 + $0x18] sm:$0xff] }
  0x1a   :  { %215 = vmatpush.bf16.msra.mxu0 %v208_v5  ;;  %2595 = vmatpush.bf16.msra.mxu2 %v208_v5  ;;  %v122_v26 = vld [vmem:[#allocation2 + $0x100] sm:$0xff]  ;;  %v123_v27 = vld [vmem:[#allocation2 + $0x108] sm:$0xff]  ;;  %v154_v28 = vpack.c.bf16 %v91_v25, %v90_v23  ;;  %v124_v32 = vld [vmem:[#allocation2 + $0x110] sm:$0xff]  ;;  %v155_v34 = vpack.c.bf16 %v93_v31, %v92_v30 }
  0x1b   :  { %v170_v29 = vpack.c.bf16 %v123_v27, %v122_v26  ;;  %v125_v33 = vld [vmem:[#allocation2 + $0x118] sm:$0xff]  ;;  %v94_v36 = vld [vmem:[#allocation2 + $0x20] sm:$0xff]  ;;  %v95_v37 = vld [vmem:[#allocation2 + $0x28] sm:$0xff] }
  0x1c   :  { %v171_v35 = vpack.c.bf16 %v125_v33, %v124_v32  ;;  %v126_v38 = vld [vmem:[#allocation2 + $0x120] sm:$0xff]  ;;  %v127_v39 = vld [vmem:[#allocation2 + $0x128] sm:$0xff]  ;;  %v156_v40 = vpack.c.bf16 %v95_v37, %v94_v36  ;;  %v96_v42 = vld [vmem:[#allocation2 + $0x30] sm:$0xff] }
  0x1d   :  { %v172_v41 = vpack.c.bf16 %v127_v39, %v126_v38  ;;  %v97_v43 = vld [vmem:[#allocation2 + $0x38] sm:$0xff]  ;;  %v128_v44 = vld [vmem:[#allocation2 + $0x130] sm:$0xff]  ;;  %v98_v48 = vld [vmem:[#allocation2 + $0x40] sm:$0xff] }
  0x1e   :  { %216 = vmatpush.bf16.msra.mxu0 %v207_v8  ;;  %2596 = vmatpush.bf16.msra.mxu2 %v207_v8  ;;  %v129_v45 = vld [vmem:[#allocation2 + $0x138] sm:$0xff]  ;;  %v157_v46 = vpack.c.bf16 %v97_v43, %v96_v42  ;;  %v99_v49 = vld [vmem:[#allocation2 + $0x48] sm:$0xff]  ;;  %v130_v50 = vld [vmem:[#allocation2 + $0x140] sm:$0xff] }
  0x1f   :  { %v173_v47 = vpack.c.bf16 %v129_v45, %v128_v44  ;;  %v131_v51 = vld [vmem:[#allocation2 + $0x148] sm:$0xff]  ;;  %v158_v52 = vpack.c.bf16 %v99_v49, %v98_v48  ;;  %v100_v54 = vld [vmem:[#allocation2 + $0x50] sm:$0xff]  ;;  %v101_v55 = vld [vmem:[#allocation2 + $0x58] sm:$0xff] }
  0x20   :  { %v174_v53 = vpack.c.bf16 %v131_v51, %v130_v50  ;;  %v132_v56 = vld [vmem:[#allocation2 + $0x150] sm:$0xff]  ;;  %v133_v57 = vld [vmem:[#allocation2 + $0x158] sm:$0xff]  ;;  %v159_v58 = vpack.c.bf16 %v101_v55, %v100_v54  ;;  %v102_v60 = vld [vmem:[#allocation2 + $0x60] sm:$0xff] }
  0x21   :  { %v175_v59 = vpack.c.bf16 %v133_v57, %v132_v56  ;;  %v103_v61 = vld [vmem:[#allocation2 + $0x68] sm:$0xff]  ;;  %v134_v62 = vld [vmem:[#allocation2 + $0x160] sm:$0xff]  ;;  %v104_v2 = vld [vmem:[#allocation2 + $0x70] sm:$0xff] }
  0x22   :  { %217 = vmatpush.bf16.msra.mxu0 %v206_v11  ;;  %2597 = vmatpush.bf16.msra.mxu2 %v206_v11  ;;  %v135_v63 = vld [vmem:[#allocation2 + $0x168] sm:$0xff]  ;;  %v160_v0 = vpack.c.bf16 %v103_v61, %v102_v60  ;;  %v105_v3 = vld [vmem:[#allocation2 + $0x78] sm:$0xff]  ;;  %v136_v4 = vld [vmem:[#allocation2 + $0x170] sm:$0xff] }
  0x23   :  { %v176_v1 = vpack.c.bf16 %v135_v63, %v134_v62  ;;  %v137_v5 = vld [vmem:[#allocation2 + $0x178] sm:$0xff]  ;;  %v161_v6 = vpack.c.bf16 %v105_v3, %v104_v2  ;;  %v2262_v8 = vld [vmem:[#allocation8 + $0x70] sm:$0xff]  ;;  %v2263_v9 = vld [vmem:[#allocation8 + $0x78] sm:$0xff] }
  0x24   :  { %v177_v7 = vpack.c.bf16 %v137_v5, %v136_v4  ;;  %v2271_v10 = vpack.c.bf16 %v2263_v9, %v2262_v8  ;;  %v2260_v11 = vld [vmem:[#allocation8 + $0x60] sm:$0xff]  ;;  %v2261_v12 = vld [vmem:[#allocation8 + $0x68] sm:$0xff]  ;;  %v2259_v15 = vld [vmem:[#allocation8 + $0x58] sm:$0xff] }
  0x25   :  { %v2270_v13 = vpack.c.bf16 %v2261_v12, %v2260_v11  ;;  %v107_v18 = vld [vmem:[#allocation2 + $0x88] sm:$0xff]  ;;  %v138_v19 = vld [vmem:[#allocation2 + $0x180] sm:$0xff]  ;;  %v2256_v21 = vld [vmem:[#allocation8 + $0x40] sm:$0xff] }
  0x26   :  { %218 = vmatpush.bf16.msra.mxu0 %v205_v14  ;;  %2598 = vmatpush.bf16.msra.mxu2 %v205_v14  ;;  %v2258_v14 = vld [vmem:[#allocation8 + $0x50] sm:$0xff]  ;;  %v2257_v22 = vld [vmem:[#allocation8 + $0x48] sm:$0xff]  ;;  %v2255_v30 = vld [vmem:[#allocation8 + $0x38] sm:$0xff] }
  0x27   :  { %2276 = vmatpush.bf16.msra.mxu1 %v2271_v10  ;;  %2602 = vmatpush.bf16.msra.mxu3 %v2271_v10  ;;  %v2269_v16 = vpack.c.bf16 %v2259_v15, %v2258_v14  ;;  %v2268_v23 = vpack.c.bf16 %v2257_v22, %v2256_v21  ;;  %v961_v32 = vld [vmem:[#allocation7] sm:$0xff]  ;;  %v2905_v36 = vld [vmem:[#allocation2 + $0x190] sm:$0xff]  ;;  %v2909_v38 = vld [vmem:[#allocation2 + $0x198] sm:$0xff] }
  0x28   :  { %v2252_v39 = vld [vmem:[#allocation8 + $0x20] sm:$0xff]  ;;  %v2912_v44 = vperm.slane %v961_v32, 0  ;;  %v2914_v45 = vperm.slane %v961_v32, 1  ;;  %v179_v50 = vpack.c.bf16 %v2909_v38, %v2905_v36  ;;  %v2923_v51 = vld [vmem:[#allocation2 + $0xa0] sm:$0xff]  ;;  %v2933_v57 = vld [vmem:[#allocation2 + $0xa8] sm:$0xff]  ;;  %v2941_v3 = vperm.slane %v961_v32, 5 }
  0x29   :  { %v2936_v62 = vld [vmem:[#allocation2 + $0x1a0] sm:$0xff]  ;;  %v2938_v63 = vld [vmem:[#allocation2 + $0x1a8] sm:$0xff]  ;;  %v2943_v4 = vperm.slane %v961_v32, 2  ;;  %v2951_v8 = vperm.slane %v961_v32, 7  ;;  %v2249_v14 = vld [vmem:[#allocation8 + $0x8] sm:$0xff] }
  0x2a   :  { %219 = vmatpush.bf16.msra.mxu0 %v204_v17  ;;  %2599 = vmatpush.bf16.msra.mxu2 %v204_v17  ;;  %v106_v17 = vld [vmem:[#allocation2 + $0x80] sm:$0xff]  ;;  %v180_v12 = vpack.c.bf16 %v2938_v63, %v2936_v62 }
  0x2b   :  { %2277 = vmatpush.bf16.msra.mxu1 %v2270_v13  ;;  %2603 = vmatpush.bf16.msra.mxu3 %v2270_v13  ;;  %v162_v25 = vpack.c.bf16 %v107_v18, %v106_v17  ;;  %v2248_v13 = vld [vmem:[#allocation8] sm:$0xff] }
  0x2e   :  { %220 = vmatpush.bf16.msra.mxu0 %v203_v20  ;;  %2600 = vmatpush.bf16.msra.mxu2 %v203_v20  ;;  %v139_v20 = vld [vmem:[#allocation2 + $0x188] sm:$0xff] }
  0x2f   :  { %2278 = vmatpush.bf16.msra.mxu1 %v2269_v16  ;;  %2604 = vmatpush.bf16.msra.mxu3 %v2269_v16  ;;  %v178_v26 = vpack.c.bf16 %v139_v20, %v138_v19 }
  0x32   :  { %221 = vmatpush.bf16.msra.mxu0 %v202_v24  ;;  %2601 = vmatpush.bf16.msra.mxu2 %v202_v24  ;;  %v2898_v24 = vld [vmem:[%s5627_s2] ss:$0 sm:$0xff] }
  0x33   :  { %2279 = vmatpush.bf16.msra.mxu1 %v2268_v23  ;;  %2605 = vmatpush.bf16.msra.mxu3 %v2268_v23 }
  0x35   :  { %222 = vmatmul.bf16.vlgmr.msra.gmra.mxu0 %v154_v28  ;;  %302 = vmatmul.bf16.vlgmr.msra.gmra.mxu2 %v170_v29  ;;  %v2254_v29 = vld [vmem:[#allocation8 + $0x30] sm:$0xff] }
  0x36   :  { %v2267_v33 = vpack.c.bf16 %v2255_v30, %v2254_v29  ;;  %v2264_v29 = vpack.c.bf16 %v2249_v14, %v2248_v13 }
  0x38   :  { %2280 = vmatpush.bf16.msra.mxu1 %v2267_v33  ;;  %2606 = vmatpush.bf16.msra.mxu3 %v2267_v33 }
  0x45   :  { %227 = vmatmul.bf16.gmra.mxu0 %v155_v34  ;;  %307 = vmatmul.bf16.gmra.mxu2 %v171_v35  ;;  %v2901_v34 = vld [vmem:[#allocation2 + $0x90] sm:$0xff]  ;;  %v2903_v35 = vld [vmem:[#allocation2 + $0x98] sm:$0xff] }
  0x46   :  { %v163_v49 = vpack.c.bf16 %v2903_v35, %v2901_v34 }
  0x55   :  { %232 = vmatmul.bf16.gmra.mxu0 %v156_v40  ;;  %312 = vmatmul.bf16.gmra.mxu2 %v172_v41  ;;  %v2253_v40 = vld [vmem:[#allocation8 + $0x28] sm:$0xff] }
  0x56   :  { %v2266_v42 = vpack.c.bf16 %v2253_v40, %v2252_v39  ;;  %v2974_v39 = vld [vmem:[#allocation2 + $0xb8] sm:$0xff]  ;;  %v2976_v40 = vld [vmem:[#allocation2 + $0x1b0] sm:$0xff] }
  0x58   :  { %2281 = vmatpush.bf16.msra.mxu1 %v2266_v42  ;;  %2607 = vmatpush.bf16.msra.mxu3 %v2266_v42 }
  0x65   :  { %237 = vmatmul.bf16.gmra.mxu0 %v157_v46  ;;  %317 = vmatmul.bf16.gmra.mxu2 %v173_v47  ;;  %v2916_v46 = vperm.slane %v961_v32, 4 }
  0x75   :  { %242 = vmatmul.bf16.gmra.mxu0 %v158_v52  ;;  %322 = vmatmul.bf16.gmra.mxu2 %v174_v53  ;;  %v2925_v52 = vperm.slane %v961_v32, 3 }
  0x85   :  { %247 = vmatmul.bf16.gmra.mxu0 %v159_v58  ;;  %327 = vmatmul.bf16.gmra.mxu2 %v175_v59  ;;  %v2250_v58 = vld [vmem:[#allocation8 + $0x10] sm:$0xff]  ;;  %v2251_v59 = vld [vmem:[#allocation8 + $0x18] sm:$0xff] }
  0x95   :  { %252 = vmatmul.bf16.gmra.mxu0 %v160_v0  ;;  %332 = vmatmul.bf16.gmra.mxu2 %v176_v1  ;;  %v2265_v0 = vpack.c.bf16 %v2251_v59, %v2250_v58 }
  0x97   :  { %2282 = vmatpush.bf16.msra.mxu1 %v2265_v0  ;;  %2608 = vmatpush.bf16.msra.mxu3 %v2265_v0 }
  0x9b   :  { %2283 = vmatpush.bf16.msra.mxu1 %v2264_v29  ;;  %2609 = vmatpush.bf16.msra.mxu3 %v2264_v29 }
  0xa5   :  { %257 = vmatmul.bf16.gmra.mxu0 %v161_v6  ;;  %337 = vmatmul.bf16.gmra.mxu2 %v177_v7  ;;  %v164_v6 = vpack.c.bf16 %v2933_v57, %v2923_v51  ;;  %v2949_v7 = vperm.slane %v961_v32, 6 }
  0xb2   :  { %v223_v27 = vpop.f32.mrf.mxu0 }
  0xb3   :  { %v224_v28 = vadd.f32 %v2898_v24, %v223_v27 }
  0xb5   :  { %v383_v31 = vmax.f32 %v224_v28, 0.0  ;;  %262 = vmatmul.bf16.gmra.mxu0 %v162_v25  ;;  %342 = vmatmul.bf16.gmra.mxu2 %v178_v26 }
  0xb7   :  { %v2907_v37 = vmin.f32 %v383_v31, 6.0 }
  0xb8   :  { %v303_v41 = vpop.f32.mrf.mxu2 }
  0xb9   :  { %v576_v43 = vrot.slane %v2907_v37, 7  ;;  %v304_v47 = vadd.f32 %v2898_v24, %v303_v41  ;;  %v1025_v54 = vmul.f32 %v2914_v45, %v2907_v37  ;;  %v1332_v55 = vmul.f32 %v2916_v46, %v2907_v37 }
  0xba   :  { %v225_v48 = vpop.f32.mrf.mxu0  ;;  %v769_v9 = vrot.slane %v2907_v37, 1  ;;  %v2972_v37 = vld [vmem:[#allocation2 + $0xb0] sm:$0xff] }
  0xbb   :  { %v736_v53 = vsel %vm575_vm0, 0.0, %v576_v43  ;;  %v226_v56 = vadd.f32 %v2898_v24, %v225_v48  ;;  %v415_v61 = vmax.f32 %v304_v47, 0.0 }
  0xbc   :  { %v964_v60 = vmul.f32 %v2912_v44, %v736_v53  ;;  %v1267_v1 = vmul.f32 %v2925_v52, %v736_v53  ;;  %v2981_v53 = vld [vmem:[#allocation2 + $0x1b8] sm:$0xff] }
  0xbd   :  { %v384_v2 = vmax.f32 %v226_v56, 0.0  ;;  %v2945_v5 = vmin.f32 %v415_v61, 6.0 }
  0xbe   :  { %v2954_v10 = vadd.f32 %v1025_v54, %v964_v60  ;;  %v1396_v19 = vadd.f32 %v1332_v55, %v1267_v1 }
  0xbf   :  { %v448_v11 = vmin.f32 %v384_v2, 6.0  ;;  %v624_v15 = vrot.slane %v2945_v5, 7  ;;  %v817_v16 = vrot.slane %v2945_v5, 1  ;;  %v1055_v17 = vmul.f32 %v2914_v45, %v2945_v5 }
  0xc0   :  { %v305_v18 = vpop.f32.mrf.mxu2  ;;  %v1364_v20 = vmul.f32 %v2916_v46, %v2945_v5 }
  0xc1   :  { %v577_v21 = vrot.slane %v448_v11, 7  ;;  %v770_v22 = vrot.slane %v448_v11, 1  ;;  %v1026_v23 = vmul.f32 %v2914_v45, %v448_v11  ;;  %v752_v25 = vsel %vm575_vm0, 0.0, %v624_v15 }
  0xc2   :  { %v1333_v26 = vmul.f32 %v2916_v46, %v448_v11  ;;  %v306_v27 = vadd.f32 %v2898_v24, %v305_v18  ;;  %v228_v28 = vpop.f32.mrf.mxu0  ;;  %v994_v30 = vmul.f32 %v2912_v44, %v752_v25  ;;  %v1299_v34 = vmul.f32 %v2925_v52, %v752_v25 }
  0xc3   :  { %v229_v31 = vadd.f32 %v2898_v24, %v228_v28  ;;  %v578_v32 = vsel %vm575_vm0, %v576_v43, %v577_v21  ;;  %v771_v33 = vsel %vm768_vm1, %v769_v9, %v770_v22  ;;  %v929_v42 = vsel %vm768_vm1, %v770_v22, 0.0 }
  0xc4   :  { %v416_v41 = vmax.f32 %v306_v27, 0.0  ;;  %v1268_v47 = vmul.f32 %v2925_v52, %v578_v32  ;;  %v1461_v48 = vmul.f32 %v2941_v3, %v771_v33  ;;  %v2983_v43 = vadd.f32 %v1055_v17, %v994_v30 }
  0xc5   :  { %v385_v54 = vmax.f32 %v229_v31, 0.0  ;;  %267 = vmatmul.bf16.gmra.mxu0 %v163_v49  ;;  %347 = vmatmul.bf16.gmra.mxu2 %v179_v50  ;;  %v1462_v55 = vmul.f32 %v2941_v3, %v929_v42  ;;  %v965_v35 = vmul.f32 %v2912_v44, %v578_v32  ;;  %v1146_v36 = vmul.f32 %v2943_v4, %v771_v33 }
  0xc6   :  { %v480_v58 = vmin.f32 %v416_v41, 6.0  ;;  %v1397_v59 = vadd.f32 %v1333_v26, %v1268_v47  ;;  %v2994_v60 = vadd.f32 %v1461_v48, %v1396_v19 }
  0xc7   :  { %v449_v0 = vmin.f32 %v385_v54, 6.0  ;;  %v1147_v54 = vmul.f32 %v2943_v4, %v929_v42 }
  0xc8   :  { %v625_v38 = vrot.slane %v480_v58, 7  ;;  %v818_v49 = vrot.slane %v480_v58, 1  ;;  %v3002_v50 = vmul.f32 %v2914_v45, %v480_v58  ;;  %v1365_v1 = vmul.f32 %v2916_v46, %v480_v58  ;;  %v308_v2 = vpop.f32.mrf.mxu2 }
  0xc9   :  { %v579_v5 = vrot.slane %v449_v0, 7  ;;  %v772_v9 = vrot.slane %v449_v0, 1  ;;  %v3006_v11 = vmul.f32 %v2914_v45, %v449_v0  ;;  %v3009_v13 = vmul.f32 %v2916_v46, %v449_v0 }
  0xca   :  { %v309_v14 = vadd.f32 %v2898_v24, %v308_v2  ;;  %v230_v17 = vpop.f32.mrf.mxu0  ;;  %v3012_v18 = vadd.f32 %v1462_v55, %v1397_v59  ;;  %v1651_v19 = vmul.f32 %v2951_v8, %v449_v0  ;;  %v3016_v21 = vsel %vm575_vm0, %v624_v15, %v625_v38  ;;  %v3058_v38 = vld [vmem:[#allocation7 + $0x8] ss:$0 sm:$0xff] }
  0xcb   :  { %v231_v22 = vadd.f32 %v2898_v24, %v230_v17  ;;  %v3020_v25 = vsel %vm575_vm0, 0.0, %v579_v5  ;;  %v3023_v26 = vsel %vm768_vm1, %v817_v16, %v818_v49  ;;  %v3026_v27 = vsel %vm768_vm1, %v818_v49, 0.0 }
  0xcc   :  { %v417_v28 = vmax.f32 %v309_v14, 0.0  ;;  %v1590_v29 = vmul.f32 %v2949_v7, %v3020_v25  ;;  %v1300_v30 = vmul.f32 %v2925_v52, %v3016_v21  ;;  %v1428_v15 = vadd.f32 %v1364_v20, %v1299_v34 }
  0xcd   :  { %v386_v31 = vmax.f32 %v231_v22, 0.0  ;;  %v1493_v32 = vmul.f32 %v2941_v3, %v3023_v26  ;;  %v1494_v33 = vmul.f32 %v2941_v3, %v3026_v27  ;;  %v1086_v16 = vadd.f32 %v1026_v23, %v965_v35 }
  0xce   :  { %v3036_v41 = vmin.f32 %v417_v28, 6.0  ;;  %v1711_v47 = vadd.f32 %v1651_v19, %v1590_v29  ;;  %v1429_v48 = vadd.f32 %v1365_v1, %v1300_v30  ;;  %v3044_v20 = vadd.f32 %v1146_v36, %v2954_v10 }
  0xcf   :  { %v3039_v55 = vmin.f32 %v386_v31, 6.0  ;;  %v3041_v58 = vadd.f32 %v1493_v32, %v1428_v15  ;;  %v1269_v59 = vmul.f32 %v2925_v52, %v3020_v25  ;;  %v3072_v22 = vadd.f32 %v1147_v54, %v1086_v16 }
  0xd0   :  { %v627_v0 = vrot.slane %v3036_v41, 7  ;;  %v820_v23 = vrot.slane %v3036_v41, 1  ;;  %v3052_v34 = vmul.f32 %v2914_v45, %v3036_v41  ;;  %v3056_v42 = vmul.f32 %v2916_v46, %v3036_v41  ;;  %v310_v35 = vpop.f32.mrf.mxu2 }
  0xd1   :  { %v580_v10 = vrot.slane %v3039_v55, 7  ;;  %v311_v36 = vadd.f32 %v2898_v24, %v310_v35  ;;  %v773_v49 = vrot.slane %v3039_v55, 1  ;;  %v1652_v1 = vmul.f32 %v2951_v8, %v3039_v55 }
  0xd2   :  { %5660 = vst [vmem:[#allocation15_spill] sm:$0xff] %v3052_v34  ;;  %v233_v2 = vpop.f32.mrf.mxu0  ;;  %v3066_v14 = vsel %vm575_vm0, 0.0, %v627_v0  ;;  %v3068_v17 = vadd.f32 %v1494_v33, %v1429_v48  ;;  %v1681_v19 = vmul.f32 %v2951_v8, %v3036_v41  ;;  %v1335_v51 = vmul.f32 %v2916_v46, %v3039_v55 }
  0xd3   :  { %v418_v28 = vmax.f32 %v311_v36, 0.0  ;;  %v234_v29 = vadd.f32 %v2898_v24, %v233_v2  ;;  %v3076_v30 = vsel %vm575_vm0, %v579_v5, %v580_v10  ;;  %v3079_v15 = vsel %vm768_vm1, %v772_v9, %v773_v49  ;;  %v3105_v10 = vld [vmem:[%s5629_s4] ss:$0 sm:$0xff] }
  0xd4   :  { %v3082_v31 = vsel %vm768_vm1, %v773_v49, 0.0  ;;  %v1591_v32 = vmul.f32 %v2949_v7, %v3076_v30  ;;  %v1772_v33 = vmul.f32 %v3058_v38, %v3079_v15  ;;  %v1620_v16 = vmul.f32 %v2949_v7, %v3066_v14 }
  0xd5   :  { %5661 = vst [vmem:[#allocation16_spill] sm:$0xff] %v3082_v31  ;;  %v3090_v41 = vmin.f32 %v418_v28, 6.0  ;;  %v387_v48 = vmax.f32 %v234_v29, 0.0  ;;  %272 = vmatmul.bf16.gmra.mxu0 %v164_v6  ;;  %352 = vmatmul.bf16.gmra.mxu2 %v180_v12  ;;  %v1773_v5 = vmul.f32 %v3058_v38, %v3082_v31  ;;  %v1270_v9 = vmul.f32 %v2925_v52, %v3076_v30 }
  0xd6   :  { %v1712_v54 = vadd.f32 %v1652_v1, %v1591_v32  ;;  %v1832_v35 = vadd.f32 %v1772_v33, %v1711_v47  ;;  %v1741_v36 = vadd.f32 %v1681_v19, %v1620_v16  ;;  %v1398_v1 = vadd.f32 %v3009_v13, %v1269_v59 }
  0xd7   :  { %v628_v57 = vrot.slane %v3090_v41, 7  ;;  %v3110_v62 = vmin.f32 %v387_v48, 6.0  ;;  %v821_v63 = vrot.slane %v3090_v41, 1  ;;  %v1682_v6 = vmul.f32 %v2951_v8, %v3090_v41 }
  0xd8   :  { %v313_v12 = vpop.f32.mrf.mxu2  ;;  %v1833_v47 = vadd.f32 %v1773_v5, %v1712_v54  ;;  %v1956_v49 = vadd.f32 %v1832_v35, %v2994_v60  ;;  %v1399_v2 = vadd.f32 %v1335_v51, %v1270_v9 }
  0xd9   :  { %v582_v19 = vrot.slane %v3110_v62, 7  ;;  %v775_v28 = vrot.slane %v3110_v62, 1  ;;  %v3121_v29 = vmul.f32 %v2914_v45, %v3110_v62  ;;  %v3125_v32 = vmul.f32 %v2916_v46, %v3110_v62 }
  0xda   :  { %v314_v33 = vadd.f32 %v2898_v24, %v313_v12  ;;  %v235_v16 = vpop.f32.mrf.mxu0  ;;  %v1957_v60 = vadd.f32 %v1833_v47, %v3012_v18  ;;  %v2024_v13 = vadd.f32 %v3105_v10, %v1956_v49  ;;  %v3131_v59 = vsel %vm575_vm0, %v627_v0, %v628_v57 }
  0xdb   :  { %5662 = vst [vmem:[#allocation17_spill] sm:$0xff] %v3121_v29  ;;  %v236_v48 = vadd.f32 %v2898_v24, %v235_v16  ;;  %v3135_v5 = vsel %vm768_vm1, %v820_v23, %v821_v63  ;;  %v3138_v9 = vsel %vm768_vm1, %v821_v63, 0.0  ;;  %v1621_v54 = vmul.f32 %v2949_v7, %v3131_v59 }
  0xdc   :  { %5663 = vst [vmem:[#allocation18_spill] sm:$0xff] %v3125_v32  ;;  %v419_v35 = vmax.f32 %v314_v33, 0.0  ;;  %v2025_v51 = vadd.f32 %v3105_v10, %v1957_v60  ;;  %v2088_v18 = vmax.f32 %v2024_v13, 0.0  ;;  %v1802_v12 = vmul.f32 %v3058_v38, %v3135_v5 }
  0xdd   :  { %v388_v0 = vmax.f32 %v236_v48, 0.0  ;;  %v1742_v57 = vadd.f32 %v1682_v6, %v1621_v54  ;;  %v1803_v47 = vmul.f32 %v3058_v38, %v3138_v9  ;;  %v3148_v23 = vsel %vm575_vm0, 0.0, %v582_v19 }
  0xde   :  { %v3150_v63 = vmin.f32 %v419_v35, 6.0  ;;  %v2089_v49 = vmax.f32 %v2025_v51, 0.0  ;;  %v2152_v16 = vmin.f32 %v2088_v18, 6.0  ;;  %v1862_v61 = vadd.f32 %v1802_v12, %v1741_v36 }
  0xdf   :  { %v3152_v33 = vmin.f32 %v388_v0, 6.0  ;;  %v1863_v60 = vadd.f32 %v1803_v47, %v1742_v57  ;;  %v1463_v13 = vmul.f32 %v2941_v3, %v3079_v15  ;;  %v1464_v6 = vmul.f32 %v2941_v3, %v3082_v31 }
  0xe0   :  { %v3162_v35 = vmul.f32 %v2914_v45, %v3150_v63  ;;  %v3166_v36 = vmul.f32 %v2916_v46, %v3150_v63  ;;  %v315_v51 = vpop.f32.mrf.mxu2  ;;  %v2153_v0 = vmin.f32 %v2089_v49, 6.0  ;;  %v1988_v57 = vadd.f32 %v1862_v61, %v3041_v58 }
  0xe1   :  { %v583_v18 = vrot.slane %v3152_v33, 7  ;;  %v316_v12 = vadd.f32 %v2898_v24, %v315_v51  ;;  %v1989_v48 = vadd.f32 %v1863_v60, %v3068_v17  ;;  %v776_v54 = vrot.slane %v3152_v33, 1 }
  0xe2   :  { %5664 = vst [vmem:[#allocation19_spill] sm:$0xff] %v3162_v35  ;;  %v238_v47 = vpop.f32.mrf.mxu0  ;;  %v1527_v56 = vadd.f32 %v1463_v13, %v1398_v1  ;;  %v1528_v29 = vadd.f32 %v1464_v6, %v1399_v2  ;;  %v2216_v32 = vpack.c.bf16 %v2153_v0, %v2152_v16  ;;  %v5666_v2 = vpack.c.bf16 %v2974_v39, %v2972_v37 }
  0xe3   :  { %5665 = vst [vmem:[#allocation20_spill] sm:$0xff] %v3166_v36  ;;  %v420_v35 = vmax.f32 %v316_v12, 0.0  ;;  %v239_v34 = vadd.f32 %v2898_v24, %v238_v47  ;;  %v2056_v36 = vadd.f32 %v3105_v10, %v1988_v57  ;;  %v2057_v31 = vadd.f32 %v3105_v10, %v1989_v48  ;;  %v146_v57 = vld [vmem:[#allocation2 + $0x1c0] sm:$0xff]  ;;  %v147_v47 = vld [vmem:[#allocation2 + $0x1c8] sm:$0xff] }
  0xe4   :  { %v3177_v51 = vsel %vm575_vm0, %v582_v19, %v583_v18  ;;  %v3180_v61 = vsel %vm768_vm1, %v775_v28, %v776_v54  ;;  %v3183_v58 = vsel %vm768_vm1, %v776_v54, 0.0  ;;  %2284 = vmatmul.bf16.vlgmr.msra.gmra.mxu1 %v2216_v32  ;;  %v1592_v16 = vmul.f32 %v2949_v7, %v3148_v23 }
  0xe5   :  { %v3185_v17 = vmin.f32 %v420_v35, 6.0  ;;  %v389_v1 = vmax.f32 %v239_v34, 0.0  ;;  %277 = vmatmul.bf16.gmra.mxu0 %v5666_v2  ;;  %v2120_v49 = vmax.f32 %v2056_v36, 0.0  ;;  %v5667_v19 = vpack.c.bf16 %v2981_v53, %v2976_v40  ;;  %v114_v35 = vld [vmem:[#allocation2 + $0xc0] sm:$0xff] }
  0xe6   :  { %v2121_v28 = vmax.f32 %v2057_v31, 0.0  ;;  %v1593_v60 = vmul.f32 %v2949_v7, %v3177_v51  ;;  %v1653_v34 = vmul.f32 %v2951_v8, %v3110_v62  ;;  %v1654_v32 = vmul.f32 %v2951_v8, %v3152_v33  ;;  %v115_v62 = vld [vmem:[#allocation2 + $0xc8] sm:$0xff] }
  0xe7   :  { %357 = vmatmul.bf16.gmra.mxu2 %v5667_v19  ;;  %v631_v37 = vrot.slane %v3185_v17, 7  ;;  %v3202_v39 = vmin.f32 %v389_v1, 6.0  ;;  %v2184_v13 = vmin.f32 %v2120_v49, 6.0  ;;  %v1774_v6 = vmul.f32 %v3058_v38, %v3180_v61 }
  0xe8   :  { %v318_v40 = vpop.f32.mrf.mxu2  ;;  %v2185_v53 = vmin.f32 %v2121_v28, 6.0  ;;  %v1713_v31 = vadd.f32 %v1653_v34, %v1592_v16  ;;  %v1714_v48 = vadd.f32 %v1654_v32, %v1593_v60  ;;  %v1775_v54 = vmul.f32 %v3058_v38, %v3183_v58 }
  0xe9   :  { %v3212_v12 = vmul.f32 %v2914_v45, %v3202_v39  ;;  %v3216_v0 = vmul.f32 %v2916_v46, %v3202_v39  ;;  %v319_v1 = vadd.f32 %v2898_v24, %v318_v40  ;;  %v1894_v60 = vadd.f32 %v1527_v56, %v3044_v20 }
  0xea   :  { %v240_v2 = vpop.f32.mrf.mxu0  ;;  %v2232_v49 = vpack.c.bf16 %v2185_v53, %v2184_v13  ;;  %v1834_v16 = vadd.f32 %v1774_v6, %v1713_v31  ;;  %v1835_v19 = vadd.f32 %v1775_v54, %v1714_v48  ;;  %v1895_v34 = vadd.f32 %v1528_v29, %v3072_v22 }
  0xeb   :  { %5668 = vst [vmem:[#allocation21_spill] sm:$0xff] %v3212_v12  ;;  %v241_v28 = vadd.f32 %v2898_v24, %v240_v2  ;;  %v166_v32 = vpack.c.bf16 %v115_v62, %v114_v35  ;;  %v421_v18 = vmax.f32 %v319_v1, 0.0  ;;  %v182_v36 = vpack.c.bf16 %v147_v47, %v146_v57 }
  0xec   :  { %5669 = vst [vmem:[#allocation22_spill] sm:$0xff] %v3216_v0  ;;  %2364 = vmatmul.bf16.vlgmr.msra.gmra.mxu3 %v2232_v49  ;;  %v5670_v12 = vrot.slane %v3150_v63, 7  ;;  %v1958_v53 = vadd.f32 %v1894_v60, %v1834_v16  ;;  %v1959_v31 = vadd.f32 %v1895_v34, %v1835_v19  ;;  %v824_v56 = vrot.slane %v3185_v17, 1 }
  0xed   :  { %v390_v6 = vmax.f32 %v241_v28, 0.0  ;;  %v3233_v20 = vmin.f32 %v421_v18, 6.0  ;;  %v995_v22 = vmul.f32 %v2912_v44, %v3016_v21  ;;  %v1176_v29 = vmul.f32 %v2943_v4, %v3023_v26 }
  0xee   :  { %v3225_v0 = vsel %vm575_vm0, %v5670_v12, %v631_v37  ;;  %v5671_v40 = vmov %v5670_v12  ;;  %v1177_v37 = vmul.f32 %v2943_v4, %v3026_v27  ;;  %v2026_v54 = vadd.f32 %v3105_v10, %v1958_v53 }
  0xef   :  { %v3230_v13 = vsel %vm575_vm0, 0.0, %v5671_v40  ;;  %v3241_v48 = vmin.f32 %v390_v6, 6.0  ;;  %v2027_v35 = vadd.f32 %v3105_v10, %v1959_v31  ;;  %v5672_v62 = vrot.slane %v3150_v63, 1 }
  0xf0   :  { %v3254_v26 = vmul.f32 %v2914_v45, %v3233_v20  ;;  %v3258_v27 = vmul.f32 %v2916_v46, %v3233_v20  ;;  %v320_v57 = vpop.f32.mrf.mxu2  ;;  %v2090_v2 = vmax.f32 %v2026_v54, 0.0  ;;  %v3263_v19 = vsel %vm768_vm1, %v824_v56, 0.0 }
  0xf1   :  { %v3248_v18 = vsel %vm768_vm1, %v5672_v62, %v824_v56  ;;  %v586_v47 = vrot.slane %v3241_v48, 7  ;;  %v321_v1 = vadd.f32 %v2898_v24, %v320_v57  ;;  %v2091_v49 = vmax.f32 %v2027_v35, 0.0 }
  0xf2   :  { %5673 = vst [vmem:[#allocation23_spill] sm:$0xff] %v3254_v26  ;;  %v243_v16 = vpop.f32.mrf.mxu0  ;;  %v1116_v28 = vadd.f32 %v3002_v50, %v995_v22  ;;  %v1236_v60 = vadd.f32 %v1176_v29, %v2983_v43  ;;  %v1301_v34 = vmul.f32 %v2925_v52, %v3066_v14  ;;  %v2154_v53 = vmin.f32 %v2090_v2, 6.0 }
  0xf3   :  { %5674 = vst [vmem:[#allocation24_spill] sm:$0xff] %v3258_v27  ;;  %v422_v40 = vmax.f32 %v321_v1, 0.0  ;;  %v244_v6 = vadd.f32 %v2898_v24, %v243_v16  ;;  %v2155_v31 = vmin.f32 %v2091_v49, 6.0  ;;  %v1302_v54 = vmul.f32 %v2925_v52, %v3131_v59 }
  0xf4   :  { %v1237_v62 = vadd.f32 %v1177_v37, %v1116_v28  ;;  %v1367_v56 = vmul.f32 %v2916_v46, %v3090_v41  ;;  %v1430_v35 = vadd.f32 %v3056_v42, %v1301_v34  ;;  %v1495_v29 = vmul.f32 %v2941_v3, %v3135_v5 }
  0xf5   :  { %v3275_v50 = vmin.f32 %v422_v40, 6.0  ;;  %v391_v43 = vmax.f32 %v244_v6, 0.0  ;;  %v2217_v22 = vpack.c.bf16 %v2155_v31, %v2154_v53  ;;  %282 = vmatmul.bf16.gmra.mxu0 %v166_v32  ;;  %v1496_v37 = vmul.f32 %v2941_v3, %v3138_v9 }
  0xf6   :  { %v1431_v57 = vadd.f32 %v1367_v56, %v1302_v54  ;;  %v1622_v1 = vmul.f32 %v2949_v7, %v3230_v13  ;;  %v1623_v2 = vmul.f32 %v2949_v7, %v3225_v0  ;;  %v1559_v32 = vadd.f32 %v1495_v29, %v1430_v35 }
  0xf7   :  { %362 = vmatmul.bf16.gmra.mxu2 %v182_v36  ;;  %v3286_v49 = vmin.f32 %v391_v43, 6.0  ;;  %2289 = vmatmul.bf16.gmra.mxu1 %v2217_v22  ;;  %v1683_v16 = vmul.f32 %v2951_v8, %v3150_v63  ;;  %v1684_v34 = vmul.f32 %v2951_v8, %v3185_v17  ;;  %v1804_v40 = vmul.f32 %v3058_v38, %v3248_v18 }
  0xf8   :  { %v323_v36 = vpop.f32.mrf.mxu2  ;;  %v1560_v28 = vadd.f32 %v1496_v37, %v1431_v57  ;;  %v1805_v6 = vmul.f32 %v3058_v38, %v3263_v19  ;;  %v1926_v29 = vadd.f32 %v1559_v32, %v1236_v60  ;;  %v5677_v53 = vrot.slane %v3202_v39, 7 }
  0xf9   :  { %v3300_v54 = vmul.f32 %v2914_v45, %v3286_v49  ;;  %v3304_v63 = vmul.f32 %v2916_v46, %v3286_v49  ;;  %v324_v56 = vadd.f32 %v2898_v24, %v323_v36  ;;  %v1743_v43 = vadd.f32 %v1683_v16, %v1622_v1 }
  0xfa   :  { %v245_v35 = vpop.f32.mrf.mxu0  ;;  %v1744_v22 = vadd.f32 %v1684_v34, %v1623_v2  ;;  %v1927_v37 = vadd.f32 %v1560_v28, %v1237_v62  ;;  %v3311_v31 = vsel %vm575_vm0, %v5677_v53, %v586_v47  ;;  %v5678_v21 = vmov %v5677_v53 }
  0xfb   :  { %5675 = vst [vmem:[#allocation25_spill] sm:$0xff] %v3300_v54  ;;  %v246_v57 = vadd.f32 %v2898_v24, %v245_v35  ;;  %v3316_v12 = vsel %vm575_vm0, 0.0, %v5678_v21  ;;  %v423_v42 = vmax.f32 %v324_v56, 0.0  ;;  %v1864_v54 = vadd.f32 %v1804_v40, %v1743_v43  ;;  %v5685_v35 = vld [vmem:[#allocation18_spill] sm:$0xff] }
  0xfc   :  { %5676 = vst [vmem:[#allocation26_spill] sm:$0xff] %v3304_v63  ;;  %v1865_v36 = vadd.f32 %v1805_v6, %v1744_v22  ;;  %v779_v1 = vrot.slane %v3241_v48, 1  ;;  %v966_v60 = vmul.f32 %v2912_v44, %v3020_v25  ;;  %v967_v62 = vmul.f32 %v2912_v44, %v3076_v30 }
  0xfd   :  { %v392_v2 = vmax.f32 %v246_v57, 0.0  ;;  %v1028_v47 = vmul.f32 %v2914_v45, %v3039_v55  ;;  %v3325_v32 = vmin.f32 %v423_v42, 6.0  ;;  %v1990_v16 = vadd.f32 %v1926_v29, %v1864_v54 }
  0xfe   :  { %v1991_v21 = vadd.f32 %v1927_v37, %v1865_v36  ;;  %v5679_v28 = vrot.slane %v3202_v39, 1  ;;  %v3335_v6 = vsel %vm768_vm1, %v779_v1, 0.0  ;;  %v1087_v25 = vadd.f32 %v3006_v11, %v966_v60  ;;  %v5684_v60 = vld [vmem:[#allocation16_spill] sm:$0xff] }
  0xff   :  { %v3332_v40 = vmin.f32 %v392_v2, 6.0  ;;  %v1088_v30 = vadd.f32 %v1028_v47, %v967_v62  ;;  %v3342_v42 = vmul.f32 %v2914_v45, %v3325_v32  ;;  %v3346_v54 = vmul.f32 %v2916_v46, %v3325_v32 }
 0x100   :  { %v3330_v34 = vsel %vm768_vm1, %v5679_v28, %v779_v1  ;;  %v325_v56 = vpop.f32.mrf.mxu2  ;;  %v2058_v29 = vadd.f32 %v3105_v10, %v1990_v16  ;;  %v2059_v57 = vadd.f32 %v3105_v10, %v1991_v21  ;;  %v1148_v1 = vmul.f32 %v2943_v4, %v3079_v15 }
 0x101   :  { %5680 = vst [vmem:[#allocation27_spill] sm:$0xff] %v3342_v42  ;;  %v3352_v11 = vmul.f32 %v2914_v45, %v3332_v40  ;;  %v3356_v22 = vmul.f32 %v2916_v46, %v3332_v40  ;;  %v326_v37 = vadd.f32 %v2898_v24, %v325_v56  ;;  %v1149_v62 = vmul.f32 %v2943_v4, %v5684_v60 }
 0x102   :  { %5681 = vst [vmem:[#allocation28_spill] sm:$0xff] %v3346_v54  ;;  %v248_v36 = vpop.f32.mrf.mxu0  ;;  %v1271_v47 = vmul.f32 %v2925_v52, %v3148_v23  ;;  %v1272_v28 = vmul.f32 %v2925_v52, %v3177_v51  ;;  %v2122_v16 = vmax.f32 %v2058_v29, 0.0  ;;  %v2123_v55 = vmax.f32 %v2059_v57, 0.0 }
 0x103   :  { %5682 = vst [vmem:[#allocation29_spill] sm:$0xff] %v3352_v11  ;;  %v249_v2 = vadd.f32 %v2898_v24, %v248_v36  ;;  %v424_v21 = vmax.f32 %v326_v37, 0.0  ;;  %v1208_v53 = vadd.f32 %v1148_v1, %v1087_v25  ;;  %v1209_v43 = vadd.f32 %v1149_v62, %v1088_v30  ;;  %v116_v1 = vld [vmem:[#allocation2 + $0xd0] sm:$0xff] }
 0x104   :  { %5683 = vst [vmem:[#allocation30_spill] sm:$0xff] %v3356_v22  ;;  %v1337_v15 = vmul.f32 %v2916_v46, %v3152_v33  ;;  %v1400_v36 = vadd.f32 %v5685_v35, %v1271_v47  ;;  %v2186_v42 = vmin.f32 %v2122_v16, 6.0  ;;  %v2187_v11 = vmin.f32 %v2123_v55, 6.0  ;;  %v149_v16 = vld [vmem:[#allocation2 + $0x1d8] sm:$0xff] }
 0x105   :  { %v393_v56 = vmax.f32 %v249_v2, 0.0  ;;  %v3373_v60 = vmin.f32 %v424_v21, 6.0  ;;  %v1465_v54 = vmul.f32 %v2941_v3, %v3180_v61  ;;  %v1466_v25 = vmul.f32 %v2941_v3, %v3183_v58 }
 0x106   :  { %v1401_v29 = vadd.f32 %v1337_v15, %v1272_v28  ;;  %v1594_v30 = vmul.f32 %v2949_v7, %v3316_v12  ;;  %v2233_v57 = vpack.c.bf16 %v2187_v11, %v2186_v42  ;;  %v117_v11 = vld [vmem:[#allocation2 + $0xd8] sm:$0xff]  ;;  %v148_v28 = vld [vmem:[#allocation2 + $0x1d0] sm:$0xff]  ;;  %v1595_v35 = vmul.f32 %v2949_v7, %v3311_v31 }
 0x107   :  { %v3377_v26 = vmin.f32 %v393_v56, 6.0  ;;  %v3387_v55 = vmul.f32 %v2914_v45, %v3373_v60  ;;  %v3391_v2 = vmul.f32 %v2916_v46, %v3373_v60  ;;  %v1529_v56 = vadd.f32 %v1465_v54, %v1400_v36 }
 0x108   :  { %2369 = vmatmul.bf16.gmra.mxu3 %v2233_v57  ;;  %v1530_v15 = vadd.f32 %v1466_v25, %v1401_v29  ;;  %v328_v62 = vpop.f32.mrf.mxu2  ;;  %v1655_v47 = vmul.f32 %v2951_v8, %v3202_v39  ;;  %v1776_v57 = vmul.f32 %v3058_v38, %v3330_v34  ;;  %v167_v36 = vpack.c.bf16 %v117_v11, %v116_v1 }
 0x109   :  { %5686 = vst [vmem:[#allocation16_spill] sm:$0xff] %v3377_v26  ;;  %v3397_v42 = vmul.f32 %v2914_v45, %v3377_v26  ;;  %v3401_v21 = vmul.f32 %v2916_v46, %v3377_v26  ;;  %v183_v29 = vpack.c.bf16 %v149_v16, %v148_v28  ;;  %v329_v22 = vadd.f32 %v2898_v24, %v328_v62 }
 0x10a   :  { %5687 = vst [vmem:[#allocation18_spill] sm:$0xff] %v3387_v55  ;;  %v250_v37 = vpop.f32.mrf.mxu0  ;;  %v1777_v55 = vmul.f32 %v3058_v38, %v3335_v6  ;;  %v1897_v54 = vadd.f32 %v1530_v15, %v1209_v43  ;;  %v1715_v25 = vadd.f32 %v1655_v47, %v1594_v30  ;;  %287 = vmatmul.bf16.gmra.mxu0 %v167_v36  ;;  %v5691_v39 = vrot.slane %v3275_v50, 7 }
 0x10b   :  { %5688 = vst [vmem:[#allocation31_spill] sm:$0xff] %v3391_v2  ;;  %v251_v63 = vadd.f32 %v2898_v24, %v250_v37  ;;  %367 = vmatmul.bf16.gmra.mxu2 %v183_v29  ;;  %v5692_v26 = vrot.slane %v3233_v20, 7  ;;  %v827_v30 = vrot.slane %v3275_v50, 1  ;;  %v425_v62 = vmax.f32 %v329_v22, 0.0 }
 0x10c   :  { %5689 = vst [vmem:[#allocation32_spill] sm:$0xff] %v3397_v42  ;;  %v1656_v42 = vmul.f32 %v2951_v8, %v3241_v48  ;;  %v1836_v37 = vadd.f32 %v1776_v57, %v1715_v25  ;;  %v997_v28 = vmul.f32 %v2912_v44, %v3131_v59  ;;  %v1058_v16 = vmul.f32 %v2914_v45, %v3090_v41 }
 0x10d   :  { %5690 = vst [vmem:[#allocation33_spill] sm:$0xff] %v3401_v21  ;;  %v1896_v21 = vadd.f32 %v1529_v56, %v1208_v53  ;;  %v3420_v27 = vsel %vm575_vm0, %v5692_v26, %v5691_v39  ;;  %v5693_v53 = vmov %v5692_v26  ;;  %v394_v47 = vmax.f32 %v251_v63, 0.0  ;;  %v5695_v63 = vld [vmem:[#allocation15_spill] sm:$0xff] }
 0x10e   :  { %v1716_v2 = vadd.f32 %v1656_v42, %v1595_v35  ;;  %v3425_v43 = vsel %vm575_vm0, 0.0, %v5693_v53  ;;  %v996_v35 = vmul.f32 %v2912_v44, %v3066_v14  ;;  %v5694_v42 = vrot.slane %v3233_v20, 1 }
 0x10f   :  { %v3436_v26 = vsel %vm768_vm1, %v827_v30, 0.0  ;;  %v1960_v56 = vadd.f32 %v1896_v21, %v1836_v37  ;;  %v3442_v15 = vmin.f32 %v425_v62, 6.0  ;;  %v3444_v22 = vmin.f32 %v394_v47, 6.0 }
 0x110   :  { %v1837_v1 = vadd.f32 %v1777_v55, %v1716_v2  ;;  %v3433_v11 = vsel %vm768_vm1, %v5694_v42, %v827_v30  ;;  %v1117_v55 = vadd.f32 %v5695_v63, %v996_v35  ;;  %v1118_v2 = vadd.f32 %v1058_v16, %v997_v28  ;;  %v5699_v63 = vld [vmem:[#allocation20_spill] sm:$0xff] }
 0x111   :  { %v1178_v57 = vmul.f32 %v2943_v4, %v3135_v5  ;;  %v1179_v36 = vmul.f32 %v2943_v4, %v3138_v9  ;;  %v2028_v59 = vadd.f32 %v3105_v10, %v1960_v56  ;;  %v3461_v25 = vmul.f32 %v2916_v46, %v3442_v15 }
 0x112   :  { %v1961_v14 = vadd.f32 %v1897_v54, %v1837_v1  ;;  %v3457_v54 = vmul.f32 %v2914_v45, %v3442_v15  ;;  %v3467_v30 = vmul.f32 %v2914_v45, %v3444_v22  ;;  %v3471_v35 = vmul.f32 %v2916_v46, %v3444_v22  ;;  %v253_v9 = vpop.f32.mrf.mxu0 }
 0x113   :  { %5697 = vst [vmem:[#allocation34_spill] sm:$0xff] %v3461_v25  ;;  %v2092_v39 = vmax.f32 %v2028_v59, 0.0  ;;  %v1238_v37 = vadd.f32 %v1178_v57, %v1117_v55  ;;  %v1239_v1 = vadd.f32 %v1179_v36, %v1118_v2  ;;  %v1303_v62 = vmul.f32 %v2925_v52, %v3230_v13 }
 0x114   :  { %v2029_v29 = vadd.f32 %v3105_v10, %v1961_v14  ;;  %5696 = vst [vmem:[#allocation15_spill] sm:$0xff] %v3457_v54  ;;  %v1304_v47 = vmul.f32 %v2925_v52, %v3225_v0  ;;  %v1369_v16 = vmul.f32 %v2916_v46, %v3185_v17  ;;  %v1497_v56 = vmul.f32 %v2941_v3, %v3248_v18  ;;  %v330_v14 = vpop.f32.mrf.mxu2 }
 0x115   :  { %5698 = vst [vmem:[#allocation35_spill] sm:$0xff] %v3467_v30  ;;  %v2156_v42 = vmin.f32 %v2092_v39, 6.0  ;;  %v1432_v59 = vadd.f32 %v5699_v63, %v1303_v62  ;;  %v1498_v55 = vmul.f32 %v2941_v3, %v3263_v19  ;;  %v1624_v2 = vmul.f32 %v2949_v7, %v3425_v43 }
 0x116   :  { %v2093_v53 = vmax.f32 %v2029_v29, 0.0  ;;  %v1625_v57 = vmul.f32 %v2949_v7, %v3420_v27  ;;  %v1433_v29 = vadd.f32 %v1369_v16, %v1304_v47  ;;  %v1685_v39 = vmul.f32 %v2951_v8, %v3233_v20 }
 0x117   :  { %v1561_v21 = vadd.f32 %v1497_v56, %v1432_v59  ;;  %v1806_v62 = vmul.f32 %v3058_v38, %v3433_v11  ;;  %v1807_v63 = vmul.f32 %v3058_v38, %v3436_v26  ;;  %v331_v41 = vadd.f32 %v2898_v24, %v330_v14 }
 0x118   :  { %v2157_v28 = vmin.f32 %v2093_v53, 6.0  ;;  %v1686_v53 = vmul.f32 %v2951_v8, %v3275_v50  ;;  %v1562_v5 = vadd.f32 %v1498_v55, %v1433_v29  ;;  %v5700_v54 = vrot.slane %v3332_v40, 7 }
 0x119   :  { %v1928_v20 = vadd.f32 %v1561_v21, %v1238_v37  ;;  %v426_v16 = vmax.f32 %v331_v41, 0.0  ;;  %v5701_v56 = vrot.slane %v3286_v49, 7  ;;  %v5704_v41 = vrot.slane %v3286_v49, 1 }
 0x11a   :  { %v2218_v36 = vpack.c.bf16 %v2157_v28, %v2156_v42  ;;  %v1745_v42 = vadd.f32 %v1685_v39, %v1624_v2  ;;  %v1746_v47 = vadd.f32 %v1686_v53, %v1625_v57  ;;  %v254_v28 = vadd.f32 %v2898_v24, %v253_v9  ;;  %v150_v53 = vld [vmem:[#allocation2 + $0x1e0] sm:$0xff] }
 0x11b   :  { %v3503_v59 = vsel %vm575_vm0, %v5701_v56, %v5700_v54  ;;  %v5702_v30 = vmov %v5701_v56  ;;  %v1929_v2 = vadd.f32 %v1562_v5, %v1239_v1  ;;  %v3510_v29 = vmin.f32 %v426_v16, 6.0 }
 0x11c   :  { %2294 = vmatmul.bf16.gmra.mxu1 %v2218_v36  ;;  %v3508_v14 = vsel %vm575_vm0, 0.0, %v5702_v30  ;;  %v1866_v36 = vadd.f32 %v1806_v62, %v1745_v42  ;;  %v1867_v55 = vadd.f32 %v1807_v63, %v1746_v47  ;;  %v395_v57 = vmax.f32 %v254_v28, 0.0  ;;  %v5711_v28 = vld [vmem:[#allocation22_spill] sm:$0xff] }
 0x11d   :  { %v5703_v24 = vrot.slane %v3332_v40, 1  ;;  %v968_v30 = vmul.f32 %v2912_v44, %v3148_v23  ;;  %v969_v39 = vmul.f32 %v2912_v44, %v3177_v51  ;;  %v3534_v63 = vmul.f32 %v2914_v45, %v3510_v29  ;;  %v119_v62 = vld [vmem:[#allocation2 + $0xe8] sm:$0xff] }
 0x11e   :  { %v1992_v37 = vadd.f32 %v1928_v20, %v1866_v36  ;;  %v1993_v5 = vadd.f32 %v1929_v2, %v1867_v55  ;;  %v3526_v1 = vmin.f32 %v395_v57, 6.0  ;;  %v3538_v42 = vmul.f32 %v2916_v46, %v3510_v29  ;;  %v5710_v36 = vld [vmem:[#allocation17_spill] sm:$0xff] }
 0x11f   :  { %v3517_v21 = vsel %vm768_vm1, %v5704_v41, %v5703_v24  ;;  %v5705_v54 = vmov %v5703_v24  ;;  %5706 = vst [vmem:[#allocation20_spill] sm:$0xff] %v3534_v63  ;;  %v1030_v56 = vmul.f32 %v2914_v45, %v3152_v33  ;;  %v1089_v55 = vadd.f32 %v5710_v36, %v968_v30 }
 0x120   :  { %v3522_v9 = vsel %vm768_vm1, %v5705_v54, 0.0  ;;  %5707 = vst [vmem:[#allocation36_spill] sm:$0xff] %v3538_v42  ;;  %v2060_v23 = vadd.f32 %v3105_v10, %v1992_v37  ;;  %v2061_v47 = vadd.f32 %v3105_v10, %v1993_v5  ;;  %v3546_v20 = vmul.f32 %v2914_v45, %v3526_v1 }
 0x121   :  { %v3550_v16 = vmul.f32 %v2916_v46, %v3526_v1  ;;  %v1150_v24 = vmul.f32 %v2943_v4, %v3180_v61  ;;  %v1151_v41 = vmul.f32 %v2943_v4, %v3183_v58  ;;  %v1090_v54 = vadd.f32 %v1030_v56, %v969_v39  ;;  %v118_v61 = vld [vmem:[#allocation2 + $0xe0] sm:$0xff] }
 0x122   :  { %5708 = vst [vmem:[#allocation37_spill] sm:$0xff] %v3546_v20  ;;  %v2124_v2 = vmax.f32 %v2060_v23, 0.0  ;;  %v2125_v57 = vmax.f32 %v2061_v47, 0.0  ;;  %v1273_v37 = vmul.f32 %v2925_v52, %v3316_v12  ;;  %v1274_v5 = vmul.f32 %v2925_v52, %v3311_v31  ;;  %v151_v20 = vld [vmem:[#allocation2 + $0x1e8] sm:$0xff] }
 0x123   :  { %5709 = vst [vmem:[#allocation38_spill] sm:$0xff] %v3550_v16  ;;  %v1339_v33 = vmul.f32 %v2916_v46, %v3241_v48  ;;  %v1210_v23 = vadd.f32 %v1150_v24, %v1089_v55  ;;  %v1467_v47 = vmul.f32 %v2941_v3, %v3330_v34  ;;  %v1211_v36 = vadd.f32 %v1151_v41, %v1090_v54  ;;  %v333_v24 = vpop.f32.mrf.mxu2 }
 0x124   :  { %v2188_v51 = vmin.f32 %v2124_v2, 6.0  ;;  %v2189_v30 = vmin.f32 %v2125_v57, 6.0  ;;  %v1402_v58 = vadd.f32 %v5711_v28, %v1273_v37  ;;  %v1468_v56 = vmul.f32 %v2941_v3, %v3335_v6 }
 0x125   :  { %v1403_v39 = vadd.f32 %v1339_v33, %v1274_v5  ;;  %v1596_v2 = vmul.f32 %v2949_v7, %v3508_v14  ;;  %v1597_v55 = vmul.f32 %v2949_v7, %v3503_v59  ;;  %v1657_v57 = vmul.f32 %v2951_v8, %v3286_v49  ;;  %v255_v5 = vpop.f32.mrf.mxu0 }
 0x126   :  { %v2234_v63 = vpack.c.bf16 %v2189_v30, %v2188_v51  ;;  %v1531_v41 = vadd.f32 %v1467_v47, %v1402_v58  ;;  %v1658_v54 = vmul.f32 %v2951_v8, %v3332_v40  ;;  %v1778_v37 = vmul.f32 %v3058_v38, %v3517_v21  ;;  %v3585_v47 = vld [vmem:[%s5627_s2] ss:$0 sm:$0xff] }
 0x127   :  { %v1532_v28 = vadd.f32 %v1468_v56, %v1403_v39  ;;  %v1717_v51 = vadd.f32 %v1657_v57, %v1596_v2  ;;  %v1779_v33 = vmul.f32 %v3058_v38, %v3522_v9  ;;  %v168_v30 = vpack.c.bf16 %v119_v62, %v118_v61 }
 0x128   :  { %2374 = vmatmul.bf16.gmra.mxu3 %v2234_v63  ;;  %v184_v16 = vpack.c.bf16 %v151_v20, %v150_v53  ;;  %v1718_v42 = vadd.f32 %v1658_v54, %v1597_v55  ;;  %v1898_v25 = vadd.f32 %v1531_v41, %v1210_v23  ;;  %v334_v40 = vadd.f32 %v3585_v47, %v333_v24 }
 0x129   :  { %v1899_v49 = vadd.f32 %v1532_v28, %v1211_v36  ;;  %v1838_v58 = vadd.f32 %v1778_v37, %v1717_v51  ;;  %292 = vmatmul.bf16.gmra.mxu0 %v168_v30  ;;  %v256_v63 = vadd.f32 %v3585_v47, %v255_v5  ;;  %v5712_v39 = vrot.slane %v3373_v60, 7 }
 0x12a   :  { %372 = vmatmul.bf16.gmra.mxu2 %v184_v16  ;;  %v5713_v62 = vrot.slane %v3325_v32, 7  ;;  %v1839_v61 = vadd.f32 %v1779_v33, %v1718_v42  ;;  %v427_v36 = vmax.f32 %v334_v40, 0.0  ;;  %v5715_v56 = vrot.slane %v3373_v60, 1 }
 0x12b   :  { %v5716_v16 = vrot.slane %v3325_v32, 1  ;;  %v1962_v24 = vadd.f32 %v1898_v25, %v1838_v58  ;;  %v396_v41 = vmax.f32 %v256_v63, 0.0  ;;  %v998_v28 = vmul.f32 %v2912_v44, %v3230_v13  ;;  %v5718_v25 = vld [vmem:[#allocation19_spill] sm:$0xff] }
 0x12c   :  { %v3594_v53 = vsel %vm575_vm0, %v5713_v62, %v5712_v39  ;;  %v5714_v20 = vmov %v5713_v62  ;;  %v5717_v55 = vmov %v5715_v56  ;;  %v999_v42 = vmul.f32 %v2912_v44, %v3225_v0 }
 0x12d   :  { %v3599_v23 = vsel %vm575_vm0, 0.0, %v5714_v20  ;;  %v3606_v2 = vsel %vm768_vm1, %v5716_v16, %v5715_v56  ;;  %v3611_v57 = vsel %vm768_vm1, %v5717_v55, 0.0  ;;  %v1963_v54 = vadd.f32 %v1899_v49, %v1839_v61  ;;  %v258_v62 = vpop.f32.mrf.mxu0 }
 0x12e   :  { %v3617_v37 = vmin.f32 %v427_v36, 6.0  ;;  %v1060_v5 = vmul.f32 %v2914_v45, %v3185_v17  ;;  %v1180_v51 = vmul.f32 %v2943_v4, %v3248_v18  ;;  %v2030_v33 = vadd.f32 %v3105_v10, %v1962_v24 }
 0x12f   :  { %v3624_v30 = vmin.f32 %v396_v41, 6.0  ;;  %v1119_v40 = vadd.f32 %v5718_v25, %v998_v28  ;;  %v1181_v13 = vmul.f32 %v2943_v4, %v3263_v19  ;;  %v2031_v0 = vadd.f32 %v3105_v10, %v1963_v54  ;;  %v335_v25 = vpop.f32.mrf.mxu2 }
 0x130   :  { %v3634_v17 = vmul.f32 %v2914_v45, %v3617_v37  ;;  %v2094_v18 = vmax.f32 %v2030_v33, 0.0  ;;  %v3638_v63 = vmul.f32 %v2916_v46, %v3617_v37  ;;  %v1120_v36 = vadd.f32 %v1060_v5, %v999_v42 }
 0x131   :  { %v2095_v19 = vmax.f32 %v2031_v0, 0.0  ;;  %v3644_v20 = vmul.f32 %v2914_v45, %v3624_v30  ;;  %v3648_v61 = vmul.f32 %v2916_v46, %v3624_v30  ;;  %v1240_v16 = vadd.f32 %v1180_v51, %v1119_v40  ;;  %v5723_v0 = vld [vmem:[#allocation24_spill] sm:$0xff] }
 0x132   :  { %5719 = vst [vmem:[#allocation17_spill] sm:$0xff] %v3634_v17  ;;  %v2158_v56 = vmin.f32 %v2094_v18, 6.0  ;;  %v1305_v55 = vmul.f32 %v2925_v52, %v3425_v43  ;;  %v1306_v24 = vmul.f32 %v2925_v52, %v3420_v27  ;;  %v1241_v28 = vadd.f32 %v1181_v13, %v1120_v36 }
 0x133   :  { %5720 = vst [vmem:[#allocation22_spill] sm:$0xff] %v3638_v63  ;;  %v2159_v41 = vmin.f32 %v2095_v19, 6.0  ;;  %v1371_v54 = vmul.f32 %v2916_v46, %v3275_v50  ;;  %v1499_v33 = vmul.f32 %v2941_v3, %v3433_v11  ;;  %v1500_v42 = vmul.f32 %v2941_v3, %v3436_v26 }
 0x134   :  { %5721 = vst [vmem:[#allocation19_spill] sm:$0xff] %v3644_v20  ;;  %v1434_v58 = vadd.f32 %v5723_v0, %v1305_v55  ;;  %v1626_v5 = vmul.f32 %v2949_v7, %v3599_v23  ;;  %v1627_v51 = vmul.f32 %v2949_v7, %v3594_v53  ;;  %v1687_v18 = vmul.f32 %v2951_v8, %v3325_v32 }
 0x135   :  { %5722 = vst [vmem:[#allocation39_spill] sm:$0xff] %v3648_v61  ;;  %v2219_v40 = vpack.c.bf16 %v2159_v41, %v2158_v56  ;;  %v1435_v13 = vadd.f32 %v1371_v54, %v1306_v24  ;;  %v1688_v19 = vmul.f32 %v2951_v8, %v3373_v60  ;;  %v1808_v55 = vmul.f32 %v3058_v38, %v3606_v2 }
 0x136   :  { %v1563_v36 = vadd.f32 %v1499_v33, %v1434_v58  ;;  %v1809_v0 = vmul.f32 %v3058_v38, %v3611_v57  ;;  %v336_v49 = vadd.f32 %v3585_v47, %v335_v25  ;;  %v1747_v56 = vadd.f32 %v1687_v18, %v1626_v5  ;;  %v5725_v58 = vld [vmem:[#allocation16_spill] sm:$0xff] }
 0x137   :  { %2299 = vmatmul.bf16.gmra.mxu1 %v2219_v40  ;;  %v1564_v39 = vadd.f32 %v1500_v42, %v1435_v13  ;;  %v1748_v24 = vadd.f32 %v1688_v19, %v1627_v51  ;;  %v259_v41 = vadd.f32 %v3585_v47, %v258_v62  ;;  %v5724_v60 = vrot.slane %v3444_v22, 7 }
 0x138   :  { %v1930_v32 = vadd.f32 %v1563_v36, %v1240_v16  ;;  %v428_v54 = vmax.f32 %v336_v49, 0.0  ;;  %v5726_v33 = vrot.slane %v5725_v58, 7  ;;  %v1868_v40 = vadd.f32 %v1808_v55, %v1747_v56  ;;  %v121_v56 = vld [vmem:[#allocation2 + $0xf8] sm:$0xff] }
 0x139   :  { %v1869_v42 = vadd.f32 %v1809_v0, %v1748_v24  ;;  %v1931_v5 = vadd.f32 %v1564_v39, %v1241_v28  ;;  %v397_v51 = vmax.f32 %v259_v41, 0.0  ;;  %v5728_v49 = vrot.slane %v3444_v22, 1 }
 0x13a   :  { %v3680_v17 = vsel %vm575_vm0, %v5726_v33, %v5724_v60  ;;  %v5727_v38 = vmov %v5726_v33  ;;  %v3687_v13 = vmin.f32 %v428_v54, 6.0  ;;  %v5729_v62 = vrot.slane %v5725_v58, 1  ;;  %v5736_v60 = vld [vmem:[#allocation26_spill] sm:$0xff] }
 0x13b   :  { %v3685_v25 = vsel %vm575_vm0, 0.0, %v5727_v38  ;;  %v5730_v18 = vmov %v5728_v49  ;;  %v970_v36 = vmul.f32 %v2912_v44, %v3316_v12  ;;  %v1994_v55 = vadd.f32 %v1930_v32, %v1868_v40 }
 0x13c   :  { %v3694_v16 = vsel %vm768_vm1, %v5729_v62, %v5728_v49  ;;  %v3699_v19 = vsel %vm768_vm1, %v5730_v18, 0.0  ;;  %v1995_v39 = vadd.f32 %v1931_v5, %v1869_v42  ;;  %v3703_v28 = vmin.f32 %v397_v51, 6.0  ;;  %v5735_v42 = vld [vmem:[#allocation21_spill] sm:$0xff] }
 0x13d   :  { %v971_v0 = vmul.f32 %v2912_v44, %v3311_v31  ;;  %v3711_v41 = vmul.f32 %v2914_v45, %v3687_v13  ;;  %v3715_v54 = vmul.f32 %v2916_v46, %v3687_v13  ;;  %v2062_v12 = vadd.f32 %v3105_v10, %v1994_v55 }
 0x13e   :  { %v2063_v32 = vadd.f32 %v3105_v10, %v1995_v39  ;;  %v3723_v33 = vmul.f32 %v2914_v45, %v3703_v28  ;;  %v3727_v38 = vmul.f32 %v2916_v46, %v3703_v28  ;;  %v1032_v40 = vmul.f32 %v2914_v45, %v3241_v48 }
 0x13f   :  { %5731 = vst [vmem:[#allocation24_spill] sm:$0xff] %v3711_v41  ;;  %v1091_v5 = vadd.f32 %v5735_v42, %v970_v36  ;;  %v2126_v51 = vmax.f32 %v2062_v12, 0.0  ;;  %v1152_v10 = vmul.f32 %v2943_v4, %v3330_v34  ;;  %v1153_v62 = vmul.f32 %v2943_v4, %v3335_v6  ;;  %v120_v34 = vld [vmem:[#allocation2 + $0xf0] sm:$0xff]  ;;  %v153_v41 = vld [vmem:[#allocation2 + $0x1f8] sm:$0xff] }
 0x140   :  { %5732 = vst [vmem:[#allocation16_spill] sm:$0xff] %v3715_v54  ;;  %v2127_v49 = vmax.f32 %v2063_v32, 0.0  ;;  %v1092_v18 = vadd.f32 %v1032_v40, %v971_v0  ;;  %v1275_v55 = vmul.f32 %v2925_v52, %v3508_v14  ;;  %v1276_v39 = vmul.f32 %v2925_v52, %v3503_v59  ;;  %v5737_v0 = vld [vmem:[#allocation30_spill] sm:$0xff] }
 0x141   :  { %5733 = vst [vmem:[#allocation40_spill] sm:$0xff] %v3723_v33  ;;  %v1469_v48 = vmul.f32 %v2941_v3, %v3517_v21  ;;  %v2190_v31 = vmin.f32 %v2126_v51, 6.0  ;;  %v1212_v12 = vadd.f32 %v1152_v10, %v1091_v5  ;;  %v1470_v32 = vmul.f32 %v2941_v3, %v3522_v9  ;;  %v152_v33 = vld [vmem:[#allocation2 + $0x1f0] sm:$0xff]  ;;  %v338_v10 = vpop.f32.mrf.mxu2 }
 0x142   :  { %5734 = vst [vmem:[#allocation41_spill] sm:$0xff] %v3727_v38  ;;  %v2191_v36 = vmin.f32 %v2127_v49, 6.0  ;;  %v1213_v42 = vadd.f32 %v1153_v62, %v1092_v18  ;;  %v1404_v6 = vadd.f32 %v5736_v60, %v1275_v55  ;;  %v1405_v40 = vadd.f32 %v5737_v0, %v1276_v39  ;;  %v260_v60 = vpop.f32.mrf.mxu0  ;;  %v3754_v55 = vld [vmem:[#allocation7 + $0x8] ss:$0 sm:$0xff] }
 0x143   :  { %v1598_v24 = vmul.f32 %v2949_v7, %v3685_v25  ;;  %v1599_v51 = vmul.f32 %v2949_v7, %v3680_v17  ;;  %v1659_v5 = vmul.f32 %v2951_v8, %v5725_v58  ;;  %v1660_v49 = vmul.f32 %v2951_v8, %v3444_v22 }
 0x144   :  { %v2235_v38 = vpack.c.bf16 %v2191_v36, %v2190_v31  ;;  %v1533_v62 = vadd.f32 %v1469_v48, %v1404_v6  ;;  %v1534_v18 = vadd.f32 %v1470_v32, %v1405_v40  ;;  %v1780_v39 = vmul.f32 %v3754_v55, %v3694_v16 }
 0x145   :  { %v1781_v31 = vmul.f32 %v3754_v55, %v3699_v19  ;;  %v1719_v36 = vadd.f32 %v1659_v5, %v1598_v24  ;;  %v1720_v0 = vadd.f32 %v1660_v49, %v1599_v51  ;;  %v169_v20 = vpack.c.bf16 %v121_v56, %v120_v34 }
 0x146   :  { %2379 = vmatmul.bf16.gmra.mxu3 %v2235_v38  ;;  %v185_v58 = vpack.c.bf16 %v153_v41, %v152_v33  ;;  %v1900_v54 = vadd.f32 %v1533_v62, %v1212_v12  ;;  %v1901_v63 = vadd.f32 %v1534_v18, %v1213_v42  ;;  %v339_v22 = vadd.f32 %v3585_v47, %v338_v10 }
 0x147   :  { %v261_v48 = vadd.f32 %v3585_v47, %v260_v60  ;;  %v1840_v32 = vadd.f32 %v1780_v39, %v1719_v36  ;;  %v1841_v6 = vadd.f32 %v1781_v31, %v1720_v0  ;;  %297 = vmatmul.bf16.gmra.mxu0 %v169_v20  ;;  %v5738_v40 = vrot.slane %v3510_v29, 7 }
 0x148   :  { %377 = vmatmul.bf16.gmra.mxu2 %v185_v58  ;;  %v5739_v61 = vrot.slane %v3442_v15, 7  ;;  %v429_v41 = vmax.f32 %v339_v22, 0.0  ;;  %v5741_v12 = vrot.slane %v3510_v29, 1  ;;  %v5742_v34 = vrot.slane %v3442_v15, 1 }
 0x149   :  { %v398_v33 = vmax.f32 %v261_v48, 0.0  ;;  %v1965_v5 = vadd.f32 %v1901_v63, %v1841_v6  ;;  %v1000_v49 = vmul.f32 %v2912_v44, %v3425_v43  ;;  %v1001_v10 = vmul.f32 %v2912_v44, %v3420_v27  ;;  %v3801_v63 = vld [vmem:[%s5629_s4] ss:$0 sm:$0xff]  ;;  %v5744_v27 = vld [vmem:[#allocation23_spill] sm:$0xff] }
 0x14a   :  { %v3767_v38 = vsel %vm575_vm0, %v5739_v61, %v5738_v40  ;;  %v5740_v56 = vmov %v5739_v61  ;;  %v3779_v20 = vsel %vm768_vm1, %v5742_v34, %v5741_v12  ;;  %v5743_v42 = vmov %v5741_v12 }
 0x14b   :  { %v3772_v24 = vsel %vm575_vm0, 0.0, %v5740_v56  ;;  %v3784_v51 = vsel %vm768_vm1, %v5743_v42, 0.0  ;;  %v1964_v61 = vadd.f32 %v1900_v54, %v1840_v32  ;;  %v3790_v60 = vmin.f32 %v429_v41, 6.0 }
 0x14c   :  { %v3792_v62 = vmin.f32 %v398_v33, 6.0  ;;  %v1062_v18 = vmul.f32 %v2914_v45, %v3275_v50  ;;  %v1182_v39 = vmul.f32 %v2943_v4, %v3433_v11  ;;  %v2033_v54 = vadd.f32 %v3801_v63, %v1965_v5 }
 0x14d   :  { %v2032_v43 = vadd.f32 %v3801_v63, %v1964_v61  ;;  %v1121_v31 = vadd.f32 %v5744_v27, %v1000_v49  ;;  %v1183_v36 = vmul.f32 %v2943_v4, %v3436_v26  ;;  %v3812_v11 = vmul.f32 %v2914_v45, %v3790_v60  ;;  %v5747_v27 = vld [vmem:[#allocation31_spill] sm:$0xff] }
 0x14e   :  { %v3816_v58 = vmul.f32 %v2916_v46, %v3790_v60  ;;  %v2097_v48 = vmax.f32 %v2033_v54, 0.0  ;;  %v3822_v26 = vmul.f32 %v2914_v45, %v3792_v62  ;;  %v3826_v40 = vmul.f32 %v2916_v46, %v3792_v62 }
 0x14f   :  { %5745 = vst [vmem:[#allocation21_spill] sm:$0xff] %v3812_v11  ;;  %v2096_v22 = vmax.f32 %v2032_v43, 0.0  ;;  %v1122_v56 = vadd.f32 %v1062_v18, %v1001_v10  ;;  %v1242_v41 = vadd.f32 %v1182_v39, %v1121_v31  ;;  %v1307_v34 = vmul.f32 %v2925_v52, %v3599_v23  ;;  %v340_v10 = vpop.f32.mrf.mxu2  ;;  %v5746_v39 = vld [vmem:[#allocation28_spill] sm:$0xff] }
 0x150   :  { %v2161_v12 = vmin.f32 %v2097_v48, 6.0  ;;  %v1308_v42 = vmul.f32 %v2925_v52, %v3594_v53  ;;  %v1501_v5 = vmul.f32 %v2941_v3, %v3606_v2  ;;  %v1502_v49 = vmul.f32 %v2941_v3, %v3611_v57 }
 0x151   :  { %v2160_v33 = vmin.f32 %v2096_v22, 6.0  ;;  %v1243_v61 = vadd.f32 %v1183_v36, %v1122_v56  ;;  %v1628_v43 = vmul.f32 %v2949_v7, %v3772_v24  ;;  %v1436_v54 = vadd.f32 %v5746_v39, %v1307_v34 }
 0x152   :  { %v1437_v31 = vadd.f32 %v5747_v27, %v1308_v42  ;;  %v1629_v22 = vmul.f32 %v2949_v7, %v3767_v38  ;;  %v1689_v36 = vmul.f32 %v2951_v8, %v3442_v15  ;;  %v1690_v48 = vmul.f32 %v2951_v8, %v3510_v29 }
 0x153   :  { %v2220_v18 = vpack.c.bf16 %v2161_v12, %v2160_v33  ;;  %v1810_v56 = vmul.f32 %v3754_v55, %v3779_v20  ;;  %v1811_v50 = vmul.f32 %v3754_v55, %v3784_v51  ;;  %v263_v33 = vpop.f32.mrf.mxu0  ;;  %v1565_v12 = vadd.f32 %v1501_v5, %v1436_v54 }
 0x154   :  { %v1566_v34 = vadd.f32 %v1502_v49, %v1437_v31  ;;  %v341_v42 = vadd.f32 %v3585_v47, %v340_v10  ;;  %v264_v39 = vadd.f32 %v3585_v47, %v263_v33  ;;  %v1749_v27 = vadd.f32 %v1689_v36, %v1628_v43 }
 0x155   :  { %2304 = vmatmul.bf16.gmra.mxu1 %v2220_v18  ;;  %v1750_v0 = vadd.f32 %v1690_v48, %v1629_v22  ;;  %v5748_v15 = vrot.slane %v3624_v30, 7  ;;  %v5749_v29 = vrot.slane %v3526_v1, 7  ;;  %v1932_v5 = vadd.f32 %v1565_v12, %v1242_v41 }
 0x156   :  { %v1933_v49 = vadd.f32 %v1566_v34, %v1243_v61  ;;  %v430_v18 = vmax.f32 %v341_v42, 0.0  ;;  %v399_v10 = vmax.f32 %v264_v39, 0.0  ;;  %v1870_v54 = vadd.f32 %v1810_v56, %v1749_v27 }
 0x157   :  { %v3857_v6 = vsel %vm575_vm0, %v5749_v29, %v5748_v15  ;;  %v5750_v32 = vmov %v5749_v29  ;;  %v1871_v31 = vadd.f32 %v1811_v50, %v1750_v0  ;;  %v5751_v43 = vrot.slane %v3624_v30, 1 }
 0x158   :  { %v3862_v11 = vsel %vm575_vm0, 0.0, %v5750_v32  ;;  %v5752_v22 = vrot.slane %v3526_v1, 1  ;;  %v3876_v32 = vmin.f32 %v430_v18, 6.0  ;;  %v3878_v41 = vmin.f32 %v399_v10, 6.0  ;;  %v5758_v10 = vld [vmem:[#allocation29_spill] sm:$0xff] }
 0x159   :  { %v5753_v48 = vmov %v5751_v43  ;;  %v972_v61 = vmul.f32 %v2912_v44, %v3508_v14  ;;  %v973_v0 = vmul.f32 %v2912_v44, %v3503_v59  ;;  %v1996_v50 = vadd.f32 %v1932_v5, %v1870_v54 }
 0x15a   :  { %v3869_v36 = vsel %vm768_vm1, %v5752_v22, %v5751_v43  ;;  %v3874_v33 = vsel %vm768_vm1, %v5753_v48, 0.0  ;;  %v1997_v56 = vadd.f32 %v1933_v49, %v1871_v31  ;;  %v1154_v12 = vmul.f32 %v2943_v4, %v3517_v21  ;;  %v5757_v49 = vld [vmem:[#allocation25_spill] sm:$0xff] }
 0x15b   :  { %v1155_v34 = vmul.f32 %v2943_v4, %v3522_v9  ;;  %v3892_v27 = vmul.f32 %v2914_v45, %v3876_v32  ;;  %v3896_v14 = vmul.f32 %v2916_v46, %v3876_v32  ;;  %v2064_v59 = vadd.f32 %v3801_v63, %v1996_v50 }
 0x15c   :  { %v2065_v15 = vadd.f32 %v3801_v63, %v1997_v56  ;;  %v3904_v29 = vmul.f32 %v2914_v45, %v3878_v41  ;;  %v3908_v5 = vmul.f32 %v2916_v46, %v3878_v41  ;;  %v1093_v18 = vadd.f32 %v5757_v49, %v972_v61  ;;  %v5759_v49 = vld [vmem:[#allocation33_spill] sm:$0xff] }
 0x15d   :  { %5754 = vst [vmem:[#allocation26_spill] sm:$0xff] %v3892_v27  ;;  %v1094_v54 = vadd.f32 %v5758_v10, %v973_v0  ;;  %v2128_v31 = vmax.f32 %v2064_v59, 0.0  ;;  %v1277_v22 = vmul.f32 %v2925_v52, %v3685_v25  ;;  %v1278_v48 = vmul.f32 %v2925_v52, %v3680_v17 }
 0x15e   :  { %5755 = vst [vmem:[#allocation30_spill] sm:$0xff] %v3904_v29  ;;  %v2129_v43 = vmax.f32 %v2065_v15, 0.0  ;;  %v1214_v50 = vadd.f32 %v1154_v12, %v1093_v18  ;;  %v1471_v9 = vmul.f32 %v2941_v3, %v3694_v16  ;;  %v1472_v21 = vmul.f32 %v2941_v3, %v3699_v19  ;;  %v343_v15 = vpop.f32.mrf.mxu2 }
 0x15f   :  { %5756 = vst [vmem:[#allocation23_spill] sm:$0xff] %v3908_v5  ;;  %v1215_v56 = vadd.f32 %v1155_v34, %v1094_v54  ;;  %v2192_v39 = vmin.f32 %v2128_v31, 6.0  ;;  %v1406_v0 = vadd.f32 %v5759_v49, %v1277_v22  ;;  %v1407_v59 = vadd.f32 %v3471_v35, %v1278_v48  ;;  %v265_v54 = vpop.f32.mrf.mxu0 }
 0x160   :  { %v2193_v61 = vmin.f32 %v2129_v43, 6.0  ;;  %v1600_v10 = vmul.f32 %v2949_v7, %v3862_v11  ;;  %v1601_v12 = vmul.f32 %v2949_v7, %v3857_v6  ;;  %v1661_v34 = vmul.f32 %v2951_v8, %v3526_v1 }
 0x161   :  { %v1662_v18 = vmul.f32 %v2951_v8, %v3624_v30  ;;  %v1535_v43 = vadd.f32 %v1471_v9, %v1406_v0  ;;  %v1536_v42 = vadd.f32 %v1472_v21, %v1407_v59  ;;  %v1782_v35 = vmul.f32 %v3754_v55, %v3869_v36 }
 0x162   :  { %v2236_v31 = vpack.c.bf16 %v2193_v61, %v2192_v39  ;;  %v1721_v22 = vadd.f32 %v1661_v34, %v1600_v10  ;;  %v1783_v49 = vmul.f32 %v3754_v55, %v3874_v33  ;;  %v344_v29 = vadd.f32 %v3585_v47, %v343_v15 }
 0x163   :  { %v1722_v48 = vadd.f32 %v1662_v18, %v1601_v12  ;;  %v1902_v27 = vadd.f32 %v1535_v43, %v1214_v50  ;;  %v1903_v1 = vadd.f32 %v1536_v42, %v1215_v56  ;;  %v266_v5 = vadd.f32 %v3585_v47, %v265_v54 }
 0x164   :  { %2384 = vmatmul.bf16.gmra.mxu3 %v2236_v31  ;;  %v5760_v30 = vrot.slane %v3687_v13, 7  ;;  %v5761_v39 = vrot.slane %v3617_v37, 7  ;;  %v1842_v9 = vadd.f32 %v1782_v35, %v1721_v22  ;;  %v431_v0 = vmax.f32 %v344_v29, 0.0  ;;  %v5766_v35 = vld [vmem:[#allocation27_spill] sm:$0xff] }
 0x165   :  { %v1843_v61 = vadd.f32 %v1783_v49, %v1722_v48  ;;  %v400_v15 = vmax.f32 %v266_v5, 0.0  ;;  %v5763_v42 = vrot.slane %v3687_v13, 1  ;;  %v5764_v50 = vrot.slane %v3617_v37, 1 }
 0x166   :  { %v3941_v21 = vsel %vm575_vm0, %v5761_v39, %v5760_v30  ;;  %v5762_v59 = vmov %v5761_v39  ;;  %v1002_v29 = vmul.f32 %v2912_v44, %v3599_v23  ;;  %v1966_v18 = vadd.f32 %v1902_v27, %v1842_v9 }
 0x167   :  { %v3946_v10 = vsel %vm575_vm0, 0.0, %v5762_v59  ;;  %v3953_v56 = vsel %vm768_vm1, %v5764_v50, %v5763_v42  ;;  %v5765_v12 = vmov %v5763_v42  ;;  %v1967_v54 = vadd.f32 %v1903_v1, %v1843_v61  ;;  %v5771_v1 = vld [vmem:[#allocation34_spill] sm:$0xff] }
 0x168   :  { %v3958_v34 = vsel %vm768_vm1, %v5765_v12, 0.0  ;;  %v3962_v31 = vmin.f32 %v431_v0, 6.0  ;;  %v1003_v5 = vmul.f32 %v2912_v44, %v3594_v53  ;;  %v3966_v43 = vmin.f32 %v400_v15, 6.0  ;;  %v5770_v15 = vld [vmem:[#allocation18_spill] sm:$0xff] }
 0x169   :  { %v1123_v22 = vadd.f32 %v5766_v35, %v1002_v29  ;;  %v1184_v48 = vmul.f32 %v2943_v4, %v3606_v2  ;;  %v1185_v49 = vmul.f32 %v2943_v4, %v3611_v57  ;;  %v2034_v30 = vadd.f32 %v3801_v63, %v1966_v18  ;;  %v5772_v57 = vld [vmem:[#allocation36_spill] sm:$0xff] }
 0x16a   :  { %v2035_v23 = vadd.f32 %v3801_v63, %v1967_v54  ;;  %v3979_v53 = vmul.f32 %v2914_v45, %v3962_v31  ;;  %v3983_v39 = vmul.f32 %v2916_v46, %v3962_v31  ;;  %v3989_v0 = vmul.f32 %v2914_v45, %v3966_v43 }
 0x16b   :  { %v2098_v9 = vmax.f32 %v2034_v30, 0.0  ;;  %v3993_v59 = vmul.f32 %v2916_v46, %v3966_v43  ;;  %v1124_v42 = vadd.f32 %v5770_v15, %v1003_v5  ;;  %v1244_v50 = vadd.f32 %v1184_v48, %v1123_v22  ;;  %v345_v48 = vpop.f32.mrf.mxu2 }
 0x16c   :  { %5767 = vst [vmem:[#allocation28_spill] sm:$0xff] %v3979_v53  ;;  %v2099_v61 = vmax.f32 %v2035_v23, 0.0  ;;  %v1309_v12 = vmul.f32 %v2925_v52, %v3772_v24  ;;  %v1310_v29 = vmul.f32 %v2925_v52, %v3767_v38  ;;  %v1503_v35 = vmul.f32 %v2941_v3, %v3779_v20 }
 0x16d   :  { %5768 = vst [vmem:[#allocation31_spill] sm:$0xff] %v3983_v39  ;;  %v2162_v18 = vmin.f32 %v2098_v9, 6.0  ;;  %v1504_v30 = vmul.f32 %v2941_v3, %v3784_v51  ;;  %v1245_v23 = vadd.f32 %v1185_v49, %v1124_v42  ;;  %v1630_v22 = vmul.f32 %v2949_v7, %v3946_v10  ;;  %v268_v42 = vpop.f32.mrf.mxu0 }
 0x16e   :  { %5769 = vst [vmem:[#allocation25_spill] sm:$0xff] %v3989_v0  ;;  %v2163_v54 = vmin.f32 %v2099_v61, 6.0  ;;  %v1438_v27 = vadd.f32 %v5771_v1, %v1309_v12  ;;  %v1439_v5 = vadd.f32 %v5772_v57, %v1310_v29  ;;  %v1631_v9 = vmul.f32 %v2949_v7, %v3941_v21 }
 0x16f   :  { %v1691_v61 = vmul.f32 %v2951_v8, %v3617_v37  ;;  %v1692_v2 = vmul.f32 %v2951_v8, %v3687_v13  ;;  %v1812_v1 = vmul.f32 %v3754_v55, %v3953_v56  ;;  %v1813_v57 = vmul.f32 %v3754_v55, %v3958_v34 }
 0x170   :  { %v2221_v15 = vpack.c.bf16 %v2163_v54, %v2162_v18  ;;  %v1567_v53 = vadd.f32 %v1503_v35, %v1438_v27  ;;  %v1568_v49 = vadd.f32 %v1504_v30, %v1439_v5  ;;  %v346_v18 = vadd.f32 %v3585_v47, %v345_v48 }
 0x171   :  { %v1751_v12 = vadd.f32 %v1691_v61, %v1630_v22  ;;  %v1752_v29 = vadd.f32 %v1692_v2, %v1631_v9  ;;  %v269_v54 = vadd.f32 %v3585_v47, %v268_v42  ;;  %v5773_v13 = vrot.slane %v3792_v62, 7 }
 0x172   :  { %2309 = vmatmul.bf16.gmra.mxu1 %v2221_v15  ;;  %v1934_v37 = vadd.f32 %v1567_v53, %v1244_v50  ;;  %v1935_v0 = vadd.f32 %v1568_v49, %v1245_v23  ;;  %v5774_v27 = vrot.slane %v3703_v28, 7  ;;  %v432_v15 = vmax.f32 %v346_v18, 0.0  ;;  %v5779_v18 = vld [vmem:[#allocation32_spill] sm:$0xff] }
 0x173   :  { %v1872_v22 = vadd.f32 %v1812_v1, %v1751_v12  ;;  %v1873_v2 = vadd.f32 %v1813_v57, %v1752_v29  ;;  %v401_v48 = vmax.f32 %v269_v54, 0.0  ;;  %v5776_v9 = vrot.slane %v3792_v62, 1 }
 0x174   :  { %v4025_v35 = vsel %vm575_vm0, %v5774_v27, %v5773_v13  ;;  %v5775_v30 = vmov %v5774_v27  ;;  %v5777_v53 = vrot.slane %v3703_v28, 1  ;;  %v974_v49 = vmul.f32 %v2912_v44, %v3685_v25  ;;  %v5780_v13 = vld [vmem:[#allocation35_spill] sm:$0xff] }
 0x175   :  { %v4030_v5 = vsel %vm575_vm0, 0.0, %v5775_v30  ;;  %v5778_v23 = vmov %v5776_v9  ;;  %v975_v1 = vmul.f32 %v2912_v44, %v3680_v17  ;;  %v1998_v57 = vadd.f32 %v1934_v37, %v1872_v22 }
 0x176   :  { %v4037_v50 = vsel %vm768_vm1, %v5777_v53, %v5776_v9  ;;  %v4042_v61 = vsel %vm768_vm1, %v5778_v23, 0.0  ;;  %v1999_v42 = vadd.f32 %v1935_v0, %v1873_v2  ;;  %v4048_v12 = vmin.f32 %v432_v15, 6.0  ;;  %v5786_v0 = vld [vmem:[#allocation39_spill] sm:$0xff] }
 0x177   :  { %v4050_v29 = vmin.f32 %v401_v48, 6.0  ;;  %v1095_v54 = vadd.f32 %v5779_v18, %v974_v49  ;;  %v1096_v27 = vadd.f32 %v5780_v13, %v975_v1  ;;  %v1156_v30 = vmul.f32 %v2943_v4, %v3694_v16  ;;  %v5785_v16 = vld [vmem:[#allocation38_spill] sm:$0xff] }
 0x178   :  { %v1157_v9 = vmul.f32 %v2943_v4, %v3699_v19  ;;  %v2066_v25 = vadd.f32 %v3801_v63, %v1998_v57  ;;  %v2067_v17 = vadd.f32 %v3801_v63, %v1999_v42  ;;  %v4064_v22 = vmul.f32 %v2914_v45, %v4048_v12  ;;  %v348_v19 = vpop.f32.mrf.mxu2 }
 0x179   :  { %v4068_v2 = vmul.f32 %v2916_v46, %v4048_v12  ;;  %v4074_v53 = vmul.f32 %v2914_v45, %v4050_v29  ;;  %v4078_v23 = vmul.f32 %v2916_v46, %v4050_v29  ;;  %v1216_v49 = vadd.f32 %v1156_v30, %v1095_v54 }
 0x17a   :  { %5781 = vst [vmem:[#allocation29_spill] sm:$0xff] %v4064_v22  ;;  %v2130_v15 = vmax.f32 %v2066_v25, 0.0  ;;  %v2131_v48 = vmax.f32 %v2067_v17, 0.0  ;;  %v1217_v1 = vadd.f32 %v1157_v9, %v1096_v27  ;;  %v1279_v57 = vmul.f32 %v2925_v52, %v3862_v11  ;;  %v270_v9 = vpop.f32.mrf.mxu0 }
 0x17b   :  { %5782 = vst [vmem:[#allocation33_spill] sm:$0xff] %v4068_v2  ;;  %v1280_v42 = vmul.f32 %v2925_v52, %v3857_v6  ;;  %v1473_v25 = vmul.f32 %v2941_v3, %v3869_v36  ;;  %v1474_v17 = vmul.f32 %v2941_v3, %v3874_v33  ;;  %v1602_v27 = vmul.f32 %v2949_v7, %v4030_v5 }
 0x17c   :  { %5783 = vst [vmem:[#allocation27_spill] sm:$0xff] %v4074_v53  ;;  %v2194_v18 = vmin.f32 %v2130_v15, 6.0  ;;  %v2195_v13 = vmin.f32 %v2131_v48, 6.0  ;;  %v1408_v37 = vadd.f32 %v5785_v16, %v1279_v57  ;;  %v1603_v30 = vmul.f32 %v2949_v7, %v4025_v35 }
 0x17d   :  { %5784 = vst [vmem:[#allocation18_spill] sm:$0xff] %v4078_v23  ;;  %v1409_v54 = vadd.f32 %v5786_v0, %v1280_v42  ;;  %v1663_v48 = vmul.f32 %v2951_v8, %v3703_v28  ;;  %v1664_v53 = vmul.f32 %v2951_v8, %v3792_v62  ;;  %v1784_v22 = vmul.f32 %v3754_v55, %v4037_v50 }
 0x17e   :  { %v2237_v15 = vpack.c.bf16 %v2195_v13, %v2194_v18  ;;  %v1537_v16 = vadd.f32 %v1473_v25, %v1408_v37  ;;  %v1785_v0 = vmul.f32 %v3754_v55, %v4042_v61  ;;  %v349_v42 = vadd.f32 %v3585_v47, %v348_v19 }
 0x17f   :  { %v1538_v57 = vadd.f32 %v1474_v17, %v1409_v54  ;;  %v1723_v23 = vadd.f32 %v1663_v48, %v1602_v27  ;;  %v1724_v2 = vadd.f32 %v1664_v53, %v1603_v30  ;;  %v271_v18 = vadd.f32 %v3585_v47, %v270_v9 }
 0x180   :  { %2389 = vmatmul.bf16.gmra.mxu3 %v2237_v15  ;;  %v5787_v28 = vrot.slane %v3876_v32, 7  ;;  %v5788_v13 = vrot.slane %v3790_v60, 7  ;;  %v1904_v39 = vadd.f32 %v1537_v16, %v1216_v49  ;;  %v433_v25 = vmax.f32 %v349_v42, 0.0 }
 0x181   :  { %v1905_v37 = vadd.f32 %v1538_v57, %v1217_v1  ;;  %v1844_v19 = vadd.f32 %v1784_v22, %v1723_v23  ;;  %v1845_v27 = vadd.f32 %v1785_v0, %v1724_v2  ;;  %v402_v53 = vmax.f32 %v271_v18, 0.0 }
 0x182   :  { %v4109_v62 = vsel %vm575_vm0, %v5788_v13, %v5787_v28  ;;  %v5789_v17 = vmov %v5788_v13  ;;  %v5790_v30 = vrot.slane %v3876_v32, 1  ;;  %v5791_v9 = vrot.slane %v3790_v60, 1 }
 0x183   :  { %v4114_v54 = vsel %vm575_vm0, 0.0, %v5789_v17  ;;  %v4123_v48 = vmin.f32 %v433_v25, 6.0  ;;  %v1004_v16 = vmul.f32 %v2912_v44, %v3772_v24  ;;  %v1005_v22 = vmul.f32 %v2912_v44, %v3767_v38  ;;  %v5797_v17 = vld [vmem:[#allocation15_spill] sm:$0xff] }
 0x184   :  { %v4121_v15 = vsel %vm768_vm1, %v5791_v9, %v5790_v30  ;;  %v5792_v49 = vmov %v5790_v30  ;;  %v1968_v2 = vadd.f32 %v1904_v39, %v1844_v19  ;;  %v1969_v23 = vadd.f32 %v1905_v37, %v1845_v27  ;;  %v5798_v27 = vld [vmem:[#allocation20_spill] sm:$0xff] }
 0x185   :  { %v4128_v1 = vsel %vm768_vm1, %v5792_v49, 0.0  ;;  %v4134_v57 = vmin.f32 %v402_v53, 6.0  ;;  %v1186_v0 = vmul.f32 %v2943_v4, %v3779_v20  ;;  %v4142_v28 = vmul.f32 %v2914_v45, %v4123_v48  ;;  %v350_v20 = vpop.f32.mrf.mxu2 }
 0x186   :  { %v4146_v24 = vmul.f32 %v2916_v46, %v4123_v48  ;;  %v2036_v38 = vadd.f32 %v3801_v63, %v1968_v2  ;;  %v2037_v39 = vadd.f32 %v3801_v63, %v1969_v23  ;;  %v1125_v19 = vadd.f32 %v5797_v17, %v1004_v16 }
 0x187   :  { %5793 = vst [vmem:[#allocation34_spill] sm:$0xff] %v4142_v28  ;;  %v4154_v37 = vmul.f32 %v2914_v45, %v4134_v57  ;;  %v4158_v25 = vmul.f32 %v2916_v46, %v4134_v57  ;;  %v1126_v53 = vadd.f32 %v5798_v27, %v1005_v22  ;;  %v1187_v49 = vmul.f32 %v2943_v4, %v3784_v51  ;;  %v5800_v51 = vld [vmem:[#allocation16_spill] sm:$0xff] }
 0x188   :  { %5794 = vst [vmem:[#allocation36_spill] sm:$0xff] %v4146_v24  ;;  %v2100_v30 = vmax.f32 %v2036_v38, 0.0  ;;  %v2101_v9 = vmax.f32 %v2037_v39, 0.0  ;;  %v1311_v2 = vmul.f32 %v2925_v52, %v3946_v10  ;;  %v1246_v23 = vadd.f32 %v1186_v0, %v1125_v19  ;;  %v5799_v39 = vld [vmem:[#allocation22_spill] sm:$0xff] }
 0x189   :  { %5795 = vst [vmem:[#allocation32_spill] sm:$0xff] %v4154_v37  ;;  %v1312_v18 = vmul.f32 %v2925_v52, %v3941_v21  ;;  %v1505_v42 = vmul.f32 %v2941_v3, %v3953_v56  ;;  %v1506_v16 = vmul.f32 %v2941_v3, %v3958_v34  ;;  %v1247_v38 = vadd.f32 %v1187_v49, %v1126_v53 }
 0x18a   :  { %5796 = vst [vmem:[#allocation35_spill] sm:$0xff] %v4158_v25  ;;  %v2164_v17 = vmin.f32 %v2100_v30, 6.0  ;;  %v2165_v22 = vmin.f32 %v2101_v9, 6.0  ;;  %v1440_v27 = vadd.f32 %v5799_v39, %v1311_v2  ;;  %v1632_v0 = vmul.f32 %v2949_v7, %v4114_v54  ;;  %v273_v39 = vpop.f32.mrf.mxu0 }
 0x18b   :  { %v1441_v13 = vadd.f32 %v5800_v51, %v1312_v18  ;;  %v1633_v19 = vmul.f32 %v2949_v7, %v4109_v62  ;;  %v1693_v28 = vmul.f32 %v2951_v8, %v3790_v60  ;;  %v1694_v30 = vmul.f32 %v2951_v8, %v3876_v32 }
 0x18c   :  { %v2222_v37 = vpack.c.bf16 %v2165_v22, %v2164_v17  ;;  %v1569_v24 = vadd.f32 %v1505_v42, %v1440_v27  ;;  %v1814_v53 = vmul.f32 %v3754_v55, %v4121_v15  ;;  %v1815_v18 = vmul.f32 %v3754_v55, %v4128_v1 }
 0x18d   :  { %v1570_v9 = vadd.f32 %v1506_v16, %v1441_v13  ;;  %v1753_v49 = vadd.f32 %v1693_v28, %v1632_v0  ;;  %v351_v2 = vadd.f32 %v3585_v47, %v350_v20  ;;  %v1754_v51 = vadd.f32 %v1694_v30, %v1633_v19 }
 0x18e   :  { %2314 = vmatmul.bf16.gmra.mxu1 %v2222_v37  ;;  %v1936_v25 = vadd.f32 %v1569_v24, %v1246_v23  ;;  %v274_v60 = vadd.f32 %v3585_v47, %v273_v39  ;;  %v5801_v42 = vrot.slane %v3966_v43, 7  ;;  %v5802_v32 = vrot.slane %v3878_v41, 7 }
 0x18f   :  { %v1874_v13 = vadd.f32 %v1814_v53, %v1753_v49  ;;  %v1937_v28 = vadd.f32 %v1570_v9, %v1247_v38  ;;  %v434_v16 = vmax.f32 %v351_v2, 0.0  ;;  %v1875_v37 = vadd.f32 %v1815_v18, %v1754_v51 }
 0x190   :  { %v4193_v17 = vsel %vm575_vm0, %v5802_v32, %v5801_v42  ;;  %v5803_v22 = vmov %v5802_v32  ;;  %v403_v27 = vmax.f32 %v274_v60, 0.0  ;;  %v5804_v24 = vrot.slane %v3966_v43, 1 }
 0x191   :  { %v4198_v20 = vsel %vm575_vm0, 0.0, %v5803_v22  ;;  %v5805_v23 = vrot.slane %v3878_v41, 1  ;;  %v2000_v38 = vadd.f32 %v1936_v25, %v1874_v13  ;;  %v4212_v53 = vmin.f32 %v434_v16, 6.0  ;;  %v5811_v22 = vld [vmem:[#allocation37_spill] sm:$0xff] }
 0x192   :  { %v5806_v19 = vmov %v5804_v24  ;;  %v976_v9 = vmul.f32 %v2912_v44, %v3862_v11  ;;  %v977_v49 = vmul.f32 %v2912_v44, %v3857_v6  ;;  %v2001_v18 = vadd.f32 %v1937_v28, %v1875_v37 }
 0x193   :  { %v4205_v0 = vsel %vm768_vm1, %v5805_v23, %v5804_v24  ;;  %v4210_v30 = vsel %vm768_vm1, %v5806_v19, 0.0  ;;  %v4218_v2 = vmin.f32 %v403_v27, 6.0  ;;  %v1158_v39 = vmul.f32 %v2943_v4, %v3869_v36  ;;  %v5812_v24 = vld [vmem:[#allocation19_spill] sm:$0xff] }
 0x194   :  { %v1159_v51 = vmul.f32 %v2943_v4, %v3874_v33  ;;  %v2068_v60 = vadd.f32 %v3801_v63, %v2000_v38  ;;  %v4229_v11 = vmul.f32 %v2914_v45, %v4212_v53  ;;  %v2069_v6 = vadd.f32 %v3801_v63, %v2001_v18 }
 0x195   :  { %v4234_v32 = vmul.f32 %v2916_v46, %v4212_v53  ;;  %v4240_v28 = vmul.f32 %v2914_v45, %v4218_v2  ;;  %v4244_v16 = vmul.f32 %v2916_v46, %v4218_v2  ;;  %v1097_v37 = vadd.f32 %v5811_v22, %v976_v9  ;;  %v5813_v9 = vld [vmem:[#allocation41_spill] sm:$0xff]  ;;  %v353_v22 = vpop.f32.mrf.mxu2 }
 0x196   :  { %5807 = vst [vmem:[#allocation38_spill] sm:$0xff] %v4229_v11  ;;  %v2132_v13 = vmax.f32 %v2068_v60, 0.0  ;;  %v2133_v27 = vmax.f32 %v2069_v6, 0.0  ;;  %v1098_v23 = vadd.f32 %v5812_v24, %v977_v49  ;;  %v1281_v19 = vmul.f32 %v2925_v52, %v4030_v5 }
 0x197   :  { %5808 = vst [vmem:[#allocation39_spill] sm:$0xff] %v4234_v32  ;;  %v1282_v38 = vmul.f32 %v2925_v52, %v4025_v35  ;;  %v1218_v60 = vadd.f32 %v1158_v39, %v1097_v37  ;;  %v1475_v33 = vmul.f32 %v2941_v3, %v4037_v50  ;;  %v1476_v36 = vmul.f32 %v2941_v3, %v4042_v61 }
 0x198   :  { %5809 = vst [vmem:[#allocation15_spill] sm:$0xff] %v4240_v28  ;;  %v2196_v18 = vmin.f32 %v2132_v13, 6.0  ;;  %v2197_v42 = vmin.f32 %v2133_v27, 6.0  ;;  %v1219_v25 = vadd.f32 %v1159_v51, %v1098_v23  ;;  %v1410_v6 = vadd.f32 %v5813_v9, %v1281_v19  ;;  %v275_v28 = vpop.f32.mrf.mxu0 }
 0x199   :  { %5810 = vst [vmem:[#allocation20_spill] sm:$0xff] %v4244_v16  ;;  %v1411_v49 = vadd.f32 %v3826_v40, %v1282_v38  ;;  %v1604_v24 = vmul.f32 %v2949_v7, %v4198_v20  ;;  %v1605_v13 = vmul.f32 %v2949_v7, %v4193_v17  ;;  %v1665_v39 = vmul.f32 %v2951_v8, %v3878_v41 }
 0x19a   :  { %v1666_v37 = vmul.f32 %v2951_v8, %v3966_v43  ;;  %v2238_v27 = vpack.c.bf16 %v2197_v42, %v2196_v18  ;;  %v1539_v51 = vadd.f32 %v1475_v33, %v1410_v6  ;;  %v1786_v40 = vmul.f32 %v3754_v55, %v4205_v0 }
 0x19b   :  { %v1540_v23 = vadd.f32 %v1476_v36, %v1411_v49  ;;  %v1725_v19 = vadd.f32 %v1665_v39, %v1604_v24  ;;  %v1787_v9 = vmul.f32 %v3754_v55, %v4210_v30  ;;  %v354_v11 = vadd.f32 %v3585_v47, %v353_v22 }
 0x19c   :  { %v1726_v38 = vadd.f32 %v1666_v37, %v1605_v13  ;;  %2394 = vmatmul.bf16.gmra.mxu3 %v2238_v27  ;;  %v1906_v16 = vadd.f32 %v1539_v51, %v1218_v60  ;;  %v276_v32 = vadd.f32 %v3585_v47, %v275_v28  ;;  %v5814_v43 = vrot.slane %v4048_v12, 7 }
 0x19d   :  { %v1907_v41 = vadd.f32 %v1540_v23, %v1219_v25  ;;  %v5815_v42 = vrot.slane %v3962_v31, 7  ;;  %v1846_v33 = vadd.f32 %v1786_v40, %v1725_v19  ;;  %v435_v6 = vmax.f32 %v354_v11, 0.0  ;;  %v5820_v23 = vld [vmem:[#allocation17_spill] sm:$0xff] }
 0x19e   :  { %v1847_v18 = vadd.f32 %v1787_v9, %v1726_v38  ;;  %v404_v22 = vmax.f32 %v276_v32, 0.0  ;;  %v5817_v25 = vrot.slane %v4048_v12, 1  ;;  %v5818_v47 = vrot.slane %v3962_v31, 1 }
 0x19f   :  { %v4277_v36 = vsel %vm575_vm0, %v5815_v42, %v5814_v43  ;;  %v5816_v49 = vmov %v5815_v42  ;;  %v1006_v11 = vmul.f32 %v2912_v44, %v3946_v10  ;;  %v1970_v39 = vadd.f32 %v1906_v16, %v1846_v33 }
 0x1a0   :  { %v4282_v24 = vsel %vm575_vm0, 0.0, %v5816_v49  ;;  %v4289_v28 = vsel %vm768_vm1, %v5818_v47, %v5817_v25  ;;  %v5819_v60 = vmov %v5817_v25  ;;  %v1971_v37 = vadd.f32 %v1907_v41, %v1847_v18  ;;  %v5824_v49 = vld [vmem:[#allocation24_spill] sm:$0xff] }
 0x1a1   :  { %v4294_v13 = vsel %vm768_vm1, %v5819_v60, 0.0  ;;  %v4298_v27 = vmin.f32 %v435_v6, 6.0  ;;  %v1007_v32 = vmul.f32 %v2912_v44, %v3941_v21  ;;  %v4302_v51 = vmin.f32 %v404_v22, 6.0 }
 0x1a2   :  { %v1127_v40 = vadd.f32 %v5820_v23, %v1006_v11  ;;  %v1188_v19 = vmul.f32 %v2943_v4, %v3953_v56  ;;  %v1189_v38 = vmul.f32 %v2943_v4, %v3958_v34  ;;  %v2038_v9 = vadd.f32 %v3801_v63, %v1970_v39  ;;  %v2625_v56 = vld [vmem:[#allocation2] sm:$0xff] }
 0x1a3   :  { %v2039_v10 = vadd.f32 %v3801_v63, %v1971_v37  ;;  %v4315_v21 = vmul.f32 %v2914_v45, %v4298_v27  ;;  %v4319_v43 = vmul.f32 %v2916_v46, %v4298_v27  ;;  %v4325_v18 = vmul.f32 %v2914_v45, %v4302_v51 }
 0x1a4   :  { %v2102_v42 = vmax.f32 %v2038_v9, 0.0  ;;  %v4329_v6 = vmul.f32 %v2916_v46, %v4302_v51  ;;  %v1128_v22 = vadd.f32 %v5824_v49, %v1007_v32  ;;  %v1248_v25 = vadd.f32 %v1188_v19, %v1127_v40  ;;  %v4343_v9 = vld [vmem:[%s5631_s6] ss:$0 sm:$0xff] }
 0x1a5   :  { %5821 = vst [vmem:[#allocation22_spill] sm:$0xff] %v4315_v21  ;;  %v2103_v33 = vmax.f32 %v2039_v10, 0.0  ;;  %v1313_v47 = vmul.f32 %v2925_v52, %v4114_v54  ;;  %v1314_v60 = vmul.f32 %v2925_v52, %v4109_v62  ;;  %v1507_v37 = vmul.f32 %v2941_v3, %v4121_v15 }
 0x1a6   :  { %5822 = vst [vmem:[#allocation16_spill] sm:$0xff] %v4319_v43  ;;  %v2166_v11 = vmin.f32 %v2102_v42, 6.0  ;;  %v1508_v23 = vmul.f32 %v2941_v3, %v4128_v1  ;;  %v1249_v32 = vadd.f32 %v1189_v38, %v1128_v22  ;;  %v1634_v10 = vmul.f32 %v2949_v7, %v4282_v24  ;;  %v355_v42 = vpop.f32.mrf.mxu2 }
 0x1a7   :  { %5823 = vst [vmem:[#allocation37_spill] sm:$0xff] %v4325_v18  ;;  %v2167_v39 = vmin.f32 %v2103_v33, 6.0  ;;  %v1442_v40 = vadd.f32 %v3816_v58, %v1313_v47  ;;  %v1443_v19 = vadd.f32 %v3896_v14, %v1314_v60  ;;  %v2285_v33 = vpop.f32.mrf.mxu1  ;;  %v1635_v41 = vmul.f32 %v2949_v7, %v4277_v36 }
 0x1a8   :  { %v1695_v16 = vmul.f32 %v2951_v8, %v3962_v31  ;;  %v1696_v34 = vmul.f32 %v2951_v8, %v4048_v12  ;;  %v1816_v58 = vmul.f32 %v3754_v55, %v4289_v28  ;;  %v1817_v14 = vmul.f32 %v3754_v55, %v4294_v13 }
 0x1a9   :  { %v2223_v49 = vpack.c.bf16 %v2167_v39, %v2166_v11  ;;  %v1571_v38 = vadd.f32 %v1507_v37, %v1442_v40  ;;  %v1572_v22 = vadd.f32 %v1508_v23, %v1443_v19  ;;  %v4362_v11 = vld [vmem:[%s5627_s2] ss:$0 sm:$0xff]  ;;  %v2286_v12 = vadd.f32 %v4343_v9, %v2285_v33  ;;  %v278_v39 = vpop.f32.mrf.mxu0 }
 0x1aa   :  { %v1755_v47 = vadd.f32 %v1695_v16, %v1634_v10  ;;  %v1756_v60 = vadd.f32 %v1696_v34, %v1635_v41  ;;  %v356_v31 = vadd.f32 %v4362_v11, %v355_v42  ;;  %v279_v40 = vadd.f32 %v4362_v11, %v278_v39 }
 0x1ab   :  { %2319 = vmatmul.bf16.gmra.mxu1 %v2223_v49  ;;  %v1938_v37 = vadd.f32 %v1571_v38, %v1248_v25  ;;  %v1939_v23 = vadd.f32 %v1572_v22, %v1249_v32  ;;  %v5825_v19 = vrot.slane %v4134_v57, 7  ;;  %v5826_v49 = vrot.slane %v4050_v29, 7 }
 0x1ac   :  { %v1876_v41 = vadd.f32 %v1816_v58, %v1755_v47  ;;  %v1877_v34 = vadd.f32 %v1817_v14, %v1756_v60  ;;  %v436_v10 = vmax.f32 %v356_v31, 0.0  ;;  %v2445_v21 = vadd.f32 %v2625_v56, %v2286_v12 }
 0x1ad   :  { %v4372_v16 = vsel %vm575_vm0, %v5826_v49, %v5825_v19  ;;  %v405_v42 = vmax.f32 %v279_v40, 0.0  ;;  %v5827_v33 = vmov %v5826_v49  ;;  %v5828_v32 = vrot.slane %v4134_v57, 1 }
 0x1ae   :  { %v4377_v25 = vsel %vm575_vm0, 0.0, %v5827_v33  ;;  %v5829_v38 = vrot.slane %v4050_v29, 1  ;;  %v2002_v14 = vadd.f32 %v1938_v37, %v1876_v41  ;;  %v2003_v56 = vadd.f32 %v1939_v23, %v1877_v34  ;;  %2509 = vst [vmem:[#allocation10] sm:$0xff] %v2445_v21  ;;  %v5835_v33 = vld [vmem:[#allocation40_spill] sm:$0xff]  ;;  %v5836_v21 = vld [vmem:[#allocation23_spill] sm:$0xff] }
 0x1af   :  { %v5830_v39 = vmov %v5828_v32  ;;  %v4391_v47 = vmin.f32 %v436_v10, 6.0  ;;  %v978_v60 = vmul.f32 %v2912_v44, %v4030_v5  ;;  %v4395_v31 = vmin.f32 %v405_v42, 6.0 }
 0x1b0   :  { %v4384_v22 = vsel %vm768_vm1, %v5829_v38, %v5828_v32  ;;  %v4389_v58 = vsel %vm768_vm1, %v5830_v39, 0.0  ;;  %v979_v12 = vmul.f32 %v2912_v44, %v4025_v35  ;;  %v1160_v40 = vmul.f32 %v2943_v4, %v4037_v50 }
 0x1b1   :  { %v1161_v19 = vmul.f32 %v2943_v4, %v4042_v61  ;;  %v2070_v37 = vadd.f32 %v3801_v63, %v2002_v14  ;;  %v2071_v23 = vadd.f32 %v3801_v63, %v2003_v56  ;;  %v4409_v5 = vmul.f32 %v2914_v45, %v4391_v47 }
 0x1b2   :  { %v4413_v35 = vmul.f32 %v2916_v46, %v4391_v47  ;;  %v4419_v10 = vmul.f32 %v2914_v45, %v4395_v31  ;;  %v4423_v42 = vmul.f32 %v2916_v46, %v4395_v31  ;;  %v1099_v32 = vadd.f32 %v5835_v33, %v978_v60  ;;  %v2287_v33 = vpop.f32.mrf.mxu1 }
 0x1b3   :  { %5831 = vst [vmem:[#allocation19_spill] sm:$0xff] %v4409_v5  ;;  %v2134_v41 = vmax.f32 %v2070_v37, 0.0  ;;  %v2135_v34 = vmax.f32 %v2071_v23, 0.0  ;;  %v1100_v38 = vadd.f32 %v3822_v26, %v979_v12  ;;  %v1283_v39 = vmul.f32 %v2925_v52, %v4198_v20  ;;  %v358_v12 = vpop.f32.mrf.mxu2 }
 0x1b4   :  { %5832 = vst [vmem:[#allocation41_spill] sm:$0xff] %v4413_v35  ;;  %v1284_v14 = vmul.f32 %v2925_v52, %v4193_v17  ;;  %v1477_v23 = vmul.f32 %v2941_v3, %v4205_v0  ;;  %v1478_v61 = vmul.f32 %v2941_v3, %v4210_v30  ;;  %v1220_v50 = vadd.f32 %v1160_v40, %v1099_v32 }
 0x1b5   :  { %5833 = vst [vmem:[#allocation17_spill] sm:$0xff] %v4419_v10  ;;  %v2198_v56 = vmin.f32 %v2134_v41, 6.0  ;;  %v2199_v37 = vmin.f32 %v2135_v34, 6.0  ;;  %v1221_v49 = vadd.f32 %v1161_v19, %v1100_v38  ;;  %v1412_v60 = vadd.f32 %v5836_v21, %v1283_v39 }
 0x1b6   :  { %5834 = vst [vmem:[#allocation24_spill] sm:$0xff] %v4423_v42  ;;  %v1413_v26 = vadd.f32 %v3993_v59, %v1284_v14  ;;  %v1606_v5 = vmul.f32 %v2949_v7, %v4377_v25  ;;  %v1607_v41 = vmul.f32 %v2949_v7, %v4372_v16  ;;  %v1667_v34 = vmul.f32 %v2951_v8, %v4050_v29  ;;  %v280_v42 = vpop.f32.mrf.mxu0 }
 0x1b7   :  { %v2239_v10 = vpack.c.bf16 %v2199_v37, %v2198_v56  ;;  %v1541_v18 = vadd.f32 %v1477_v23, %v1412_v60  ;;  %v1668_v19 = vmul.f32 %v2951_v8, %v4134_v57  ;;  %v1788_v59 = vmul.f32 %v3754_v55, %v4384_v22  ;;  %v2626_v57 = vld [vmem:[#allocation2 + $0x8] sm:$0xff] }
 0x1b8   :  { %v1542_v40 = vadd.f32 %v1478_v61, %v1413_v26  ;;  %v1727_v21 = vadd.f32 %v1667_v34, %v1606_v5  ;;  %v1789_v32 = vmul.f32 %v3754_v55, %v4389_v58  ;;  %v359_v38 = vadd.f32 %v4362_v11, %v358_v12 }
 0x1b9   :  { %2399 = vmatmul.bf16.gmra.mxu3 %v2239_v10  ;;  %v2288_v39 = vadd.f32 %v4343_v9, %v2287_v33  ;;  %v1728_v14 = vadd.f32 %v1668_v19, %v1607_v41  ;;  %v1908_v29 = vadd.f32 %v1541_v18, %v1220_v50  ;;  %v281_v61 = vadd.f32 %v4362_v11, %v280_v42 }
 0x1ba   :  { %v1909_v56 = vadd.f32 %v1542_v40, %v1221_v49  ;;  %v1848_v37 = vadd.f32 %v1788_v59, %v1727_v21  ;;  %v437_v23 = vmax.f32 %v359_v38, 0.0  ;;  %v5837_v26 = vrot.slane %v4212_v53, 7 }
 0x1bb   :  { %v2446_v60 = vadd.f32 %v2626_v57, %v2288_v39  ;;  %v5838_v5 = vrot.slane %v4123_v48, 7  ;;  %v1849_v55 = vadd.f32 %v1789_v32, %v1728_v14  ;;  %v406_v12 = vmax.f32 %v281_v61, 0.0 }
 0x1bc   :  { %v5840_v49 = vrot.slane %v4212_v53, 1  ;;  %v5841_v50 = vrot.slane %v4123_v48, 1  ;;  %v1972_v41 = vadd.f32 %v1908_v29, %v1848_v37  ;;  %v4471_v34 = vmin.f32 %v437_v23, 6.0  ;;  %v360_v29 = vpop.f32.mrf.mxu2 }
 0x1bd   :  { %v4457_v10 = vsel %vm575_vm0, %v5838_v5, %v5837_v26  ;;  %v5839_v33 = vmov %v5838_v5  ;;  %2510 = vst [vmem:[#allocation10 + $0x8] sm:$0xff] %v2446_v60  ;;  %v1008_v59 = vmul.f32 %v2912_v44, %v4114_v54  ;;  %v1973_v21 = vadd.f32 %v1909_v56, %v1849_v55  ;;  %v5848_v26 = vld [vmem:[#allocation21_spill] sm:$0xff]  ;;  %v5849_v55 = vld [vmem:[#allocation26_spill] sm:$0xff] }
 0x1be   :  { %v4462_v18 = vsel %vm575_vm0, 0.0, %v5839_v33  ;;  %v4469_v42 = vsel %vm768_vm1, %v5841_v50, %v5840_v49  ;;  %5842 = vst [vmem:[#allocation40_spill] sm:$0xff] %v4471_v34  ;;  %v5843_v40 = vmov %v5840_v49  ;;  %v4480_v32 = vmin.f32 %v406_v12, 6.0 }
 0x1bf   :  { %v4476_v19 = vsel %vm768_vm1, %v5843_v40, 0.0  ;;  %v1009_v38 = vmul.f32 %v2912_v44, %v4109_v62  ;;  %v1190_v39 = vmul.f32 %v2943_v4, %v4121_v15  ;;  %v2040_v14 = vadd.f32 %v3801_v63, %v1972_v41 }
 0x1c0   :  { %v4491_v37 = vmul.f32 %v2914_v45, %v4471_v34  ;;  %v2041_v54 = vadd.f32 %v3801_v63, %v1973_v21  ;;  %v4496_v56 = vmul.f32 %v2916_v46, %v4471_v34  ;;  %v4502_v57 = vmul.f32 %v2914_v45, %v4480_v32 }
 0x1c1   :  { %v2104_v23 = vmax.f32 %v2040_v14, 0.0  ;;  %v4506_v60 = vmul.f32 %v2916_v46, %v4480_v32  ;;  %v1129_v5 = vadd.f32 %v5848_v26, %v1008_v59  ;;  %v1130_v12 = vadd.f32 %v5849_v55, %v1009_v38  ;;  %v5850_v59 = vld [vmem:[#allocation31_spill] sm:$0xff]  ;;  %v2365_v26 = vpop.f32.mrf.mxu3 }
 0x1c2   :  { %5844 = vst [vmem:[#allocation23_spill] sm:$0xff] %v4491_v37  ;;  %v2105_v63 = vmax.f32 %v2041_v54, 0.0  ;;  %v1191_v33 = vmul.f32 %v2943_v4, %v4128_v1  ;;  %v1315_v49 = vmul.f32 %v2925_v52, %v4282_v24  ;;  %v1316_v40 = vmul.f32 %v2925_v52, %v4277_v36  ;;  %v5851_v1 = vld [vmem:[#allocation33_spill] sm:$0xff] }
 0x1c3   :  { %5845 = vst [vmem:[#allocation42_spill] sm:$0xff] %v4496_v56  ;;  %v2168_v50 = vmin.f32 %v2104_v23, 6.0  ;;  %v1250_v41 = vadd.f32 %v1190_v39, %v1129_v5  ;;  %v1509_v21 = vmul.f32 %v2941_v3, %v4289_v28  ;;  %v1510_v38 = vmul.f32 %v2941_v3, %v4294_v13  ;;  %v2628_v56 = vld [vmem:[#allocation2 + $0x100] sm:$0xff] }
 0x1c4   :  { %5846 = vst [vmem:[#allocation43_spill] sm:$0xff] %v4502_v57  ;;  %v2169_v14 = vmin.f32 %v2105_v63, 6.0  ;;  %v1251_v61 = vadd.f32 %v1191_v33, %v1130_v12  ;;  %v1444_v54 = vadd.f32 %v5850_v59, %v1315_v49  ;;  %v1445_v55 = vadd.f32 %v5851_v1, %v1316_v40  ;;  %v2290_v63 = vpop.f32.mrf.mxu1  ;;  %v4530_v59 = vld [vmem:[#allocation7 + $0x8] ss:$0 sm:$0xff] }
 0x1c5   :  { %5847 = vst [vmem:[#allocation44_spill] sm:$0xff] %v4506_v60  ;;  %v1636_v23 = vmul.f32 %v2949_v7, %v4462_v18  ;;  %v1637_v39 = vmul.f32 %v2949_v7, %v4457_v10  ;;  %v1697_v5 = vmul.f32 %v2951_v8, %v4123_v48  ;;  %v1698_v49 = vmul.f32 %v2951_v8, %v4212_v53  ;;  %v283_v53 = vpop.f32.mrf.mxu0 }
 0x1c6   :  { %v2224_v12 = vpack.c.bf16 %v2169_v14, %v2168_v50  ;;  %v1573_v33 = vadd.f32 %v1509_v21, %v1444_v54  ;;  %v1818_v40 = vmul.f32 %v4530_v59, %v4469_v42  ;;  %v1574_v1 = vadd.f32 %v1510_v38, %v1445_v55 }
 0x1c7   :  { %v1757_v15 = vadd.f32 %v1697_v5, %v1636_v23  ;;  %v1819_v62 = vmul.f32 %v4530_v59, %v4476_v19  ;;  %v2366_v37 = vadd.f32 %v4343_v9, %v2365_v26  ;;  %v1758_v48 = vadd.f32 %v1698_v49, %v1637_v39  ;;  %v2629_v5 = vld [vmem:[#allocation2 + $0x10] sm:$0xff] }
 0x1c8   :  { %2324 = vmatmul.bf16.gmra.mxu1 %v2224_v12  ;;  %v1940_v57 = vadd.f32 %v1573_v33, %v1250_v41  ;;  %v361_v50 = vadd.f32 %v4362_v11, %v360_v29  ;;  %v2291_v21 = vadd.f32 %v4343_v9, %v2290_v63  ;;  %v1941_v54 = vadd.f32 %v1574_v1, %v1251_v61 }
 0x1c9   :  { %v1878_v14 = vadd.f32 %v1818_v40, %v1757_v15  ;;  %v2477_v60 = vadd.f32 %v2628_v56, %v2366_v37  ;;  %v284_v38 = vadd.f32 %v4362_v11, %v283_v53  ;;  %v1879_v55 = vadd.f32 %v1819_v62, %v1758_v48  ;;  %v4571_v40 = vld [vmem:[%s5629_s4] ss:$0 sm:$0xff] }
 0x1ca   :  { %v438_v23 = vmax.f32 %v361_v50, 0.0  ;;  %v2447_v35 = vadd.f32 %v2629_v5, %v2291_v21  ;;  %v5852_v26 = vrot.slane %v4302_v51, 7  ;;  %v5853_v39 = vrot.slane %v4218_v2, 7 }
 0x1cb   :  { %v2004_v29 = vadd.f32 %v1940_v57, %v1878_v14  ;;  %2541 = vst [vmem:[#allocation10 + $0x100] sm:$0xff] %v2477_v60  ;;  %v407_v63 = vmax.f32 %v284_v38, 0.0  ;;  %v5855_v56 = vrot.slane %v4302_v51, 1  ;;  %v5856_v62 = vrot.slane %v4218_v2, 1 }
 0x1cc   :  { %v4545_v41 = vsel %vm575_vm0, %v5853_v39, %v5852_v26  ;;  %v5854_v61 = vmov %v5853_v39  ;;  %v2005_v12 = vadd.f32 %v1941_v54, %v1879_v55  ;;  %v4559_v33 = vmin.f32 %v438_v23, 6.0  ;;  %2511 = vst [vmem:[#allocation10 + $0x10] sm:$0xff] %v2447_v35  ;;  %v5864_v26 = vld [vmem:[#allocation30_spill] sm:$0xff] }
 0x1cd   :  { %v4550_v37 = vsel %vm575_vm0, 0.0, %v5854_v61  ;;  %v4557_v15 = vsel %vm768_vm1, %v5856_v62, %v5855_v56  ;;  %v5858_v57 = vmov %v5855_v56  ;;  %v980_v49 = vmul.f32 %v2912_v44, %v4198_v20 }
 0x1ce   :  { %5857 = vst [vmem:[#allocation21_spill] sm:$0xff] %v4559_v33  ;;  %v4564_v60 = vsel %vm768_vm1, %v5858_v57, 0.0  ;;  %v2072_v1 = vadd.f32 %v4571_v40, %v2004_v29  ;;  %v4574_v48 = vmin.f32 %v407_v63, 6.0  ;;  %v981_v35 = vmul.f32 %v2912_v44, %v4193_v17  ;;  %v5865_v63 = vld [vmem:[#allocation25_spill] sm:$0xff]  ;;  %v5866_v17 = vld [vmem:[#allocation18_spill] sm:$0xff] }
 0x1cf   :  { %v1162_v50 = vmul.f32 %v2943_v4, %v4205_v0  ;;  %v2073_v21 = vadd.f32 %v4571_v40, %v2005_v12  ;;  %v4585_v14 = vmul.f32 %v2914_v45, %v4559_v33  ;;  %v4589_v38 = vmul.f32 %v2916_v46, %v4559_v33  ;;  %v2632_v33 = vld [vmem:[#allocation2 + $0x18] sm:$0xff] }
 0x1d0   :  { %5859 = vst [vmem:[#allocation26_spill] sm:$0xff] %v4574_v48  ;;  %v2136_v54 = vmax.f32 %v2072_v1, 0.0  ;;  %v4595_v23 = vmul.f32 %v2914_v45, %v4574_v48  ;;  %v4599_v5 = vmul.f32 %v2916_v46, %v4574_v48  ;;  %v1101_v39 = vadd.f32 %v5864_v26, %v980_v49  ;;  %v363_v26 = vpop.f32.mrf.mxu2 }
 0x1d1   :  { %5860 = vst [vmem:[#allocation31_spill] sm:$0xff] %v4585_v14  ;;  %v2137_v0 = vmax.f32 %v2073_v21, 0.0  ;;  %v1102_v61 = vadd.f32 %v5865_v63, %v981_v35  ;;  %v1163_v56 = vmul.f32 %v2943_v4, %v4210_v30  ;;  %v1285_v62 = vmul.f32 %v2925_v52, %v4377_v25 }
 0x1d2   :  { %5861 = vst [vmem:[#allocation33_spill] sm:$0xff] %v4589_v38  ;;  %v2200_v29 = vmin.f32 %v2136_v54, 6.0  ;;  %v1222_v57 = vadd.f32 %v1162_v50, %v1101_v39  ;;  %v1286_v1 = vmul.f32 %v2925_v52, %v4372_v16  ;;  %v1479_v21 = vmul.f32 %v2941_v3, %v4384_v22  ;;  %v2367_v54 = vpop.f32.mrf.mxu3  ;;  %v2631_v38 = vld [vmem:[#allocation2 + $0x108] sm:$0xff] }
 0x1d3   :  { %5862 = vst [vmem:[#allocation45_spill] sm:$0xff] %v4595_v23  ;;  %v2201_v12 = vmin.f32 %v2137_v0, 6.0  ;;  %v1223_v55 = vadd.f32 %v1163_v56, %v1102_v61  ;;  %v1414_v49 = vadd.f32 %v5866_v17, %v1285_v62  ;;  %v1480_v35 = vmul.f32 %v2941_v3, %v4389_v58  ;;  %v5867_v0 = vld [vmem:[#allocation35_spill] sm:$0xff]  ;;  %v2292_v61 = vpop.f32.mrf.mxu1  ;;  %v285_v56 = vpop.f32.mrf.mxu0 }
 0x1d4   :  { %5863 = vst [vmem:[#allocation46_spill] sm:$0xff] %v4599_v5  ;;  %v1608_v30 = vmul.f32 %v2949_v7, %v4550_v37  ;;  %v1415_v50 = vadd.f32 %v5867_v0, %v1286_v1  ;;  %v1609_v39 = vmul.f32 %v2949_v7, %v4545_v41  ;;  %v1669_v20 = vmul.f32 %v2951_v8, %v4218_v2 }
 0x1d5   :  { %v2240_v63 = vpack.c.bf16 %v2201_v12, %v2200_v29  ;;  %v1543_v17 = vadd.f32 %v1479_v21, %v1414_v49  ;;  %v1670_v62 = vmul.f32 %v2951_v8, %v4302_v51  ;;  %v1790_v53 = vmul.f32 %v4530_v59, %v4557_v15 }
 0x1d6   :  { %v1791_v29 = vmul.f32 %v4530_v59, %v4564_v60  ;;  %v1544_v12 = vadd.f32 %v1480_v35, %v1415_v50  ;;  %v1729_v1 = vadd.f32 %v1669_v20, %v1608_v30  ;;  %v2368_v0 = vadd.f32 %v4343_v9, %v2367_v54 }
 0x1d7   :  { %2404 = vmatmul.bf16.gmra.mxu3 %v2240_v63  ;;  %v364_v23 = vadd.f32 %v4362_v11, %v363_v26  ;;  %v1730_v2 = vadd.f32 %v1670_v62, %v1609_v39  ;;  %v1910_v14 = vadd.f32 %v1543_v17, %v1222_v57  ;;  %v2293_v21 = vadd.f32 %v4343_v9, %v2292_v61 }
 0x1d8   :  { %v286_v49 = vadd.f32 %v4362_v11, %v285_v56  ;;  %v1850_v51 = vadd.f32 %v1790_v53, %v1729_v1  ;;  %v1911_v5 = vadd.f32 %v1544_v12, %v1223_v55  ;;  %v2478_v48 = vadd.f32 %v2631_v38, %v2368_v0 }
 0x1d9   :  { %v439_v43 = vmax.f32 %v364_v23, 0.0  ;;  %v1851_v34 = vadd.f32 %v1791_v29, %v1730_v2  ;;  %v2448_v63 = vadd.f32 %v2632_v33, %v2293_v21  ;;  %v5868_v20 = vrot.slane %v4391_v47, 7 }
 0x1da   :  { %v408_v35 = vmax.f32 %v286_v49, 0.0  ;;  %v5869_v30 = vrot.slane %v4298_v27, 7  ;;  %v1974_v57 = vadd.f32 %v1910_v14, %v1850_v51  ;;  %2542 = vst [vmem:[#allocation10 + $0x108] sm:$0xff] %v2478_v48  ;;  %v5871_v55 = vrot.slane %v4391_v47, 1  ;;  %v5878_v49 = vld [vmem:[#allocation28_spill] sm:$0xff] }
 0x1db   :  { %v4638_v26 = vmin.f32 %v439_v43, 6.0  ;;  %v5872_v33 = vrot.slane %v4298_v27, 1  ;;  %v1975_v50 = vadd.f32 %v1911_v5, %v1851_v34  ;;  %2512 = vst [vmem:[#allocation10 + $0x18] sm:$0xff] %v2448_v63  ;;  %v1010_v14 = vmul.f32 %v2912_v44, %v4282_v24 }
 0x1dc   :  { %v4636_v54 = vsel %vm575_vm0, %v5869_v30, %v5868_v20  ;;  %v5870_v53 = vmov %v5869_v30  ;;  %v4652_v39 = vmin.f32 %v408_v35, 6.0  ;;  %v5873_v48 = vmov %v5871_v55  ;;  %v5879_v30 = vld [vmem:[#allocation29_spill] sm:$0xff] }
 0x1dd   :  { %v4643_v38 = vsel %vm575_vm0, 0.0, %v5870_v53  ;;  %v4650_v23 = vsel %vm768_vm1, %v5872_v33, %v5871_v55  ;;  %v4657_v43 = vsel %vm768_vm1, %v5873_v48, 0.0  ;;  %v2042_v61 = vadd.f32 %v4571_v40, %v1974_v57 }
 0x1de   :  { %v4666_v34 = vmul.f32 %v2914_v45, %v4638_v26  ;;  %v2043_v5 = vadd.f32 %v4571_v40, %v1975_v50  ;;  %v4671_v62 = vmul.f32 %v2916_v46, %v4638_v26  ;;  %v4677_v1 = vmul.f32 %v2914_v45, %v4652_v39 }
 0x1df   :  { %v2106_v12 = vmax.f32 %v2042_v61, 0.0  ;;  %v4681_v0 = vmul.f32 %v2916_v46, %v4652_v39  ;;  %v1011_v2 = vmul.f32 %v2912_v44, %v4277_v36  ;;  %v1131_v51 = vadd.f32 %v5878_v49, %v1010_v14  ;;  %v5880_v14 = vld [vmem:[#allocation36_spill] sm:$0xff]  ;;  %v5881_v61 = vld [vmem:[#allocation39_spill] sm:$0xff]  ;;  %v365_v49 = vpop.f32.mrf.mxu2 }
 0x1e0   :  { %5874 = vst [vmem:[#allocation30_spill] sm:$0xff] %v4666_v34  ;;  %v2107_v21 = vmax.f32 %v2043_v5, 0.0  ;;  %v1192_v63 = vmul.f32 %v2943_v4, %v4289_v28  ;;  %v1193_v35 = vmul.f32 %v2943_v4, %v4294_v13  ;;  %v1317_v53 = vmul.f32 %v2925_v52, %v4462_v18 }
 0x1e1   :  { %5875 = vst [vmem:[#allocation25_spill] sm:$0xff] %v4671_v62  ;;  %v2170_v20 = vmin.f32 %v2106_v12, 6.0  ;;  %v1132_v57 = vadd.f32 %v5879_v30, %v1011_v2  ;;  %v1318_v55 = vmul.f32 %v2925_v52, %v4457_v10  ;;  %v1511_v50 = vmul.f32 %v2941_v3, %v4469_v42  ;;  %v2370_v2 = vpop.f32.mrf.mxu3 }
 0x1e2   :  { %5876 = vst [vmem:[#allocation18_spill] sm:$0xff] %v4677_v1  ;;  %v2171_v33 = vmin.f32 %v2107_v21, 6.0  ;;  %v1252_v36 = vadd.f32 %v1192_v63, %v1131_v51  ;;  %v1512_v28 = vmul.f32 %v2941_v3, %v4476_v19  ;;  %v1446_v13 = vadd.f32 %v5880_v14, %v1317_v53  ;;  %v2634_v1 = vld [vmem:[#allocation2 + $0x20] sm:$0xff] }
 0x1e3   :  { %5877 = vst [vmem:[#allocation35_spill] sm:$0xff] %v4681_v0  ;;  %v1253_v48 = vadd.f32 %v1193_v35, %v1132_v57  ;;  %v1447_v5 = vadd.f32 %v5881_v61, %v1318_v55  ;;  %v1638_v12 = vmul.f32 %v2949_v7, %v4643_v38  ;;  %v1639_v21 = vmul.f32 %v2949_v7, %v4636_v54  ;;  %v2295_v35 = vpop.f32.mrf.mxu1  ;;  %v2636_v0 = vld [vmem:[#allocation2 + $0x28] sm:$0xff] }
 0x1e4   :  { %v2225_v30 = vpack.c.bf16 %v2171_v33, %v2170_v20  ;;  %v1699_v51 = vmul.f32 %v2951_v8, %v4298_v27  ;;  %v1700_v63 = vmul.f32 %v2951_v8, %v4391_v47  ;;  %v1575_v57 = vadd.f32 %v1511_v50, %v1446_v13  ;;  %v288_v27 = vpop.f32.mrf.mxu0 }
 0x1e5   :  { %v1576_v53 = vadd.f32 %v1512_v28, %v1447_v5  ;;  %v1820_v55 = vmul.f32 %v4530_v59, %v4650_v23  ;;  %v1821_v14 = vmul.f32 %v4530_v59, %v4657_v43  ;;  %v2371_v61 = vadd.f32 %v4343_v9, %v2370_v2  ;;  %v2633_v5 = vld [vmem:[#allocation2 + $0x110] sm:$0xff] }
 0x1e6   :  { %2329 = vmatmul.bf16.gmra.mxu1 %v2225_v30  ;;  %v1759_v20 = vadd.f32 %v1699_v51, %v1638_v12  ;;  %v1760_v33 = vadd.f32 %v1700_v63, %v1639_v21  ;;  %v366_v17 = vadd.f32 %v4362_v11, %v365_v49  ;;  %v1942_v56 = vadd.f32 %v1575_v57, %v1252_v36 }
 0x1e7   :  { %v1943_v24 = vadd.f32 %v1576_v53, %v1253_v48  ;;  %v2296_v47 = vadd.f32 %v4343_v9, %v2295_v35  ;;  %v289_v50 = vadd.f32 %v4362_v11, %v288_v27  ;;  %v2479_v29 = vadd.f32 %v2633_v5, %v2371_v61 }
 0x1e8   :  { %v1880_v28 = vadd.f32 %v1820_v55, %v1759_v20  ;;  %v1881_v13 = vadd.f32 %v1821_v14, %v1760_v33  ;;  %v440_v34 = vmax.f32 %v366_v17, 0.0  ;;  %v5882_v21 = vrot.slane %v4480_v32, 7 }
 0x1e9   :  { %v2449_v30 = vadd.f32 %v2634_v1, %v2296_v47  ;;  %v409_v12 = vmax.f32 %v289_v50, 0.0  ;;  %v5883_v2 = vrot.slane %v4395_v31, 7  ;;  %2543 = vst [vmem:[#allocation10 + $0x110] sm:$0xff] %v2479_v29  ;;  %v5885_v17 = vrot.slane %v4480_v32, 1 }
 0x1ea   :  { %v2006_v51 = vadd.f32 %v1942_v56, %v1880_v28  ;;  %v2007_v63 = vadd.f32 %v1943_v24, %v1881_v13  ;;  %v4729_v35 = vmin.f32 %v440_v34, 6.0  ;;  %v5886_v1 = vrot.slane %v4395_v31, 1 }
 0x1eb   :  { %v4722_v49 = vsel %vm575_vm0, %v5883_v2, %v5882_v21  ;;  %v5884_v36 = vmov %v5883_v2  ;;  %2513 = vst [vmem:[#allocation10 + $0x20] sm:$0xff] %v2449_v30  ;;  %v4738_v53 = vmin.f32 %v409_v12, 6.0  ;;  %v5887_v55 = vmov %v5885_v17  ;;  %v5894_v12 = vld [vmem:[#allocation27_spill] sm:$0xff]  ;;  %v5895_v2 = vld [vmem:[#allocation32_spill] sm:$0xff] }
 0x1ec   :  { %v4727_v48 = vsel %vm575_vm0, 0.0, %v5884_v36  ;;  %v4736_v57 = vsel %vm768_vm1, %v5886_v1, %v5885_v17  ;;  %v4743_v14 = vsel %vm768_vm1, %v5887_v55, 0.0  ;;  %v982_v56 = vmul.f32 %v2912_v44, %v4377_v25 }
 0x1ed   :  { %v983_v34 = vmul.f32 %v2912_v44, %v4372_v16  ;;  %v2074_v29 = vadd.f32 %v4571_v40, %v2006_v51  ;;  %v2075_v24 = vadd.f32 %v4571_v40, %v2007_v63  ;;  %v4755_v61 = vmul.f32 %v2914_v45, %v4729_v35 }
 0x1ee   :  { %v4759_v27 = vmul.f32 %v2916_v46, %v4729_v35  ;;  %v5642_v25 = vrot.slane %v4738_v53, 7  ;;  %v4765_v28 = vmul.f32 %v2914_v45, %v4738_v53  ;;  %v4769_v13 = vmul.f32 %v2916_v46, %v4738_v53 }
 0x1ef   :  { %5888 = vst [vmem:[#allocation28_spill] sm:$0xff] %v4755_v61  ;;  %v2138_v47 = vmax.f32 %v2074_v29, 0.0  ;;  %v2139_v50 = vmax.f32 %v2075_v24, 0.0  ;;  %v4778_v30 = vmul.f32 %v2951_v8, %v4738_v53  ;;  %v1103_v21 = vadd.f32 %v5894_v12, %v982_v56  ;;  %v290_v61 = vpop.f32.mrf.mxu0 }
 0x1f0   :  { %5889 = vst [vmem:[#allocation29_spill] sm:$0xff] %v4759_v27  ;;  %v4774_v5 = vsel %vm575_vm0, 0.0, %v5642_v25  ;;  %v1104_v36 = vadd.f32 %v5895_v2, %v983_v34  ;;  %v1164_v17 = vmul.f32 %v2943_v4, %v4384_v22  ;;  %v1165_v1 = vmul.f32 %v2943_v4, %v4389_v58  ;;  %v2372_v34 = vpop.f32.mrf.mxu3  ;;  %v368_v58 = vpop.f32.mrf.mxu2  ;;  %v5896_v2 = vld [vmem:[#allocation20_spill] sm:$0xff] }
 0x1f1   :  { %5890 = vst [vmem:[#allocation36_spill] sm:$0xff] %v4765_v28  ;;  %v2202_v51 = vmin.f32 %v2138_v47, 6.0  ;;  %v2203_v63 = vmin.f32 %v2139_v50, 6.0  ;;  %v1287_v55 = vmul.f32 %v2925_v52, %v4550_v37  ;;  %v1288_v29 = vmul.f32 %v2925_v52, %v4545_v41  ;;  %v2297_v28 = vpop.f32.mrf.mxu1 }
 0x1f2   :  { %5891 = vst [vmem:[#allocation39_spill] sm:$0xff] %v4769_v13  ;;  %v1481_v24 = vmul.f32 %v2941_v3, %v4557_v15  ;;  %v1482_v56 = vmul.f32 %v2941_v3, %v4564_v60  ;;  %v1224_v50 = vadd.f32 %v1164_v17, %v1103_v21  ;;  %v1225_v12 = vadd.f32 %v1165_v1, %v1104_v36 }
 0x1f3   :  { %5892 = vst [vmem:[#allocation47_spill] sm:$0xff] %v4774_v5  ;;  %v2241_v47 = vpack.c.bf16 %v2203_v63, %v2202_v51  ;;  %v1610_v22 = vmul.f32 %v2949_v7, %v4727_v48  ;;  %v1416_v16 = vadd.f32 %v5896_v2, %v1287_v55  ;;  %v1417_v25 = vadd.f32 %v4329_v6, %v1288_v29  ;;  %v2635_v29 = vld [vmem:[#allocation2 + $0x118] sm:$0xff] }
 0x1f4   :  { %5893 = vst [vmem:[#allocation48_spill] sm:$0xff] %v4778_v30  ;;  %v1611_v33 = vmul.f32 %v2949_v7, %v4722_v49  ;;  %v1671_v20 = vmul.f32 %v2951_v8, %v4395_v31  ;;  %v1672_v21 = vmul.f32 %v2951_v8, %v4480_v32  ;;  %v1792_v36 = vmul.f32 %v4530_v59, %v4736_v57 }
 0x1f5   :  { %2409 = vmatmul.bf16.gmra.mxu3 %v2241_v47  ;;  %v1793_v51 = vmul.f32 %v4530_v59, %v4743_v14  ;;  %v2373_v6 = vadd.f32 %v4343_v9, %v2372_v34  ;;  %v1545_v63 = vadd.f32 %v1481_v24, %v1416_v16  ;;  %v1546_v17 = vadd.f32 %v1482_v56, %v1417_v25  ;;  %v5897_v25 = vld [vmem:[#allocation21_spill] sm:$0xff]  ;;  %v5899_v24 = vld [vmem:[#allocation40_spill] sm:$0xff] }
 0x1f6   :  { %v1731_v1 = vadd.f32 %v1671_v20, %v1610_v22  ;;  %v369_v55 = vadd.f32 %v4362_v11, %v368_v58  ;;  %v1732_v31 = vadd.f32 %v1672_v21, %v1611_v33  ;;  %v2298_v47 = vadd.f32 %v4343_v9, %v2297_v28 }
 0x1f7   :  { %v2480_v2 = vadd.f32 %v2635_v29, %v2373_v6  ;;  %v291_v32 = vadd.f32 %v4362_v11, %v290_v61  ;;  %v1912_v27 = vadd.f32 %v1545_v63, %v1224_v50  ;;  %v1913_v62 = vadd.f32 %v1546_v17, %v1225_v12 }
 0x1f8   :  { %v1852_v13 = vadd.f32 %v1792_v36, %v1731_v1  ;;  %v441_v30 = vmax.f32 %v369_v55, 0.0  ;;  %v1853_v5 = vadd.f32 %v1793_v51, %v1732_v31  ;;  %v2450_v34 = vadd.f32 %v2636_v0, %v2298_v47  ;;  %v370_v29 = vpop.f32.mrf.mxu2 }
 0x1f9   :  { %2544 = vst [vmem:[#allocation10 + $0x118] sm:$0xff] %v2480_v2  ;;  %v410_v16 = vmax.f32 %v291_v32, 0.0  ;;  %v5898_v20 = vrot.slane %v5897_v25, 7  ;;  %v5900_v56 = vrot.slane %v5899_v24, 7  ;;  %v5903_v12 = vrot.slane %v5897_v25, 1 }
 0x1fa   :  { %v1976_v22 = vadd.f32 %v1912_v27, %v1852_v13  ;;  %v4819_v28 = vmin.f32 %v441_v30, 6.0  ;;  %v5904_v0 = vrot.slane %v5899_v24, 1  ;;  %v1977_v21 = vadd.f32 %v1913_v62, %v1853_v5  ;;  %2514 = vst [vmem:[#allocation10 + $0x28] sm:$0xff] %v2450_v34 }
 0x1fb   :  { %v4817_v33 = vsel %vm575_vm0, %v5900_v56, %v5898_v20  ;;  %v5902_v61 = vmov %v5900_v56  ;;  %v4833_v36 = vmin.f32 %v410_v16, 6.0  ;;  %v5905_v27 = vmov %v5903_v12  ;;  %v5913_v56 = vld [vmem:[#allocation34_spill] sm:$0xff] }
 0x1fc   :  { %5901 = vst [vmem:[#allocation27_spill] sm:$0xff] %v4819_v28  ;;  %v4824_v50 = vsel %vm575_vm0, 0.0, %v5902_v61  ;;  %v4831_v58 = vsel %vm768_vm1, %v5904_v0, %v5903_v12  ;;  %v4838_v13 = vsel %vm768_vm1, %v5905_v27, 0.0  ;;  %v1012_v30 = vmul.f32 %v2912_v44, %v4462_v18  ;;  %v2300_v18 = vpop.f32.mrf.mxu1 }
 0x1fd   :  { %v2044_v51 = vadd.f32 %v4571_v40, %v1976_v22  ;;  %v5644_v6 = vrot.slane %v4819_v28, 7  ;;  %v4847_v62 = vmul.f32 %v2914_v45, %v4819_v28  ;;  %v2045_v5 = vadd.f32 %v4571_v40, %v1977_v21  ;;  %v5914_v21 = vld [vmem:[#allocation38_spill] sm:$0xff] }
 0x1fe   :  { %v4852_v17 = vmul.f32 %v2916_v46, %v4819_v28  ;;  %v4856_v1 = vmul.f32 %v2951_v8, %v4819_v28  ;;  %v4867_v2 = vmul.f32 %v2914_v45, %v4833_v36  ;;  %v4871_v32 = vmul.f32 %v2916_v46, %v4833_v36 }
 0x1ff   :  { %5906 = vst [vmem:[#allocation32_spill] sm:$0xff] %v4847_v62  ;;  %v2108_v55 = vmax.f32 %v2044_v51, 0.0  ;;  %v4862_v31 = vsel %vm575_vm0, 0.0, %v5644_v6  ;;  %v2109_v47 = vmax.f32 %v2045_v5, 0.0  ;;  %v4875_v34 = vmul.f32 %v2951_v8, %v4833_v36 }
 0x200   :  { %5907 = vst [vmem:[#allocation20_spill] sm:$0xff] %v4852_v17  ;;  %v1013_v16 = vmul.f32 %v2912_v44, %v4457_v10  ;;  %v1133_v22 = vadd.f32 %v5913_v56, %v1012_v30  ;;  %v1194_v61 = vmul.f32 %v2943_v4, %v4469_v42  ;;  %v1195_v12 = vmul.f32 %v2943_v4, %v4476_v19  ;;  %v2375_v19 = vpop.f32.mrf.mxu3 }
 0x201   :  { %5908 = vst [vmem:[#allocation21_spill] sm:$0xff] %v4856_v1  ;;  %v2172_v20 = vmin.f32 %v2108_v55, 6.0  ;;  %v2173_v0 = vmin.f32 %v2109_v47, 6.0  ;;  %v1319_v51 = vmul.f32 %v2925_v52, %v4643_v38  ;;  %v1320_v5 = vmul.f32 %v2925_v52, %v4636_v54 }
 0x202   :  { %5909 = vst [vmem:[#allocation40_spill] sm:$0xff] %v4862_v31  ;;  %v1134_v27 = vadd.f32 %v5914_v21, %v1013_v16  ;;  %v1254_v63 = vadd.f32 %v1194_v61, %v1133_v22  ;;  %v1513_v10 = vmul.f32 %v2941_v3, %v4650_v23  ;;  %v1514_v30 = vmul.f32 %v2941_v3, %v4657_v43  ;;  %v5915_v16 = vld [vmem:[#allocation16_spill] sm:$0xff]  ;;  %v5916_v21 = vld [vmem:[#allocation41_spill] sm:$0xff] }
 0x203   :  { %5910 = vst [vmem:[#allocation49_spill] sm:$0xff] %v4867_v2  ;;  %v1640_v42 = vmul.f32 %v2949_v7, %v4824_v50  ;;  %v2226_v55 = vpack.c.bf16 %v2173_v0, %v2172_v20  ;;  %v1448_v56 = vadd.f32 %v5915_v16, %v1319_v51  ;;  %v1449_v6 = vadd.f32 %v5916_v21, %v1320_v5  ;;  %v293_v21 = vpop.f32.mrf.mxu0 }
 0x204   :  { %5911 = vst [vmem:[#allocation50_spill] sm:$0xff] %v4871_v32  ;;  %v1255_v47 = vadd.f32 %v1195_v12, %v1134_v27  ;;  %v1641_v22 = vmul.f32 %v2949_v7, %v4817_v33  ;;  %v1701_v61 = vmul.f32 %v2951_v8, %v5899_v24  ;;  %v1702_v62 = vmul.f32 %v2951_v8, %v5897_v25  ;;  %v2637_v32 = vld [vmem:[#allocation2 + $0x120] sm:$0xff] }
 0x205   :  { %5912 = vst [vmem:[#allocation51_spill] sm:$0xff] %v4875_v34  ;;  %v1822_v2 = vmul.f32 %v4530_v59, %v4831_v58  ;;  %2334 = vmatmul.bf16.gmra.mxu1 %v2226_v55  ;;  %v1577_v20 = vadd.f32 %v1513_v10, %v1448_v56  ;;  %v1578_v12 = vadd.f32 %v1514_v30, %v1449_v6  ;;  %v2638_v56 = vld [vmem:[#allocation2 + $0x30] sm:$0xff]  ;;  %v2640_v34 = vld [vmem:[#allocation2 + $0x38] sm:$0xff] }
 0x206   :  { %v1823_v0 = vmul.f32 %v4530_v59, %v4838_v13  ;;  %v2376_v27 = vadd.f32 %v4343_v9, %v2375_v19  ;;  %v1761_v51 = vadd.f32 %v1701_v61, %v1640_v42  ;;  %v1762_v5 = vadd.f32 %v1702_v62, %v1641_v22  ;;  %v5918_v42 = vld [vmem:[#allocation26_spill] sm:$0xff] }
 0x207   :  { %v371_v16 = vadd.f32 %v4362_v11, %v370_v29  ;;  %v2301_v24 = vadd.f32 %v4343_v9, %v2300_v18  ;;  %v1944_v17 = vadd.f32 %v1577_v20, %v1254_v63  ;;  %v1945_v25 = vadd.f32 %v1578_v12, %v1255_v47 }
 0x208   :  { %v2481_v1 = vadd.f32 %v2637_v32, %v2376_v27  ;;  %v294_v55 = vadd.f32 %v4362_v11, %v293_v21  ;;  %v1882_v10 = vadd.f32 %v1822_v2, %v1761_v51  ;;  %v1883_v6 = vadd.f32 %v1823_v0, %v1762_v5  ;;  %v2377_v21 = vpop.f32.mrf.mxu3 }
 0x209   :  { %v442_v30 = vmax.f32 %v371_v16, 0.0  ;;  %v2451_v31 = vadd.f32 %v2638_v56, %v2301_v24  ;;  %v5917_v62 = vrot.slane %v4652_v39, 7  ;;  %v5919_v29 = vrot.slane %v5918_v42, 7 }
 0x20a   :  { %2545 = vst [vmem:[#allocation10 + $0x120] sm:$0xff] %v2481_v1  ;;  %v411_v19 = vmax.f32 %v294_v55, 0.0  ;;  %v5921_v2 = vrot.slane %v4652_v39, 1  ;;  %v5922_v47 = vrot.slane %v5918_v42, 1  ;;  %v2008_v1 = vadd.f32 %v1944_v17, %v1882_v10 }
 0x20b   :  { %v4916_v18 = vsel %vm575_vm0, %v5919_v29, %v5917_v62  ;;  %v5920_v63 = vmov %v5919_v29  ;;  %v2009_v61 = vadd.f32 %v1945_v25, %v1883_v6  ;;  %v4930_v20 = vmin.f32 %v442_v30, 6.0  ;;  %2515 = vst [vmem:[#allocation10 + $0x30] sm:$0xff] %v2451_v31  ;;  %v5933_v29 = vld [vmem:[#allocation15_spill] sm:$0xff] }
 0x20c   :  { %v4921_v32 = vsel %vm575_vm0, 0.0, %v5920_v63  ;;  %v4928_v22 = vsel %vm768_vm1, %v5922_v47, %v5921_v2  ;;  %v5924_v12 = vmov %v5921_v2  ;;  %v4937_v27 = vmin.f32 %v411_v19, 6.0 }
 0x20d   :  { %5923 = vst [vmem:[#allocation34_spill] sm:$0xff] %v4930_v20  ;;  %v4935_v0 = vsel %vm768_vm1, %v5924_v12, 0.0  ;;  %v984_v51 = vmul.f32 %v2912_v44, %v4550_v37  ;;  %v985_v5 = vmul.f32 %v2912_v44, %v4545_v41  ;;  %v1166_v17 = vmul.f32 %v2943_v4, %v4557_v15 }
 0x20e   :  { %5925 = vst [vmem:[#allocation38_spill] sm:$0xff] %v4937_v27  ;;  %v2076_v16 = vadd.f32 %v4571_v40, %v2008_v1  ;;  %v2077_v31 = vadd.f32 %v4571_v40, %v2009_v61  ;;  %v4951_v25 = vmul.f32 %v2914_v45, %v4930_v20  ;;  %v4955_v37 = vmul.f32 %v2916_v46, %v4930_v20  ;;  %v5934_v1 = vld [vmem:[#allocation37_spill] sm:$0xff] }
 0x20f   :  { %v4959_v41 = vmul.f32 %v2951_v8, %v4930_v20  ;;  %v5646_v15 = vrot.slane %v4937_v27, 7  ;;  %v4965_v30 = vmul.f32 %v2914_v45, %v4937_v27  ;;  %v4974_v19 = vmul.f32 %v2916_v46, %v4937_v27 }
 0x210   :  { %5926 = vst [vmem:[#allocation16_spill] sm:$0xff] %v4951_v25  ;;  %v2140_v55 = vmax.f32 %v2076_v16, 0.0  ;;  %v2141_v10 = vmax.f32 %v2077_v31, 0.0  ;;  %v4978_v62 = vmul.f32 %v2951_v8, %v4937_v27  ;;  %v1105_v63 = vadd.f32 %v5933_v29, %v984_v51  ;;  %v5936_v29 = vld [vmem:[#allocation44_spill] sm:$0xff]  ;;  %v2302_v25 = vpop.f32.mrf.mxu1 }
 0x211   :  { %5927 = vst [vmem:[#allocation41_spill] sm:$0xff] %v4955_v37  ;;  %v4970_v56 = vsel %vm575_vm0, 0.0, %v5646_v15  ;;  %v1106_v61 = vadd.f32 %v5934_v1, %v985_v5  ;;  %v1167_v12 = vmul.f32 %v2943_v4, %v4564_v60  ;;  %v1289_v31 = vmul.f32 %v2925_v52, %v4727_v48  ;;  %v373_v60 = vpop.f32.mrf.mxu2  ;;  %v2639_v37 = vld [vmem:[#allocation2 + $0x128] sm:$0xff] }
 0x212   :  { %5928 = vst [vmem:[#allocation26_spill] sm:$0xff] %v4959_v41  ;;  %v2204_v2 = vmin.f32 %v2140_v55, 6.0  ;;  %v2205_v47 = vmin.f32 %v2141_v10, 6.0  ;;  %v1226_v16 = vadd.f32 %v1166_v17, %v1105_v63  ;;  %v1290_v6 = vmul.f32 %v2925_v52, %v4722_v49  ;;  %v5935_v17 = vld [vmem:[#allocation24_spill] sm:$0xff] }
 0x213   :  { %5929 = vst [vmem:[#allocation52_spill] sm:$0xff] %v4965_v30  ;;  %v1483_v15 = vmul.f32 %v2941_v3, %v4736_v57  ;;  %v1227_v51 = vadd.f32 %v1167_v12, %v1106_v61  ;;  %v1484_v55 = vmul.f32 %v2941_v3, %v4743_v14  ;;  %v1612_v5 = vmul.f32 %v2949_v7, %v4921_v32 }
 0x214   :  { %5930 = vst [vmem:[#allocation53_spill] sm:$0xff] %v4970_v56  ;;  %v2242_v24 = vpack.c.bf16 %v2205_v47, %v2204_v2  ;;  %v1418_v10 = vadd.f32 %v5935_v17, %v1289_v31  ;;  %v1419_v63 = vadd.f32 %v5936_v29, %v1290_v6  ;;  %v1613_v1 = vmul.f32 %v2949_v7, %v4916_v18  ;;  %v295_v2 = vpop.f32.mrf.mxu0 }
 0x215   :  { %5931 = vst [vmem:[#allocation54_spill] sm:$0xff] %v4974_v19  ;;  %v1673_v30 = vmul.f32 %v2951_v8, %v5918_v42  ;;  %v1674_v47 = vmul.f32 %v2951_v8, %v4652_v39  ;;  %v1794_v61 = vmul.f32 %v4530_v59, %v4928_v22  ;;  %v1795_v12 = vmul.f32 %v4530_v59, %v4935_v0 }
 0x216   :  { %5932 = vst [vmem:[#allocation55_spill] sm:$0xff] %v4978_v62  ;;  %2414 = vmatmul.bf16.gmra.mxu3 %v2242_v24  ;;  %v2378_v6 = vadd.f32 %v4343_v9, %v2377_v21  ;;  %v1547_v31 = vadd.f32 %v1483_v15, %v1418_v10  ;;  %v1548_v17 = vadd.f32 %v1484_v55, %v1419_v63  ;;  %v5938_v55 = vrot.slane %v4638_v26, 7 }
 0x217   :  { %v1733_v29 = vadd.f32 %v1673_v30, %v1612_v5  ;;  %v374_v19 = vadd.f32 %v4362_v11, %v373_v60  ;;  %v1734_v42 = vadd.f32 %v1674_v47, %v1613_v1  ;;  %v2303_v24 = vadd.f32 %v4343_v9, %v2302_v25 }
 0x218   :  { %v2482_v62 = vadd.f32 %v2639_v37, %v2378_v6  ;;  %v296_v39 = vadd.f32 %v4362_v11, %v295_v2  ;;  %v1914_v27 = vadd.f32 %v1547_v31, %v1226_v16  ;;  %v1915_v41 = vadd.f32 %v1548_v17, %v1227_v51 }
 0x219   :  { %v1854_v56 = vadd.f32 %v1794_v61, %v1733_v29  ;;  %v443_v28 = vmax.f32 %v374_v19, 0.0  ;;  %v1855_v20 = vadd.f32 %v1795_v12, %v1734_v42  ;;  %v2452_v21 = vadd.f32 %v2640_v34, %v2303_v24 }
 0x21a   :  { %2546 = vst [vmem:[#allocation10 + $0x128] sm:$0xff] %v2482_v62  ;;  %v412_v15 = vmax.f32 %v296_v39, 0.0  ;;  %v5937_v30 = vrot.slane %v4729_v35, 7  ;;  %v5939_v11 = vmov %v5938_v55  ;;  %v5940_v19 = vrot.slane %v4729_v35, 1  ;;  %v5947_v39 = vld [vmem:[#allocation22_spill] sm:$0xff] }
 0x21b   :  { %v1978_v37 = vadd.f32 %v1914_v27, %v1854_v56  ;;  %v5017_v9 = vmin.f32 %v443_v28, 6.0  ;;  %v5022_v25 = vsel %vm575_vm0, 0.0, %v5939_v11  ;;  %v5941_v34 = vrot.slane %v4638_v26, 1  ;;  %2516 = vst [vmem:[#allocation10 + $0x38] sm:$0xff] %v2452_v21 }
 0x21c   :  { %v5015_v5 = vsel %vm575_vm0, %v5938_v55, %v5937_v30  ;;  %v1979_v16 = vadd.f32 %v1915_v41, %v1855_v20  ;;  %v5031_v51 = vmin.f32 %v412_v15, 6.0  ;;  %v5942_v27 = vmov %v5940_v19 }
 0x21d   :  { %v5029_v62 = vsel %vm768_vm1, %v5941_v34, %v5940_v19  ;;  %v5036_v28 = vsel %vm768_vm1, %v5942_v27, 0.0  ;;  %v1014_v56 = vmul.f32 %v2912_v44, %v4643_v38  ;;  %v2046_v60 = vadd.f32 %v4571_v40, %v1978_v37  ;;  %v5948_v37 = vld [vmem:[#allocation19_spill] sm:$0xff] }
 0x21e   :  { %v5654_v10 = vrot.slane %v5017_v9, 7  ;;  %v5045_v20 = vmul.f32 %v2914_v45, %v5017_v9  ;;  %v2047_v41 = vadd.f32 %v4571_v40, %v1979_v16  ;;  %v5050_v1 = vmul.f32 %v2916_v46, %v5017_v9 }
 0x21f   :  { %v5054_v2 = vmul.f32 %v2951_v8, %v5017_v9  ;;  %v2110_v47 = vmax.f32 %v2046_v60, 0.0  ;;  %v5065_v6 = vmul.f32 %v2914_v45, %v5031_v51  ;;  %v5069_v17 = vmul.f32 %v2916_v46, %v5031_v51 }
 0x220   :  { %5943 = vst [vmem:[#allocation15_spill] sm:$0xff] %v5045_v20  ;;  %v5060_v61 = vsel %vm575_vm0, 0.0, %v5654_v10  ;;  %v2111_v31 = vmax.f32 %v2047_v41, 0.0  ;;  %v5073_v29 = vmul.f32 %v2951_v8, %v5031_v51  ;;  %v1015_v42 = vmul.f32 %v2912_v44, %v4636_v54  ;;  %v5949_v41 = vld [vmem:[#allocation42_spill] sm:$0xff] }
 0x221   :  { %5944 = vst [vmem:[#allocation37_spill] sm:$0xff] %v5050_v1  ;;  %v2174_v24 = vmin.f32 %v2110_v47, 6.0  ;;  %v1135_v21 = vadd.f32 %v5947_v39, %v1014_v56  ;;  %v1196_v15 = vmul.f32 %v2943_v4, %v4650_v23  ;;  %v1197_v30 = vmul.f32 %v2943_v4, %v4657_v43  ;;  %v2380_v43 = vpop.f32.mrf.mxu3  ;;  %v375_v39 = vpop.f32.mrf.mxu2 }
 0x222   :  { %5945 = vst [vmem:[#allocation24_spill] sm:$0xff] %v5065_v6  ;;  %v2175_v55 = vmin.f32 %v2111_v31, 6.0  ;;  %v1136_v11 = vadd.f32 %v5948_v37, %v1015_v42  ;;  %v1321_v19 = vmul.f32 %v2925_v52, %v4824_v50  ;;  %v1322_v34 = vmul.f32 %v2925_v52, %v4817_v33  ;;  %v5950_v31 = vld [vmem:[#allocation33_spill] sm:$0xff]  ;;  %v2305_v37 = vpop.f32.mrf.mxu1 }
 0x223   :  { %5946 = vst [vmem:[#allocation44_spill] sm:$0xff] %v5069_v17  ;;  %v1256_v16 = vadd.f32 %v1196_v15, %v1135_v21  ;;  %v1515_v54 = vmul.f32 %v2941_v3, %v4831_v58  ;;  %v1516_v27 = vmul.f32 %v2941_v3, %v4838_v13  ;;  %v1642_v23 = vmul.f32 %v2949_v7, %v5022_v25 }
 0x224   :  { %v2227_v56 = vpack.c.bf16 %v2175_v55, %v2174_v24  ;;  %v1257_v60 = vadd.f32 %v1197_v30, %v1136_v11  ;;  %v1450_v47 = vadd.f32 %v5949_v41, %v1321_v19  ;;  %v1451_v42 = vadd.f32 %v5950_v31, %v1322_v34  ;;  %v5108_v11 = vld [vmem:[%s5631_s6] ss:$0 sm:$0xff]  ;;  %v2643_v31 = vld [vmem:[#allocation2 + $0x130] sm:$0xff] }
 0x225   :  { %v1643_v21 = vmul.f32 %v2949_v7, %v5015_v5  ;;  %v1703_v15 = vmul.f32 %v2951_v8, %v4638_v26  ;;  %v1704_v63 = vmul.f32 %v2951_v8, %v4729_v35  ;;  %v1824_v10 = vmul.f32 %v4530_v59, %v5029_v62  ;;  %v5114_v35 = vld [vmem:[%s5627_s2] ss:$0 sm:$0xff] }
 0x226   :  { %2339 = vmatmul.bf16.gmra.mxu1 %v2227_v56  ;;  %v1579_v24 = vadd.f32 %v1515_v54, %v1450_v47  ;;  %v1580_v30 = vadd.f32 %v1516_v27, %v1451_v42  ;;  %v1825_v55 = vmul.f32 %v4530_v59, %v5036_v28  ;;  %v2381_v19 = vadd.f32 %v5108_v11, %v2380_v43  ;;  %v298_v56 = vpop.f32.mrf.mxu0 }
 0x227   :  { %v1763_v26 = vadd.f32 %v1703_v15, %v1642_v23  ;;  %v1764_v34 = vadd.f32 %v1704_v63, %v1643_v21  ;;  %v376_v54 = vadd.f32 %v5114_v35, %v375_v39  ;;  %v2306_v27 = vadd.f32 %v5108_v11, %v2305_v37  ;;  %v2644_v63 = vld [vmem:[#allocation2 + $0x40] sm:$0xff] }
 0x228   :  { %v1946_v41 = vadd.f32 %v1579_v24, %v1256_v16  ;;  %v1947_v47 = vadd.f32 %v1580_v30, %v1257_v60  ;;  %v2483_v42 = vadd.f32 %v2643_v31, %v2381_v19  ;;  %v299_v12 = vadd.f32 %v5114_v35, %v298_v56 }
 0x229   :  { %v1884_v38 = vadd.f32 %v1824_v10, %v1763_v26  ;;  %v1885_v43 = vadd.f32 %v1825_v55, %v1764_v34  ;;  %v444_v23 = vmax.f32 %v376_v54, 0.0  ;;  %v2453_v21 = vadd.f32 %v2644_v63, %v2306_v27 }
 0x22a   :  { %2547 = vst [vmem:[#allocation10 + $0x130] sm:$0xff] %v2483_v42  ;;  %v413_v15 = vmax.f32 %v299_v12, 0.0  ;;  %v5951_v20 = vrot.slane %v4833_v36, 7  ;;  %v5952_v39 = vrot.slane %v4738_v53, 7  ;;  %v5953_v16 = vrot.slane %v4833_v36, 1 }
 0x22b   :  { %v5954_v60 = vrot.slane %v4738_v53, 1  ;;  %v2010_v12 = vadd.f32 %v1946_v41, %v1884_v38  ;;  %v2011_v55 = vadd.f32 %v1947_v47, %v1885_v43  ;;  %v5138_v19 = vmin.f32 %v444_v23, 6.0  ;;  %2517 = vst [vmem:[#allocation10 + $0x40] sm:$0xff] %v2453_v21  ;;  %v5960_v23 = vld [vmem:[#allocation17_spill] sm:$0xff]  ;;  %v5961_v21 = vld [vmem:[#allocation43_spill] sm:$0xff] }
 0x22c   :  { %v5124_v37 = vsel %vm575_vm0, %v5952_v39, %v5951_v20  ;;  %v5955_v10 = vmov %v5953_v16  ;;  %v986_v20 = vmul.f32 %v2912_v44, %v4727_v48  ;;  %v5142_v26 = vmin.f32 %v413_v15, 6.0  ;;  %v2382_v39 = vpop.f32.mrf.mxu3 }
 0x22d   :  { %v5131_v24 = vsel %vm768_vm1, %v5954_v60, %v5953_v16  ;;  %v5136_v30 = vsel %vm768_vm1, %v5955_v10, 0.0  ;;  %v987_v53 = vmul.f32 %v2912_v44, %v4722_v49  ;;  %v1168_v34 = vmul.f32 %v2943_v4, %v4736_v57  ;;  %v2307_v16 = vpop.f32.mrf.mxu1 }
 0x22e   :  { %5956 = vst [vmem:[#allocation22_spill] sm:$0xff] %v5142_v26  ;;  %v1169_v36 = vmul.f32 %v2943_v4, %v4743_v14  ;;  %v2078_v38 = vadd.f32 %v4571_v40, %v2010_v12  ;;  %v2079_v54 = vadd.f32 %v4571_v40, %v2011_v55  ;;  %v5156_v48 = vmul.f32 %v2914_v45, %v5138_v19 }
 0x22f   :  { %v5160_v49 = vmul.f32 %v2916_v46, %v5138_v19  ;;  %v5164_v57 = vmul.f32 %v2951_v8, %v5138_v19  ;;  %v5655_v14 = vrot.slane %v5142_v26, 7  ;;  %v1362_v42 = vmul.f32 %v2916_v46, %v5142_v26 }
 0x230   :  { %5957 = vst [vmem:[#allocation19_spill] sm:$0xff] %v5156_v48  ;;  %v2142_v41 = vmax.f32 %v2078_v38, 0.0  ;;  %v2143_v47 = vmax.f32 %v2079_v54, 0.0  ;;  %v1679_v43 = vmul.f32 %v2951_v8, %v5142_v26  ;;  %v1107_v63 = vadd.f32 %v5960_v23, %v986_v20  ;;  %v5964_v23 = vld [vmem:[#allocation46_spill] sm:$0xff] }
 0x231   :  { %5958 = vst [vmem:[#allocation42_spill] sm:$0xff] %v5160_v49  ;;  %v751_v45 = vsel %vm575_vm0, 0.0, %v5655_v14  ;;  %v1108_v15 = vadd.f32 %v5961_v21, %v987_v53  ;;  %v1291_v31 = vmul.f32 %v2925_v52, %v4921_v32  ;;  %v1292_v56 = vmul.f32 %v2925_v52, %v4916_v18  ;;  %v300_v14 = vpop.f32.mrf.mxu0 }
 0x232   :  { %5959 = vst [vmem:[#allocation33_spill] sm:$0xff] %v5164_v57  ;;  %v2206_v60 = vmin.f32 %v2142_v41, 6.0  ;;  %v2207_v10 = vmin.f32 %v2143_v47, 6.0  ;;  %v1297_v12 = vmul.f32 %v2925_v52, %v751_v45  ;;  %v1618_v55 = vmul.f32 %v2949_v7, %v751_v45  ;;  %v378_v47 = vpop.f32.mrf.mxu2  ;;  %v5965_v45 = vld [vmem:[#allocation35_spill] sm:$0xff] }
 0x233   :  { %v1228_v38 = vadd.f32 %v1168_v34, %v1107_v63  ;;  %v1229_v54 = vadd.f32 %v1169_v36, %v1108_v15  ;;  %v1485_v41 = vmul.f32 %v2941_v3, %v4928_v22  ;;  %v1420_v21 = vadd.f32 %v5964_v23, %v1291_v31  ;;  %v5966_v63 = vld [vmem:[#allocation47_spill] sm:$0xff] }
 0x234   :  { %v2243_v27 = vpack.c.bf16 %v2207_v10, %v2206_v60  ;;  %v5183_v20 = vadd.f32 %v1362_v42, %v1297_v12  ;;  %v5185_v53 = vadd.f32 %v1679_v43, %v1618_v55  ;;  %v1421_v34 = vadd.f32 %v5965_v45, %v1292_v56  ;;  %v5967_v12 = vld [vmem:[#allocation48_spill] sm:$0xff]  ;;  %v5968_v45 = vld [vmem:[#allocation51_spill] sm:$0xff] }
 0x235   :  { %v1486_v36 = vmul.f32 %v2941_v3, %v4935_v0  ;;  %v1614_v15 = vmul.f32 %v2949_v7, %v5966_v63  ;;  %v1615_v42 = vmul.f32 %v2949_v7, %v5124_v37  ;;  %v1796_v43 = vmul.f32 %v4530_v59, %v5131_v24 }
 0x236   :  { %5962 = vst [vmem:[#allocation17_spill] sm:$0xff] %v5183_v20  ;;  %2419 = vmatmul.bf16.gmra.mxu3 %v2243_v27  ;;  %v1797_v60 = vmul.f32 %v4530_v59, %v5136_v30  ;;  %v2383_v31 = vadd.f32 %v5108_v11, %v2382_v39  ;;  %v1549_v56 = vadd.f32 %v1485_v41, %v1420_v21  ;;  %v2645_v27 = vld [vmem:[#allocation2 + $0x138] sm:$0xff]  ;;  %v2646_v39 = vld [vmem:[#allocation2 + $0x48] sm:$0xff] }
 0x237   :  { %5963 = vst [vmem:[#allocation43_spill] sm:$0xff] %v5185_v53  ;;  %v1550_v10 = vadd.f32 %v1486_v36, %v1421_v34  ;;  %v1735_v55 = vadd.f32 %v5967_v12, %v1614_v15  ;;  %v379_v23 = vadd.f32 %v5114_v35, %v378_v47  ;;  %v1736_v48 = vadd.f32 %v5968_v45, %v1615_v42  ;;  %v5969_v34 = vld [vmem:[#allocation34_spill] sm:$0xff]  ;;  %v5971_v47 = vld [vmem:[#allocation27_spill] sm:$0xff]  ;;  %v5988_v12 = vld [vmem:[#allocation29_spill] sm:$0xff] }
 0x238   :  { %v2484_v20 = vadd.f32 %v2645_v27, %v2383_v31  ;;  %v2308_v6 = vadd.f32 %v5108_v11, %v2307_v16  ;;  %v301_v49 = vadd.f32 %v5114_v35, %v300_v14  ;;  %v1916_v53 = vadd.f32 %v1549_v56, %v1228_v38 }
 0x239   :  { %v1856_v1 = vadd.f32 %v1796_v43, %v1735_v55  ;;  %v1917_v17 = vadd.f32 %v1550_v10, %v1229_v54  ;;  %v445_v59 = vmax.f32 %v379_v23, 0.0  ;;  %v1857_v57 = vadd.f32 %v1797_v60, %v1736_v48  ;;  %v2385_v54 = vpop.f32.mrf.mxu3 }
 0x23a   :  { %2548 = vst [vmem:[#allocation10 + $0x138] sm:$0xff] %v2484_v20  ;;  %v2454_v41 = vadd.f32 %v2646_v39, %v2308_v6  ;;  %v414_v21 = vmax.f32 %v301_v49, 0.0  ;;  %v5970_v36 = vrot.slane %v5969_v34, 7  ;;  %v5972_v15 = vrot.slane %v5971_v47, 7  ;;  %v2310_v20 = vpop.f32.mrf.mxu1 }
 0x23b   :  { %v1980_v31 = vadd.f32 %v1916_v53, %v1856_v1  ;;  %v5214_v16 = vmin.f32 %v445_v59, 6.0  ;;  %v5973_v14 = vrot.slane %v5969_v34, 1  ;;  %v5974_v38 = vrot.slane %v5971_v47, 1 }
 0x23c   :  { %v5212_v42 = vsel %vm575_vm0, %v5972_v15, %v5970_v36  ;;  %v1981_v43 = vadd.f32 %v1917_v17, %v1857_v57  ;;  %2518 = vst [vmem:[#allocation10 + $0x48] sm:$0xff] %v2454_v41  ;;  %v5228_v60 = vmin.f32 %v414_v21, 6.0  ;;  %v1016_v1 = vmul.f32 %v2912_v44, %v4824_v50 }
 0x23d   :  { %v5221_v48 = vsel %vm768_vm1, %v5974_v38, %v5973_v14  ;;  %v5975_v6 = vmov %v5973_v14  ;;  %v1017_v53 = vmul.f32 %v2912_v44, %v4817_v33  ;;  %v2048_v56 = vadd.f32 %v4571_v40, %v1980_v31 }
 0x23e   :  { %v5226_v49 = vsel %vm768_vm1, %v5975_v6, 0.0  ;;  %5976 = vst [vmem:[#allocation46_spill] sm:$0xff] %v5228_v60  ;;  %v5657_v10 = vrot.slane %v5214_v16, 7  ;;  %v1394_v55 = vmul.f32 %v2916_v46, %v5214_v16  ;;  %v2049_v17 = vadd.f32 %v4571_v40, %v1981_v43 }
 0x23f   :  { %v1709_v57 = vmul.f32 %v2951_v8, %v5214_v16  ;;  %v622_v23 = vrot.slane %v5228_v60, 7  ;;  %v5656_v50 = vrot.slane %v5228_v60, 1  ;;  %v2112_v45 = vmax.f32 %v2048_v56, 0.0 }
 0x240   :  { %v767_v33 = vsel %vm575_vm0, 0.0, %v5657_v10  ;;  %v1363_v27 = vmul.f32 %v2916_v46, %v5228_v60  ;;  %v1680_v59 = vmul.f32 %v2951_v8, %v5228_v60  ;;  %v2113_v39 = vmax.f32 %v2049_v17, 0.0  ;;  %v2649_v60 = vld [vmem:[#allocation2 + $0x50] sm:$0xff] }
 0x241   :  { %v1329_v40 = vmul.f32 %v2925_v52, %v767_v33  ;;  %v1648_v41 = vmul.f32 %v2949_v7, %v767_v33  ;;  %v5977_v21 = vrot.slane %v5142_v26, 7  ;;  %v2176_v36 = vmin.f32 %v2112_v45, 6.0  ;;  %v5984_v33 = vld [vmem:[#allocation23_spill] sm:$0xff] }
 0x242   :  { %v944_v47 = vsel %vm768_vm1, %v5656_v50, 0.0  ;;  %v2177_v14 = vmin.f32 %v2113_v39, 6.0  ;;  %v5985_v39 = vld [vmem:[#allocation31_spill] sm:$0xff] }
 0x243   :  { %v623_v34 = vsel %vm575_vm0, %v5977_v21, %v622_v23  ;;  %v5261_v38 = vadd.f32 %v1394_v55, %v1329_v40  ;;  %v5263_v6 = vadd.f32 %v1709_v57, %v1648_v41  ;;  %v5266_v43 = vmul.f32 %v2941_v3, %v944_v47  ;;  %v5272_v23 = vld [vmem:[#allocation7 + $0x8] ss:$0 sm:$0xff] }
 0x244   :  { %v1298_v15 = vmul.f32 %v2925_v52, %v623_v34  ;;  %v1619_v31 = vmul.f32 %v2949_v7, %v623_v34  ;;  %v5275_v45 = vmul.f32 %v5272_v23, %v944_v47  ;;  %v1137_v21 = vadd.f32 %v5984_v33, %v1016_v1  ;;  %v5987_v33 = vld [vmem:[#allocation25_spill] sm:$0xff] }
 0x245   :  { %5978 = vst [vmem:[#allocation35_spill] sm:$0xff] %v5261_v38  ;;  %v2228_v34 = vpack.c.bf16 %v2177_v14, %v2176_v36  ;;  %v1138_v55 = vadd.f32 %v5985_v39, %v1017_v53  ;;  %v1198_v57 = vmul.f32 %v2943_v4, %v4831_v58  ;;  %v1199_v40 = vmul.f32 %v2943_v4, %v4838_v13  ;;  %v5291_v53 = vpop.f32.mrf.mxu3  ;;  %v5293_v36 = vpop.f32.mrf.mxu1 }
 0x246   :  { %5979 = vst [vmem:[#allocation47_spill] sm:$0xff] %v5263_v6  ;;  %v5268_v56 = vadd.f32 %v1363_v27, %v1298_v15  ;;  %v5270_v17 = vadd.f32 %v1680_v59, %v1619_v31  ;;  %v380_v27 = vpop.f32.mrf.mxu2  ;;  %v1323_v59 = vmul.f32 %v2925_v52, %v5022_v25  ;;  %v1324_v41 = vmul.f32 %v2925_v52, %v5015_v5  ;;  %v5986_v15 = vld [vmem:[#allocation40_spill] sm:$0xff] }
 0x247   :  { %5980 = vst [vmem:[#allocation48_spill] sm:$0xff] %v5266_v43  ;;  %v1517_v47 = vmul.f32 %v2941_v3, %v5029_v62  ;;  %v1518_v1 = vmul.f32 %v2941_v3, %v5036_v28  ;;  %2344 = vmatmul.bf16.gmra.mxu1 %v2228_v34  ;;  %v1258_v58 = vadd.f32 %v1198_v57, %v1137_v21  ;;  %v5989_v43 = vld [vmem:[#allocation21_spill] sm:$0xff]  ;;  %v5990_v21 = vld [vmem:[#allocation26_spill] sm:$0xff] }
 0x248   :  { %5981 = vst [vmem:[#allocation51_spill] sm:$0xff] %v5268_v56  ;;  %v1259_v13 = vadd.f32 %v1199_v40, %v1138_v55  ;;  %v1644_v31 = vmul.f32 %v2949_v7, %v5986_v15  ;;  %v1645_v14 = vmul.f32 %v2949_v7, %v5212_v42  ;;  %v1452_v39 = vadd.f32 %v5987_v33, %v1323_v59 }
 0x249   :  { %5982 = vst [vmem:[#allocation34_spill] sm:$0xff] %v5270_v17  ;;  %v1453_v50 = vadd.f32 %v5988_v12, %v1324_v41  ;;  %v1826_v10 = vmul.f32 %v5272_v23, %v5221_v48  ;;  %v1827_v38 = vmul.f32 %v5272_v23, %v5226_v49  ;;  %v2386_v57 = vadd.f32 %v5108_v11, %v2385_v54  ;;  %v5992_v41 = vld [vmem:[#allocation38_spill] sm:$0xff] }
 0x24a   :  { %5983 = vst [vmem:[#allocation27_spill] sm:$0xff] %v5275_v45  ;;  %v1765_v34 = vadd.f32 %v5989_v43, %v1644_v31  ;;  %v1766_v55 = vadd.f32 %v5990_v21, %v1645_v14  ;;  %v381_v40 = vadd.f32 %v5114_v35, %v380_v27  ;;  %v1581_v56 = vadd.f32 %v1517_v47, %v1452_v39  ;;  %v2648_v43 = vld [vmem:[#allocation2 + $0x140] sm:$0xff] }
 0x24b   :  { %v1582_v6 = vadd.f32 %v1518_v1, %v1453_v50  ;;  %v2311_v59 = vadd.f32 %v5108_v11, %v2310_v20  ;;  %v5991_v12 = vrot.slane %v5031_v51, 7  ;;  %v5993_v33 = vrot.slane %v5992_v41, 7 }
 0x24c   :  { %v1886_v17 = vadd.f32 %v1826_v10, %v1765_v34  ;;  %v1887_v26 = vadd.f32 %v1827_v38, %v1766_v55  ;;  %v2485_v31 = vadd.f32 %v2648_v43, %v2386_v57  ;;  %v446_v14 = vmax.f32 %v381_v40, 0.0  ;;  %v5997_v55 = vld [vmem:[#allocation45_spill] sm:$0xff]  ;;  %v5998_v40 = vld [vmem:[#allocation18_spill] sm:$0xff] }
 0x24d   :  { %v5315_v45 = vsel %vm575_vm0, %v5993_v33, %v5991_v12  ;;  %v1948_v21 = vadd.f32 %v1581_v56, %v1258_v58  ;;  %v1949_v54 = vadd.f32 %v1582_v6, %v1259_v13  ;;  %v2455_v35 = vadd.f32 %v2649_v60, %v2311_v59 }
 0x24e   :  { %v5994_v50 = vrot.slane %v5031_v51, 1  ;;  %v5995_v20 = vrot.slane %v5992_v41, 1  ;;  %2549 = vst [vmem:[#allocation10 + $0x140] sm:$0xff] %v2485_v31  ;;  %v5324_v47 = vmin.f32 %v446_v14, 6.0  ;;  %v988_v6 = vmul.f32 %v2912_v44, %v4921_v32 }
 0x24f   :  { %v989_v60 = vmul.f32 %v2912_v44, %v4916_v18  ;;  %v2012_v56 = vadd.f32 %v1948_v21, %v1886_v17  ;;  %v2013_v1 = vadd.f32 %v1949_v54, %v1887_v26  ;;  %2519 = vst [vmem:[#allocation10 + $0x50] sm:$0xff] %v2455_v35  ;;  %v1170_v58 = vmul.f32 %v2943_v4, %v4928_v22  ;;  %v5345_v18 = vpop.f32.mrf.mxu3  ;;  %v5347_v26 = vpop.f32.mrf.mxu1  ;;  %v5352_v22 = vld [vmem:[%s5629_s4] ss:$0 sm:$0xff] }
 0x250   :  { %v5322_v27 = vsel %vm768_vm1, %v5995_v20, %v5994_v50  ;;  %v5996_v10 = vmov %v5994_v50  ;;  %v1171_v13 = vmul.f32 %v2943_v4, %v4935_v0  ;;  %v670_v51 = vrot.slane %v5324_v47, 7 }
 0x251   :  { %v5329_v38 = vsel %vm768_vm1, %v5996_v10, 0.0  ;;  %v863_v39 = vrot.slane %v5324_v47, 1  ;;  %v1395_v34 = vmul.f32 %v2916_v46, %v5324_v47  ;;  %v1710_v32 = vmul.f32 %v2951_v8, %v5324_v47 }
 0x252   :  { %v2080_v0 = vadd.f32 %v5352_v22, %v2012_v56  ;;  %v2081_v17 = vadd.f32 %v5352_v22, %v2013_v1  ;;  %v1109_v57 = vadd.f32 %v5997_v55, %v988_v6  ;;  %v1110_v46 = vadd.f32 %v5998_v40, %v989_v60  ;;  %v6000_v56 = vld [vmem:[#allocation39_spill] sm:$0xff] }
 0x253   :  { %v5999_v59 = vrot.slane %v5214_v16, 7  ;;  %v960_v12 = vsel %vm768_vm1, %v863_v39, 0.0  ;;  %v1293_v41 = vmul.f32 %v2925_v52, %v5966_v63  ;;  %v1294_v33 = vmul.f32 %v2925_v52, %v5124_v37 }
 0x254   :  { %v2144_v43 = vmax.f32 %v2080_v0, 0.0  ;;  %v2145_v31 = vmax.f32 %v2081_v17, 0.0  ;;  %v5370_v21 = vmul.f32 %v2941_v3, %v960_v12  ;;  %v5374_v35 = vmul.f32 %v5272_v23, %v960_v12  ;;  %v6001_v0 = vld [vmem:[#allocation50_spill] sm:$0xff] }
 0x255   :  { %v671_v8 = vsel %vm575_vm0, %v5999_v59, %v670_v51  ;;  %v1230_v50 = vadd.f32 %v1170_v58, %v1109_v57  ;;  %v1231_v20 = vadd.f32 %v1171_v13, %v1110_v46  ;;  %v1422_v1 = vadd.f32 %v6000_v56, %v1293_v41  ;;  %v6003_v41 = vld [vmem:[#allocation55_spill] sm:$0xff] }
 0x256   :  { %v1330_v14 = vmul.f32 %v2925_v52, %v671_v8  ;;  %v1649_v54 = vmul.f32 %v2949_v7, %v671_v8  ;;  %v2208_v10 = vmin.f32 %v2144_v43, 6.0  ;;  %v2209_v6 = vmin.f32 %v2145_v31, 6.0  ;;  %v6002_v8 = vld [vmem:[#allocation53_spill] sm:$0xff] }
 0x257   :  { %v1423_v17 = vadd.f32 %v6001_v0, %v1294_v33  ;;  %v1487_v55 = vmul.f32 %v2941_v3, %v5131_v24  ;;  %v1488_v40 = vmul.f32 %v2941_v3, %v5136_v30  ;;  %v1616_v58 = vmul.f32 %v2949_v7, %v6002_v8 }
 0x258   :  { %v5376_v60 = vadd.f32 %v1395_v34, %v1330_v14  ;;  %v5379_v51 = vadd.f32 %v1710_v32, %v1649_v54  ;;  %v2244_v59 = vpack.c.bf16 %v2209_v6, %v2208_v10  ;;  %v1617_v13 = vmul.f32 %v2949_v7, %v5315_v45 }
 0x259   :  { %v1798_v34 = vmul.f32 %v5272_v23, %v5322_v27  ;;  %v1551_v32 = vadd.f32 %v1487_v55, %v1422_v1  ;;  %v1552_v57 = vadd.f32 %v1488_v40, %v1423_v17  ;;  %v1799_v46 = vmul.f32 %v5272_v23, %v5329_v38  ;;  %v2651_v1 = vld [vmem:[#allocation2 + $0x148] sm:$0xff]  ;;  %v5414_v55 = vpop.f32.mrf.mxu3 }
 0x25a   :  { %v2388_v12 = vadd.f32 %v5108_v11, %v5291_v53  ;;  %2424 = vmatmul.bf16.gmra.mxu3 %v2244_v59  ;;  %v1737_v33 = vadd.f32 %v6003_v41, %v1616_v58  ;;  %v1738_v43 = vadd.f32 %v5073_v29, %v1617_v13  ;;  %v2313_v31 = vadd.f32 %v5108_v11, %v5293_v36  ;;  %v5416_v36 = vpop.f32.mrf.mxu1  ;;  %v2652_v58 = vld [vmem:[#allocation2 + $0x58] sm:$0xff] }
 0x25b   :  { %v6004_v14 = vrot.slane %v5138_v19, 7  ;;  %v6005_v54 = vrot.slane %v5017_v9, 7  ;;  %v1918_v6 = vadd.f32 %v1551_v32, %v1230_v50  ;;  %v1919_v56 = vadd.f32 %v1552_v57, %v1231_v20 }
 0x25c   :  { %v2486_v0 = vadd.f32 %v2651_v1, %v2388_v12  ;;  %v6006_v53 = vrot.slane %v5138_v19, 1  ;;  %v6007_v17 = vrot.slane %v5017_v9, 1  ;;  %v1858_v40 = vadd.f32 %v1798_v34, %v1737_v33  ;;  %v6009_v33 = vld [vmem:[#allocation30_spill] sm:$0xff] }
 0x25d   :  { %v5405_v10 = vsel %vm575_vm0, %v6005_v54, %v6004_v14  ;;  %v1859_v59 = vadd.f32 %v1799_v46, %v1738_v43  ;;  %v2456_v13 = vadd.f32 %v2652_v58, %v2313_v31  ;;  %v1018_v9 = vmul.f32 %v2912_v44, %v5022_v25  ;;  %v6010_v43 = vld [vmem:[#allocation28_spill] sm:$0xff] }
 0x25e   :  { %v5412_v29 = vsel %vm768_vm1, %v6007_v17, %v6006_v53  ;;  %v6008_v50 = vmov %v6006_v53  ;;  %2550 = vst [vmem:[#allocation10 + $0x148] sm:$0xff] %v2486_v0  ;;  %v1019_v32 = vmul.f32 %v2912_v44, %v5015_v5  ;;  %v1200_v57 = vmul.f32 %v2943_v4, %v5029_v62  ;;  %v6011_v54 = vld [vmem:[#allocation20_spill] sm:$0xff] }
 0x25f   :  { %v5421_v20 = vsel %vm768_vm1, %v6008_v50, 0.0  ;;  %v1201_v34 = vmul.f32 %v2943_v4, %v5036_v28  ;;  %v1982_v46 = vadd.f32 %v1918_v6, %v1858_v40  ;;  %v1983_v12 = vadd.f32 %v1919_v56, %v1859_v59  ;;  %2520 = vst [vmem:[#allocation10 + $0x58] sm:$0xff] %v2456_v13  ;;  %v6012_v56 = vld [vmem:[#allocation41_spill] sm:$0xff] }
 0x260   :  { %v1325_v19 = vmul.f32 %v2925_v52, %v5986_v15  ;;  %v1326_v41 = vmul.f32 %v2925_v52, %v5212_v42  ;;  %v1139_v25 = vadd.f32 %v6009_v33, %v1018_v9  ;;  %v1140_v31 = vadd.f32 %v6010_v43, %v1019_v32  ;;  %v6013_v32 = vld [vmem:[#allocation33_spill] sm:$0xff] }
 0x261   :  { %v1519_v5 = vmul.f32 %v2941_v3, %v5221_v48  ;;  %v1520_v62 = vmul.f32 %v2941_v3, %v5226_v49  ;;  %v2050_v28 = vadd.f32 %v5352_v22, %v1982_v46  ;;  %v2051_v14 = vadd.f32 %v5352_v22, %v1983_v12 }
 0x262   :  { %v1454_v6 = vadd.f32 %v6011_v54, %v1325_v19  ;;  %v1455_v1 = vadd.f32 %v6012_v56, %v1326_v41  ;;  %v1260_v0 = vadd.f32 %v1200_v57, %v1139_v25  ;;  %v1261_v53 = vadd.f32 %v1201_v34, %v1140_v31  ;;  %v5455_v25 = vpop.f32.mrf.mxu3  ;;  %v6016_v54 = vld [vmem:[#allocation22_spill] sm:$0xff] }
 0x263   :  { %v1646_v17 = vmul.f32 %v2949_v7, %v5060_v61  ;;  %v1647_v40 = vmul.f32 %v2949_v7, %v5405_v10  ;;  %v2114_v59 = vmax.f32 %v2050_v28, 0.0  ;;  %v2115_v58 = vmax.f32 %v2051_v14, 0.0  ;;  %v5457_v7 = vpop.f32.mrf.mxu1  ;;  %v6014_v28 = vld [vmem:[#allocation46_spill] sm:$0xff] }
 0x264   :  { %v1583_v13 = vadd.f32 %v1519_v5, %v1454_v6  ;;  %v1584_v50 = vadd.f32 %v1520_v62, %v1455_v1  ;;  %v1828_v12 = vmul.f32 %v5272_v23, %v5412_v29  ;;  %v1829_v57 = vmul.f32 %v5272_v23, %v5421_v20 }
 0x265   :  { %v1767_v9 = vadd.f32 %v5054_v2, %v1646_v17  ;;  %v1768_v46 = vadd.f32 %v6013_v32, %v1647_v40  ;;  %v2178_v34 = vmin.f32 %v2114_v59, 6.0  ;;  %v2179_v19 = vmin.f32 %v2115_v58, 6.0  ;;  %v2654_v59 = vld [vmem:[#allocation2 + $0x60] sm:$0xff]  ;;  %v6018_v58 = vld [vmem:[#allocation36_spill] sm:$0xff] }
 0x266   :  { %v1950_v41 = vadd.f32 %v1583_v13, %v1260_v0  ;;  %v1951_v33 = vadd.f32 %v1584_v50, %v1261_v53  ;;  %v2391_v2 = vadd.f32 %v5108_v11, %v5345_v18  ;;  %v2316_v5 = vadd.f32 %v5108_v11, %v5347_v26  ;;  %v2653_v18 = vld [vmem:[#allocation2 + $0x150] sm:$0xff]  ;;  %v6019_v50 = vld [vmem:[#allocation49_spill] sm:$0xff] }
 0x267   :  { %v1888_v43 = vadd.f32 %v1828_v12, %v1767_v9  ;;  %v1889_v31 = vadd.f32 %v1829_v57, %v1768_v46  ;;  %v2229_v62 = vpack.c.bf16 %v2179_v19, %v2178_v34  ;;  %v6015_v14 = vrot.slane %v6014_v28, 1  ;;  %v6022_v28 = vld [vmem:[#allocation34_spill] sm:$0xff] }
 0x268   :  { %v6017_v6 = vrot.slane %v6016_v54, 1  ;;  %v990_v1 = vmul.f32 %v2912_v44, %v5966_v63  ;;  %v991_v0 = vmul.f32 %v2912_v44, %v5124_v37  ;;  %v2487_v40 = vadd.f32 %v2653_v18, %v2391_v2  ;;  %v6021_v2 = vld [vmem:[#allocation44_spill] sm:$0xff] }
 0x269   :  { %v2014_v53 = vadd.f32 %v1950_v41, %v1888_v43  ;;  %v2015_v17 = vadd.f32 %v1951_v33, %v1889_v31  ;;  %v2457_v26 = vadd.f32 %v2654_v59, %v2316_v5  ;;  %2349 = vmatmul.bf16.gmra.mxu1 %v2229_v62  ;;  %v1172_v32 = vmul.f32 %v2943_v4, %v5131_v24  ;;  %v6020_v43 = vld [vmem:[#allocation54_spill] sm:$0xff] }
 0x26a   :  { %v5468_v56 = vsel %vm768_vm1, %v6017_v6, %v6015_v14  ;;  %v1111_v13 = vadd.f32 %v6018_v58, %v990_v1  ;;  %v1112_v9 = vadd.f32 %v6019_v50, %v991_v0  ;;  %v1173_v63 = vmul.f32 %v2943_v4, %v5136_v30  ;;  %2551 = vst [vmem:[#allocation10 + $0x150] sm:$0xff] %v2487_v40  ;;  %v6023_v14 = vld [vmem:[#allocation27_spill] sm:$0xff]  ;;  %v5500_v0 = vpop.f32.mrf.mxu3 }
 0x26b   :  { %v2082_v46 = vadd.f32 %v5352_v22, %v2014_v53  ;;  %v2083_v37 = vadd.f32 %v5352_v22, %v2015_v17  ;;  %v1295_v12 = vmul.f32 %v2925_v52, %v6002_v8  ;;  %v1296_v57 = vmul.f32 %v2925_v52, %v5315_v45  ;;  %2521 = vst [vmem:[#allocation10 + $0x60] sm:$0xff] %v2457_v26  ;;  %v5502_v53 = vpop.f32.mrf.mxu1  ;;  %v6024_v26 = vld [vmem:[#allocation43_spill] sm:$0xff] }
 0x26c   :  { %v1232_v34 = vadd.f32 %v1172_v32, %v1111_v13  ;;  %v1233_v19 = vadd.f32 %v1173_v63, %v1112_v9  ;;  %v1489_v24 = vmul.f32 %v2941_v3, %v5322_v27  ;;  %v1490_v30 = vmul.f32 %v2941_v3, %v5329_v38  ;;  %v2655_v13 = vld [vmem:[#allocation2 + $0x158] sm:$0xff]  ;;  %v2656_v9 = vld [vmem:[#allocation2 + $0x68] sm:$0xff] }
 0x26d   :  { %v2146_v41 = vmax.f32 %v2082_v46, 0.0  ;;  %v2147_v33 = vmax.f32 %v2083_v37, 0.0  ;;  %v1424_v31 = vadd.f32 %v6020_v43, %v1295_v12  ;;  %v1425_v5 = vadd.f32 %v6021_v2, %v1296_v57 }
 0x26e   :  { %v1800_v62 = vmul.f32 %v5272_v23, %v5468_v56  ;;  %v1861_v54 = vadd.f32 %v6023_v14, %v6022_v28  ;;  %v2393_v6 = vadd.f32 %v5108_v11, %v5414_v55  ;;  %v2318_v1 = vadd.f32 %v5108_v11, %v5416_v36  ;;  %v6029_v28 = vld [vmem:[#allocation42_spill] sm:$0xff] }
 0x26f   :  { %v2210_v17 = vmin.f32 %v2146_v41, 6.0  ;;  %v2211_v18 = vmin.f32 %v2147_v33, 6.0  ;;  %v1553_v40 = vadd.f32 %v1489_v24, %v1424_v31  ;;  %v1554_v59 = vadd.f32 %v1490_v30, %v1425_v5  ;;  %v6028_v33 = vld [vmem:[#allocation37_spill] sm:$0xff] }
 0x270   :  { %v1860_v58 = vadd.f32 %v1800_v62, %v6024_v26  ;;  %v2488_v50 = vadd.f32 %v2655_v13, %v2393_v6  ;;  %v2458_v32 = vadd.f32 %v2656_v9, %v2318_v1  ;;  %v6025_v55 = vrot.slane %v5214_v16, 1 }
 0x271   :  { %v2245_v63 = vpack.c.bf16 %v2211_v18, %v2210_v17  ;;  %v1920_v46 = vadd.f32 %v1553_v40, %v1232_v34  ;;  %v1921_v37 = vadd.f32 %v1554_v59, %v1233_v19  ;;  %v1020_v12 = vmul.f32 %v2912_v44, %v5986_v15  ;;  %v6026_v19 = vld [vmem:[#allocation32_spill] sm:$0xff] }
 0x272   :  { %v5510_v36 = vsel %vm768_vm1, %v6025_v55, %v863_v39  ;;  %2552 = vst [vmem:[#allocation10 + $0x158] sm:$0xff] %v2488_v50  ;;  %v1021_v57 = vmul.f32 %v2912_v44, %v5212_v42  ;;  %v1202_v24 = vmul.f32 %v2943_v4, %v5221_v48  ;;  %v1203_v47 = vmul.f32 %v2943_v4, %v5226_v49  ;;  %v6027_v15 = vld [vmem:[#allocation16_spill] sm:$0xff]  ;;  %v5536_v6 = vpop.f32.mrf.mxu3  ;;  %v2657_v55 = vld [vmem:[#allocation2 + $0x160] sm:$0xff] }
 0x273   :  { %v1327_v16 = vmul.f32 %v2925_v52, %v5060_v61  ;;  %2429 = vmatmul.bf16.gmra.mxu3 %v2245_v63  ;;  %v1984_v39 = vadd.f32 %v1920_v46, %v1860_v58  ;;  %v1985_v34 = vadd.f32 %v1921_v37, %v1861_v54  ;;  %2522 = vst [vmem:[#allocation10 + $0x68] sm:$0xff] %v2458_v32  ;;  %v5538_v1 = vpop.f32.mrf.mxu1  ;;  %v6030_v58 = vld [vmem:[#allocation47_spill] sm:$0xff] }
 0x274   :  { %v1141_v30 = vadd.f32 %v6026_v19, %v1020_v12  ;;  %v1142_v41 = vadd.f32 %v6027_v15, %v1021_v57  ;;  %v1328_v42 = vmul.f32 %v2925_v52, %v5405_v10  ;;  %v1521_v48 = vmul.f32 %v2941_v3, %v5412_v29  ;;  %v6033_v15 = vld [vmem:[#allocation51_spill] sm:$0xff] }
 0x275   :  { %v1456_v43 = vadd.f32 %v6028_v33, %v1327_v16  ;;  %v2052_v49 = vadd.f32 %v5352_v22, %v1984_v39  ;;  %v2053_v31 = vadd.f32 %v5352_v22, %v1985_v34  ;;  %v1522_v5 = vmul.f32 %v2941_v3, %v5421_v20  ;;  %v6032_v34 = vld [vmem:[#allocation24_spill] sm:$0xff] }
 0x276   :  { %v1262_v2 = vadd.f32 %v1202_v24, %v1141_v30  ;;  %v1263_v62 = vadd.f32 %v1203_v47, %v1142_v41  ;;  %v1457_v14 = vadd.f32 %v6029_v28, %v1328_v42  ;;  %v1830_v52 = vmul.f32 %v5272_v23, %v5510_v36  ;;  %v6031_v24 = vld [vmem:[#allocation52_spill] sm:$0xff] }
 0x277   :  { %v1585_v54 = vadd.f32 %v1521_v48, %v1456_v43  ;;  %v2116_v17 = vmax.f32 %v2052_v49, 0.0  ;;  %v2117_v18 = vmax.f32 %v2053_v31, 0.0  ;;  %v1891_v40 = vadd.f32 %v5374_v35, %v5379_v51  ;;  %v2658_v35 = vld [vmem:[#allocation2 + $0x70] sm:$0xff]  ;;  %v6034_v41 = vld [vmem:[#allocation48_spill] sm:$0xff]  ;;  %v6035_v49 = vld [vmem:[#allocation17_spill] sm:$0xff] }
 0x278   :  { %v2396_v59 = vadd.f32 %v5108_v11, %v5455_v25  ;;  %v1586_v26 = vadd.f32 %v1522_v5, %v1457_v14  ;;  %v1890_v13 = vadd.f32 %v1830_v52, %v6030_v58  ;;  %v2321_v9 = vadd.f32 %v5108_v11, %v5457_v7  ;;  %v2660_v28 = vld [vmem:[#allocation2 + $0x78] sm:$0xff] }
 0x279   :  { %v1952_v50 = vadd.f32 %v1585_v54, %v1262_v2  ;;  %v2180_v23 = vmin.f32 %v2116_v17, 6.0  ;;  %v2181_v32 = vmin.f32 %v2117_v18, 6.0  ;;  %v992_v46 = vmul.f32 %v2912_v44, %v6002_v8 }
 0x27a   :  { %v2489_v63 = vadd.f32 %v2657_v55, %v2396_v59  ;;  %v1953_v37 = vadd.f32 %v1586_v26, %v1263_v62  ;;  %v2459_v51 = vadd.f32 %v2658_v35, %v2321_v9  ;;  %v993_v25 = vmul.f32 %v2912_v44, %v5315_v45  ;;  %v2402_v2 = vpop.f32.mrf.mxu3  ;;  %v6037_v26 = vld [vmem:[#allocation19_spill] sm:$0xff] }
 0x27b   :  { %v2016_v12 = vadd.f32 %v1952_v50, %v1890_v13  ;;  %v2230_v57 = vpack.c.bf16 %v2181_v32, %v2180_v23  ;;  %v1113_v47 = vadd.f32 %v6031_v24, %v992_v46  ;;  %v1174_v7 = vmul.f32 %v2943_v4, %v5322_v27  ;;  %v2327_v5 = vpop.f32.mrf.mxu1  ;;  %v2661_v35 = vld [vmem:[#allocation2 + $0x170] sm:$0xff]  ;;  %v2662_v24 = vld [vmem:[#allocation2 + $0x80] sm:$0xff] }
 0x27c   :  { %2553 = vst [vmem:[#allocation10 + $0x160] sm:$0xff] %v2489_v63  ;;  %v1175_v16 = vmul.f32 %v2943_v4, %v5329_v38  ;;  %v2017_v39 = vadd.f32 %v1953_v37, %v1891_v40  ;;  %v1114_v19 = vadd.f32 %v6032_v34, %v993_v25  ;;  %v1491_v30 = vmul.f32 %v2941_v3, %v5468_v56  ;;  %v2659_v56 = vld [vmem:[#allocation2 + $0x168] sm:$0xff]  ;;  %v6036_v40 = vld [vmem:[#allocation15_spill] sm:$0xff] }
 0x27d   :  { %v2084_v8 = vadd.f32 %v5352_v22, %v2016_v12  ;;  %2523 = vst [vmem:[#allocation10 + $0x70] sm:$0xff] %v2459_v51  ;;  %2354 = vmatmul.bf16.gmra.mxu1 %v2230_v57  ;;  %v1234_v45 = vadd.f32 %v1174_v7, %v1113_v47  ;;  %v1556_v42 = vadd.f32 %v6034_v41, %v6033_v15  ;;  %v2663_v7 = vld [vmem:[#allocation2 + $0x178] sm:$0xff]  ;;  %v2664_v34 = vld [vmem:[#allocation2 + $0x88] sm:$0xff] }
 0x27e   :  { %v2398_v27 = vadd.f32 %v5108_v11, %v5500_v0  ;;  %v2323_v38 = vadd.f32 %v5108_v11, %v5502_v53  ;;  %v2085_v33 = vadd.f32 %v5352_v22, %v2017_v39  ;;  %v1235_v48 = vadd.f32 %v1175_v16, %v1114_v19 }
 0x27f   :  { %v2148_v43 = vmax.f32 %v2084_v8, 0.0  ;;  %v1555_v31 = vadd.f32 %v1491_v30, %v6035_v49  ;;  %v1022_v54 = vmul.f32 %v2912_v44, %v5060_v61  ;;  %v1023_v0 = vmul.f32 %v2912_v44, %v5405_v10 }
 0x280   :  { %v2490_v62 = vadd.f32 %v2659_v56, %v2398_v27  ;;  %v2460_v14 = vadd.f32 %v2660_v28, %v2323_v38  ;;  %v2149_v52 = vmax.f32 %v2085_v33, 0.0  ;;  %v1923_v18 = vadd.f32 %v1556_v42, %v1235_v48  ;;  %v2666_v42 = vld [vmem:[#allocation2 + $0x90] sm:$0xff]  ;;  %v2667_v56 = vld [vmem:[#allocation2 + $0x188] sm:$0xff] }
 0x281   :  { %v2212_v53 = vmin.f32 %v2148_v43, 6.0  ;;  %v1922_v17 = vadd.f32 %v1555_v31, %v1234_v45  ;;  %v1143_v59 = vadd.f32 %v6036_v40, %v1022_v54  ;;  %v1144_v58 = vadd.f32 %v6037_v26, %v1023_v0  ;;  %v2665_v45 = vld [vmem:[#allocation2 + $0x180] sm:$0xff] }
 0x282   :  { %2554 = vst [vmem:[#allocation10 + $0x168] sm:$0xff] %v2490_v62  ;;  %v1204_v13 = vmul.f32 %v2943_v4, %v5412_v29  ;;  %v1205_v50 = vmul.f32 %v2943_v4, %v5421_v20  ;;  %v2213_v9 = vmin.f32 %v2149_v52, 6.0  ;;  %v2055_v44 = vadd.f32 %v5352_v22, %v1923_v18  ;;  %v6038_v20 = vld [vmem:[#allocation35_spill] sm:$0xff] }
 0x283   :  { %v2054_v61 = vadd.f32 %v5352_v22, %v1922_v17  ;;  %2524 = vst [vmem:[#allocation10 + $0x78] sm:$0xff] %v2460_v14  ;;  %v1523_v10 = vmul.f32 %v2941_v3, %v5510_v36  ;;  %v1588_v55 = vadd.f32 %v5370_v21, %v5376_v60  ;;  %v2401_v29 = vadd.f32 %v5108_v11, %v5536_v6  ;;  %v2405_v60 = vpop.f32.mrf.mxu3  ;;  %v2330_v57 = vpop.f32.mrf.mxu1  ;;  %v2669_v18 = vld [vmem:[#allocation2 + $0x190] sm:$0xff] }
 0x284   :  { %v1264_v23 = vadd.f32 %v1204_v13, %v1143_v59  ;;  %v1265_v32 = vadd.f32 %v1205_v50, %v1144_v58  ;;  %v2246_v63 = vpack.c.bf16 %v2213_v9, %v2212_v53  ;;  %v2119_v4 = vmax.f32 %v2055_v44, 0.0  ;;  %v2670_v59 = vld [vmem:[#allocation2 + $0xa0] sm:$0xff] }
 0x285   :  { %v2118_v46 = vmax.f32 %v2054_v61, 0.0  ;;  %v1587_v37 = vadd.f32 %v1523_v10, %v6038_v20  ;;  %v2491_v51 = vadd.f32 %v2661_v35, %v2401_v29  ;;  %v2326_v25 = vadd.f32 %v5108_v11, %v5538_v1  ;;  %v2671_v61 = vld [vmem:[#allocation2 + $0x198] sm:$0xff]  ;;  %v2672_v10 = vld [vmem:[#allocation2 + $0xa8] sm:$0xff]  ;;  %v2673_v29 = vld [vmem:[#allocation2 + $0x1a0] sm:$0xff] }
 0x286   :  { %v1955_v12 = vadd.f32 %v1588_v55, %v1265_v32  ;;  %v2403_v3 = vadd.f32 %v5108_v11, %v2402_v2  ;;  %2434 = vmatmul.bf16.gmra.mxu3 %v2246_v63  ;;  %v2328_v21 = vadd.f32 %v5108_v11, %v2327_v5  ;;  %v2183_v6 = vmin.f32 %v2119_v4, 6.0  ;;  %v2674_v20 = vld [vmem:[#allocation2 + $0xb0] sm:$0xff] }
 0x287   :  { %v1954_v36 = vadd.f32 %v1587_v37, %v1264_v23  ;;  %2555 = vst [vmem:[#allocation10 + $0x170] sm:$0xff] %v2491_v51  ;;  %v2461_v47 = vadd.f32 %v2662_v24, %v2326_v25  ;;  %v2406_v39 = vadd.f32 %v5108_v11, %v2405_v60  ;;  %v2331_v19 = vadd.f32 %v5108_v11, %v2330_v57  ;;  %v2675_v51 = vld [vmem:[#allocation2 + $0x1a8] sm:$0xff]  ;;  %v2677_v24 = vld [vmem:[#allocation2 + $0x1b0] sm:$0xff] }
 0x288   :  { %v2492_v16 = vadd.f32 %v2663_v7, %v2403_v3  ;;  %v2087_v8 = vadd.f32 %v5352_v22, %v1955_v12  ;;  %v2462_v1 = vadd.f32 %v2664_v34, %v2328_v21  ;;  %v2182_v30 = vmin.f32 %v2118_v46, 6.0  ;;  %v2676_v21 = vld [vmem:[#allocation2 + $0xb8] sm:$0xff] }
 0x289   :  { %2525 = vst [vmem:[#allocation10 + $0x80] sm:$0xff] %v2461_v47  ;;  %v2493_v15 = vadd.f32 %v2665_v45, %v2406_v39  ;;  %v2086_v41 = vadd.f32 %v5352_v22, %v1954_v36  ;;  %v2463_v27 = vadd.f32 %v2666_v42, %v2331_v19  ;;  %v2668_v22 = vld [vmem:[#allocation2 + $0x98] sm:$0xff]  ;;  %v2679_v19 = vld [vmem:[#allocation2 + $0xc0] sm:$0xff] }
 0x28a   :  { %2556 = vst [vmem:[#allocation10 + $0x178] sm:$0xff] %v2492_v16  ;;  %v2231_v38 = vpack.c.bf16 %v2183_v6, %v2182_v30  ;;  %v2151_v33 = vmax.f32 %v2087_v8, 0.0  ;;  %v2678_v34 = vld [vmem:[#allocation2 + $0x1b8] sm:$0xff] }
 0x28b   :  { %2526 = vst [vmem:[#allocation10 + $0x88] sm:$0xff] %v2462_v1  ;;  %v2150_v43 = vmax.f32 %v2086_v41, 0.0  ;;  %v2407_v48 = vpop.f32.mrf.mxu3  ;;  %v2332_v49 = vpop.f32.mrf.mxu1  ;;  %v2680_v41 = vld [vmem:[#allocation2 + $0xc8] sm:$0xff] }
 0x28c   :  { %2557 = vst [vmem:[#allocation10 + $0x180] sm:$0xff] %v2493_v15  ;;  %v2408_v31 = vadd.f32 %v5108_v11, %v2407_v48  ;;  %v2333_v2 = vadd.f32 %v5108_v11, %v2332_v49  ;;  %v2215_v5 = vmin.f32 %v2151_v33, 6.0  ;;  %v2681_v33 = vld [vmem:[#allocation2 + $0x1c0] sm:$0xff] }
 0x28d   :  { %2359 = vmatmul.bf16.gmra.mxu1 %v2231_v38  ;;  %2527 = vst [vmem:[#allocation10 + $0x90] sm:$0xff] %v2463_v27  ;;  %v2214_v14 = vmin.f32 %v2150_v43, 6.0 }
 0x28e   :  { %v2494_v62 = vadd.f32 %v2667_v56, %v2408_v31  ;;  %v2464_v28 = vadd.f32 %v2668_v22, %v2333_v2 }
 0x28f   :  { %v2247_v54 = vpack.c.bf16 %v2215_v5, %v2214_v14  ;;  %v2682_v5 = vld [vmem:[#allocation2 + $0xd0] sm:$0xff] }
 0x290   :  { %2558 = vst [vmem:[#allocation10 + $0x188] sm:$0xff] %v2494_v62  ;;  %v2683_v62 = vld [vmem:[#allocation2 + $0x1c8] sm:$0xff] }
 0x291   :  { %2528 = vst [vmem:[#allocation10 + $0x98] sm:$0xff] %v2464_v28 }
 0x293   :  { %v2410_v0 = vpop.f32.mrf.mxu3  ;;  %v2335_v52 = vpop.f32.mrf.mxu1 }
 0x294   :  { %v2411_v53 = vadd.f32 %v5108_v11, %v2410_v0  ;;  %v2336_v17 = vadd.f32 %v5108_v11, %v2335_v52 }
 0x296   :  { %2439 = vmatmul.bf16.gmra.mxu3 %v2247_v54  ;;  %v2495_v40 = vadd.f32 %v2669_v18, %v2411_v53  ;;  %v2465_v26 = vadd.f32 %v2670_v59, %v2336_v17  ;;  %v2684_v54 = vld [vmem:[#allocation2 + $0xd8] sm:$0xff]  ;;  %v2685_v17 = vld [vmem:[#allocation2 + $0x1d0] sm:$0xff] }
 0x298   :  { %2559 = vst [vmem:[#allocation10 + $0x190] sm:$0xff] %v2495_v40 }
 0x299   :  { %2529 = vst [vmem:[#allocation10 + $0xa0] sm:$0xff] %v2465_v26  ;;  %v2686_v26 = vld [vmem:[#allocation2 + $0xe0] sm:$0xff] }
 0x29b   :  { %v2412_v58 = vpop.f32.mrf.mxu3  ;;  %v2337_v13 = vpop.f32.mrf.mxu1 }
 0x29c   :  { %v2413_v50 = vadd.f32 %v5108_v11, %v2412_v58  ;;  %v2338_v9 = vadd.f32 %v5108_v11, %v2337_v13 }
 0x29e   :  { %v2496_v44 = vadd.f32 %v2671_v61, %v2413_v50  ;;  %v2466_v23 = vadd.f32 %v2672_v10, %v2338_v9  ;;  %v2687_v9 = vld [vmem:[#allocation2 + $0x1d8] sm:$0xff]  ;;  %v2688_v10 = vld [vmem:[%s5631_s6] ss:$0 sm:$0xff]  ;;  %s2830_s6 = smov [#allocation10]  }
 0x29f   :  { %s2577_s16 = sshll.u32 %s2830_s6, 4  ;;  %s2578_s16 = int_to_ptr.vmem [resolvable:$true] %s2577_s16 }
 0x2a0   :  { %2560 = vst [vmem:[#allocation10 + $0x198] sm:$0xff] %v2496_v44 }
 0x2a1   :  { %2530 = vst [vmem:[#allocation10 + $0xa8] sm:$0xff] %v2466_v23 }
 0x2a3   :  { %v2415_v32 = vpop.f32.mrf.mxu3  ;;  %v2340_v46 = vpop.f32.mrf.mxu1 }
 0x2a4   :  { %v2416_v55 = vadd.f32 %v5108_v11, %v2415_v32  ;;  %v2341_v4 = vadd.f32 %v5108_v11, %v2340_v46  ;;  %v2689_v32 = vld [vmem:[#allocation2 + $0xe8] sm:$0xff] }
 0x2a6   :  { %v2497_v63 = vadd.f32 %v2673_v29, %v2416_v55  ;;  %v2467_v37 = vadd.f32 %v2674_v20, %v2341_v4  ;;  %v2690_v20 = vld [vmem:[#allocation2 + $0x1e0] sm:$0xff] }
 0x2a8   :  { %2561 = vst [vmem:[#allocation10 + $0x1a0] sm:$0xff] %v2497_v63 }
 0x2a9   :  { %2531 = vst [vmem:[#allocation10 + $0xb0] sm:$0xff] %v2467_v37 }
 0x2ab   :  { %v2417_v12 = vpop.f32.mrf.mxu3  ;;  %v2342_v3 = vpop.f32.mrf.mxu1 }
 0x2ac   :  { %v2418_v35 = vadd.f32 %v5108_v11, %v2417_v12  ;;  %v2343_v36 = vadd.f32 %v5108_v11, %v2342_v3  ;;  %v2691_v12 = vld [vmem:[#allocation2 + $0xf0] sm:$0xff] }
 0x2ae   :  { %v2498_v25 = vadd.f32 %v2675_v51, %v2418_v35  ;;  %v2468_v60 = vadd.f32 %v2676_v21, %v2343_v36  ;;  %v2692_v36 = vld [vmem:[#allocation2 + $0x1e8] sm:$0xff] }
 0x2b0   :  { %2562 = vst [vmem:[#allocation10 + $0x1a8] sm:$0xff] %v2498_v25 }
 0x2b1   :  { %2532 = vst [vmem:[#allocation10 + $0xb8] sm:$0xff] %v2468_v60  ;;  %v2693_v60 = vld [vmem:[#allocation2 + $0xf8] sm:$0xff] }
 0x2b9   :  { %v2420_v57 = vpop.f32.mrf.mxu3 }
 0x2ba   :  { %v2421_v6 = vadd.f32 %v5108_v11, %v2420_v57 }
 0x2bc   :  { %v2499_v47 = vadd.f32 %v2677_v24, %v2421_v6 }
 0x2be   :  { %2563 = vst [vmem:[#allocation10 + $0x1b0] sm:$0xff] %v2499_v47  ;;  %v2694_v47 = vld [vmem:[#allocation2 + $0x1f0] sm:$0xff] }
 0x2c1   :  { %v2422_v7 = vpop.f32.mrf.mxu3 }
 0x2c2   :  { %v2423_v16 = vadd.f32 %v5108_v11, %v2422_v7 }
 0x2c4   :  { %v2345_v39 = vpop.f32.mrf.mxu1  ;;  %v2500_v1 = vadd.f32 %v2678_v34, %v2423_v16 }
 0x2c5   :  { %v2346_v8 = vadd.f32 %v5108_v11, %v2345_v39 }
 0x2c6   :  { %2564 = vst [vmem:[#allocation10 + $0x1b8] sm:$0xff] %v2500_v1 }
 0x2c7   :  { %v2469_v30 = vadd.f32 %v2679_v19, %v2346_v8  ;;  %v2695_v8 = vld [vmem:[#allocation2 + $0x1f8] sm:$0xff] }
 0x2c9   :  { %2533 = vst [vmem:[#allocation10 + $0xc0] sm:$0xff] %v2469_v30 }
 0x2cc   :  { %v2347_v45 = vpop.f32.mrf.mxu1 }
 0x2cd   :  { %v2348_v15 = vadd.f32 %v5108_v11, %v2347_v45 }
 0x2cf   :  { %v2470_v42 = vadd.f32 %v2680_v41, %v2348_v15 }
 0x2d1   :  { %2534 = vst [vmem:[#allocation10 + $0xc8] sm:$0xff] %v2470_v42 }
 0x2dd   :  { %v2425_v27 = vpop.f32.mrf.mxu3 }
 0x2de   :  { %v2426_v38 = vadd.f32 %v5108_v11, %v2425_v27 }
 0x2e0   :  { %v2501_v43 = vadd.f32 %v2681_v33, %v2426_v38 }
 0x2e2   :  { %2565 = vst [vmem:[#allocation10 + $0x1c0] sm:$0xff] %v2501_v43 }
 0x2e5   :  { %v2427_v49 = vpop.f32.mrf.mxu3 }
 0x2e6   :  { %v2350_v48 = vpop.f32.mrf.mxu1  ;;  %v2428_v2 = vadd.f32 %v5108_v11, %v2427_v49 }
 0x2e7   :  { %v2351_v31 = vadd.f32 %v5108_v11, %v2350_v48 }
 0x2e8   :  { %v2502_v22 = vadd.f32 %v2683_v62, %v2428_v2 }
 0x2e9   :  { %v2471_v56 = vadd.f32 %v2682_v5, %v2351_v31 }
 0x2ea   :  { %2566 = vst [vmem:[#allocation10 + $0x1c8] sm:$0xff] %v2502_v22 }
 0x2eb   :  { %2535 = vst [vmem:[#allocation10 + $0xd0] sm:$0xff] %v2471_v56 }
 0x2ee   :  { %v2352_v28 = vpop.f32.mrf.mxu1 }
 0x2ef   :  { %v2353_v14 = vadd.f32 %v5108_v11, %v2352_v28 }
 0x2f1   :  { %v2472_v0 = vadd.f32 %v2684_v54, %v2353_v14 }
 0x2f3   :  { %2536 = vst [vmem:[#allocation10 + $0xd8] sm:$0xff] %v2472_v0 }
 0x2f6   :  { %v2430_v52 = vpop.f32.mrf.mxu3 }
 0x2f7   :  { %v2431_v53 = vadd.f32 %v5108_v11, %v2430_v52 }
 0x2f9   :  { %v2503_v18 = vadd.f32 %v2685_v17, %v2431_v53 }
 0x2fa   :  { %v2355_v40 = vpop.f32.mrf.mxu1 }
 0x2fb   :  { %2567 = vst [vmem:[#allocation10 + $0x1d0] sm:$0xff] %v2503_v18  ;;  %v2356_v59 = vadd.f32 %v5108_v11, %v2355_v40 }
 0x2fd   :  { %v2473_v58 = vadd.f32 %v2686_v26, %v2356_v59 }
 0x2fe   :  { %v2432_v13 = vpop.f32.mrf.mxu3 }
 0x2ff   :  { %2537 = vst [vmem:[#allocation10 + $0xe0] sm:$0xff] %v2473_v58  ;;  %v2433_v50 = vadd.f32 %v5108_v11, %v2432_v13 }
 0x301   :  { %v2504_v61 = vadd.f32 %v2687_v9, %v2433_v50 }
 0x302   :  { %v2357_v44 = vpop.f32.mrf.mxu1 }
 0x303   :  { %2568 = vst [vmem:[#allocation10 + $0x1d8] sm:$0xff] %v2504_v61  ;;  %v2358_v23 = vadd.f32 %v2688_v10, %v2357_v44 }
 0x305   :  { %v2474_v55 = vadd.f32 %v2689_v32, %v2358_v23 }
 0x307   :  { %2538 = vst [vmem:[#allocation10 + $0xe8] sm:$0xff] %v2474_v55 }
 0x309   :  { %v2435_v29 = vpop.f32.mrf.mxu3 }
 0x30a   :  { %v2436_v63 = vadd.f32 %v2688_v10, %v2435_v29  ;;  %v2360_v46 = vpop.f32.mrf.mxu1 }
 0x30b   :  { %v2361_v4 = vadd.f32 %v2688_v10, %v2360_v46 }
 0x30c   :  { %v2505_v37 = vadd.f32 %v2690_v20, %v2436_v63 }
 0x30d   :  { %v2475_v11 = vadd.f32 %v2691_v12, %v2361_v4 }
 0x30e   :  { %2569 = vst [vmem:[#allocation10 + $0x1e0] sm:$0xff] %v2505_v37 }
 0x30f   :  { %2539 = vst [vmem:[#allocation10 + $0xf0] sm:$0xff] %v2475_v11 }
 0x311   :  { %v2437_v35 = vpop.f32.mrf.mxu3 }
 0x312   :  { %v2438_v51 = vadd.f32 %v2688_v10, %v2437_v35  ;;  %v2362_v25 = vpop.f32.mrf.mxu1 }
 0x313   :  { %v2363_v3 = vadd.f32 %v2688_v10, %v2362_v25 }
 0x314   :  { %v2506_v21 = vadd.f32 %v2692_v36, %v2438_v51 }
 0x315   :  { %v2476_v57 = vadd.f32 %v2693_v60, %v2363_v3 }
 0x316   :  { %2570 = vst [vmem:[#allocation10 + $0x1e8] sm:$0xff] %v2506_v21 }
 0x317   :  { %2540 = vst [vmem:[#allocation10 + $0xf8] sm:$0xff] %v2476_v57 }
 0x319   :  { %v2440_v6 = vpop.f32.mrf.mxu3 }
 0x31a   :  { %v2441_v24 = vadd.f32 %v2688_v10, %v2440_v6 }
 0x31c   :  { %v2507_v7 = vadd.f32 %v2694_v47, %v2441_v24 }
 0x31e   :  { %2571 = vst [vmem:[#allocation10 + $0x1f0] sm:$0xff] %v2507_v7 }
 0x321   :  { %v2442_v16 = vpop.f32.mrf.mxu3 }
 0x322   :  { %v2443_v39 = vadd.f32 %v2688_v10, %v2442_v16 }
 0x324   :  { %v2508_v34 = vadd.f32 %v2695_v8, %v2443_v39 }
 0x326   :  { %2572 = vst [vmem:[#allocation10 + $0x1f8] sm:$0xff] %v2508_v34 }
 0x327   :  { %2585 = dma.vmem_to_hbm [thread:$0]  %s2578_s16, 8192, %s2580_s19, [#allocation4], %s2825_s9, %s2825_s9, %s2826_s10  }
 0x328   :  { %2822 = dma.done.wait [#allocation4], 8192  }
 0x329   :  { %2823 = vsyncadd [#allocation4], 4294959104 }
 0x32a   :  { %2590 = vsyncpa [#allocation3], 1 }
 0x32b   :  { %2591 = vsyncpa [#allocation6], 1 }
 0x32c   :  { %2592 = vsyncpa [#allocation9], 1 }
 0x32d   :  { %2593 = vsyncpa [#allocation4], 1 }

</bundles_post_ra>
